<compile_context>
chip_gen: v6e
topology: v6e:2x2x1
jax: 0.10.0
libtpu: 0.0.40
codegen_flags: <defaults>
</compile_context>

<pallas_src>
import functools

import jax
import jax.numpy as jnp
from jax.experimental import pallas as pl
from jax.experimental.pallas import tpu as pltpu

_MXU_DTYPE = jnp.bfloat16     # MXU operand dtype
_ACT_DTYPE = jnp.bfloat16     # inter-layer activation storage dtype


# ---------------------------------------------------------------------------
# Helpers
# ---------------------------------------------------------------------------
def _round_up(x, m):
    return ((x + m - 1) // m) * m


@functools.lru_cache(maxsize=None)
def _vmem_limit_bytes():
    """Per-chip scoped-VMEM budget: ~3/4 of physical, capped at 96 MiB.
    v5e/v6e (128 MiB) -> 96 MiB, v7x (64 MiB) -> 48 MiB."""
    cap = 64 * 1024 * 1024            # conservative fallback (v7x-sized)
    try:
        cap = int(getattr(pltpu.get_tpu_info(), "vmem_capacity_bytes", cap))
    except Exception:
        pass
    return int(min(cap * 3 // 4, 96 * 1024 * 1024))


def _pick_tn(cout_p, n_batch, cap=512):
    """Largest divisor of cout_p that is a multiple of 128 and <= cap, so the
    cout grid axis is usually 1, stores stay lane-dense and nothing is padded
    up to a tile multiple."""
    tn = 128
    d = 128
    while d <= min(cout_p, cap):
        if cout_p % d == 0:
            tn = d
        d += 128
    # keep >= 2 parallel grid tiles when the batch alone can't feed both v7x TCs
    if n_batch == 1 and tn == cout_p and cout_p % 256 == 0:
        tn = cout_p // 2
    return tn


def _build_phases(x, kh, kw, stride, padding, ho, wo):
    """Spatially pad x and split it into stride-phases so every conv tap maps
    to a STATIC unit-stride slice inside the kernel (no HBM im2col: ~1x
    activation bytes instead of kh*kw x).

    Returns phases (N*P, Hph, Wph, C), taps (phase_idx, row_off, col_off) per
    (dy, dx) in weight order, and P (number of phases; 1 for stride 1)."""
    n, h, w, c = x.shape
    hp = stride * ((kh - 1) // stride + ho)
    wp = stride * ((kw - 1) // stride + wo)
    xp = jnp.pad(x, ((0, 0),
                     (padding, max(0, hp - h - padding)),
                     (padding, max(0, wp - w - padding)),
                     (0, 0)))
    xp = xp[:, :hp, :wp, :]
    phase_ids = sorted({(dy % stride, dx % stride)
                        for dy in range(kh) for dx in range(kw)})
    phases = jnp.stack([xp[:, py::stride, px::stride, :] for (py, px) in phase_ids],
                       axis=1)                                  # (N, P, hp/s, wp/s, C)
    p = len(phase_ids)
    phases = phases.reshape(n * p, hp // stride, wp // stride, c)
    taps = tuple((phase_ids.index((dy % stride, dx % stride)),
                  dy // stride, dx // stride)
                 for dy in range(kh) for dx in range(kw))
    return phases, taps, p


# ---------------------------------------------------------------------------
# Pallas kernel: direct conv (one matmul per tap) + folded-BN bias
#                + optional ReLU + optional fused residual add
# ---------------------------------------------------------------------------
def _conv_kernel(taps, ho, wo, relu, has_add, *refs):
    if has_add:
        x_ref, w_ref, b_ref, a_ref, o_ref = refs
    else:
        x_ref, w_ref, b_ref, o_ref = refs

    cin = x_ref.shape[-1]
    tn = o_ref.shape[-1]
    m = ho * wo

    acc = jnp.zeros((m, tn), jnp.float32)
    for t, (p_idx, oy, ox) in enumerate(taps):
        xs = x_ref[p_idx, oy:oy + ho, ox:ox + wo, :]           # (ho, wo, cin)
        acc = acc + jnp.dot(xs.reshape(m, cin), w_ref[t],
                            preferred_element_type=jnp.float32)

    acc = acc + b_ref[...]                                     # folded BN bias (f32)
    if relu:
        acc = jnp.maximum(acc, 0.0)
    if has_add:
        acc = acc + a_ref[...].reshape(m, tn).astype(jnp.float32)
    o_ref[...] = acc.reshape(1, ho, wo, tn).astype(o_ref.dtype)


# ---------------------------------------------------------------------------
# Wrapper: one fused Conv + BN (+ReLU) (+residual add) via pallas_call
# ---------------------------------------------------------------------------
def conv_bn_act(x, prep, *, ksize, stride, padding, relu, add=None,
                out_dtype=_ACT_DTYPE):
    """x: (N, H, W, Cin) NHWC activation (channel padding from the previous
    layer is consumed directly — the matching weight rows are zero).
    prep: dict(w=(kh*kw, Cin, Cout_p) bf16, bias=(1, Cout_p) f32).
    Returns (N, Ho, Wo, Cout_p) in out_dtype; padded channels stay exactly 0."""
    x = x.astype(_MXU_DTYPE)
    n, h, w, cin = x.shape
    kh = kw = ksize
    assert prep["w"].shape[0] == kh * kw and prep["w"].shape[1] == cin, (
        prep["w"].shape, (kh * kw, cin))
    cout_p = prep["w"].shape[-1]
    ho = (h + 2 * padding - kh) // stride + 1
    wo = (w + 2 * padding - kw) // stride + 1

    phases, taps, n_phase = _build_phases(x, kh, kw, stride, padding, ho, wo)
    hph, wph = phases.shape[1], phases.shape[2]

    tn = _pick_tn(cout_p, n)
    grid = (n, cout_p // tn)              # both axes "parallel"

    inputs = [phases, prep["w"], prep["bias"]]
    in_specs = [
        # per-batch phase stack; j-independent -> not re-fetched across cout tiles
        pl.BlockSpec((n_phase, hph, wph, cin), lambda b, j: (b, 0, 0, 0)),
        pl.BlockSpec((kh * kw, cin, tn), lambda b, j: (0, 0, j)),
        pl.BlockSpec((1, tn), lambda b, j: (0, j)),
    ]
    has_add = add is not None
    if has_add:
        inputs.append(add.astype(_MXU_DTYPE))
        in_specs.append(pl.BlockSpec((1, ho, wo, tn), lambda b, j: (b, 0, 0, j)))

    return pl.pallas_call(
        functools.partial(_conv_kernel, taps, ho, wo, relu, has_add),
        out_shape=jax.ShapeDtypeStruct((n, ho, wo, cout_p), out_dtype),
        grid=grid,
        in_specs=in_specs,
        out_specs=pl.BlockSpec((1, ho, wo, tn), lambda b, j: (b, 0, 0, j)),
        compiler_params=pltpu.CompilerParams(
            dimension_semantics=("parallel", "parallel"),
            vmem_limit_bytes=_vmem_limit_bytes()),
    )(*inputs)


# ---------------------------------------------------------------------------
# One-time parameter preparation (BN folding hoisted out of the forward path)
# ---------------------------------------------------------------------------
def _prep_conv(p, cin_pad, eps=1e-5):
    kh, kw, cin, cout = p["w"].shape
    cout_p = _round_up(cout, 128)
    scale = p["gamma"] / jnp.sqrt(p["var"] + eps)              # (cout,)
    bias = (p["b"] - p["mean"]) * scale + p["beta"]            # (cout,)
    wmat = (p["w"] * scale[None, None, None, :]).reshape(kh * kw, cin, cout)
    wmat = jnp.pad(wmat, ((0, 0), (0, cin_pad - cin), (0, cout_p - cout)))
    bias = jnp.pad(bias, (0, cout_p - cout)).reshape(1, cout_p)
    return dict(w=wmat.astype(_MXU_DTYPE), bias=bias.astype(jnp.float32))


def prepare_block_params(params, is_bottleneck=True):
    in_ch = params["conv1"]["w"].shape[2]
    out_ch = params["conv1"]["w"].shape[3]
    in_p = _round_up(in_ch, 8)            # block input channels padded to 8
    out_p = _round_up(out_ch, 128)        # chained activations carry out_p lanes
    prep = {
        "conv1": _prep_conv(params["conv1"], in_p),
        "conv2": _prep_conv(params["conv2"], out_p),
        "down": _prep_conv(params["down"], in_p),
    }
    if is_bottleneck:
        mid = params["bn1"]["w"].shape[3]
        mid_p = _round_up(mid, 128)
        prep["bn1"] = _prep_conv(params["bn1"], out_p)
        prep["bn2"] = _prep_conv(params["bn2"], mid_p)
        prep["bn3"] = _prep_conv(params["bn3"], mid_p)
    return prep


# ---------------------------------------------------------------------------
# Parameter init (deterministic, synthetic)
# ---------------------------------------------------------------------------
def _make_conv_bn(key, kh, kw, cin, cout):
    k1, k2, k3, k4, k5, k6 = jax.random.split(key, 6)
    return dict(
        w=jax.random.normal(k1, (kh, kw, cin, cout), jnp.float32) * 0.1,
        b=jax.random.normal(k2, (cout,), jnp.float32) * 0.05,
        gamma=1.0 + 0.1 * jax.random.normal(k3, (cout,), jnp.float32),
        beta=0.05 * jax.random.normal(k4, (cout,), jnp.float32),
        mean=0.05 * jax.random.normal(k5, (cout,), jnp.float32),
        var=1.0 + 0.1 * jnp.abs(jax.random.normal(k6, (cout,), jnp.float32)),
    )


def init_block_params(key, in_channel, out_channel, is_bottleneck=True):
    keys = jax.random.split(key, 6)
    params = {
        "conv1": _make_conv_bn(keys[0], 3, 3, in_channel, out_channel),
        "conv2": _make_conv_bn(keys[1], 3, 3, out_channel, out_channel),
        "down": _make_conv_bn(keys[2], 1, 1, in_channel, out_channel),
    }
    if is_bottleneck:
        mid = out_channel // 4
        params["bn1"] = _make_conv_bn(keys[3], 1, 1, out_channel, mid)
        params["bn2"] = _make_conv_bn(keys[4], 3, 3, mid, mid)
        params["bn3"] = _make_conv_bn(keys[5], 1, 1, mid, out_channel)
    return params


# ---------------------------------------------------------------------------
# Full Block forward (mirrors the PyTorch module)
# ---------------------------------------------------------------------------
@functools.partial(jax.jit, static_argnames=("out_channel", "is_bottleneck"))
def block_forward(x_nchw, prep, out_channel, is_bottleneck=True):
    x = jnp.transpose(x_nchw, (0, 2, 3, 1)).astype(_MXU_DTYPE)   # NCHW -> NHWC
    cin = x.shape[-1]
    cin_p = _round_up(cin, 8)
    if cin_p != cin:
        x = jnp.pad(x, ((0, 0), (0, 0), (0, 0), (0, cin_p - cin)))
    identity = x

    h = conv_bn_act(x, prep["conv1"], ksize=3, stride=2, padding=1, relu=True)
    h = conv_bn_act(h, prep["conv2"], ksize=3, stride=1, padding=1, relu=True)
    # out = conv2_path + relu(BN(down(identity)))  — ReLU on the downsample
    # branch before the sum (PyTorch ordering); the add is fused in-kernel.
    merged_dtype = _ACT_DTYPE if is_bottleneck else jnp.float32
    h = conv_bn_act(identity, prep["down"], ksize=1, stride=2, padding=0,
                    relu=True, add=h, out_dtype=merged_dtype)

    if is_bottleneck:
        h = conv_bn_act(h, prep["bn1"], ksize=1, stride=1, padding=0, relu=True)
        h = conv_bn_act(h, prep["bn2"], ksize=3, stride=1, padding=1, relu=True)
        h = conv_bn_act(h, prep["bn3"], ksize=1, stride=1, padding=0, relu=False,
                        out_dtype=jnp.float32)

    h = h[:, :, :, :out_channel]                                 # drop lane padding
    return jnp.transpose(h, (0, 3, 1, 2)).astype(jnp.float32)    # NHWC -> NCHW


# ---------------------------------------------------------------------------
if __name__ == "__main__":
    N, Cin, H, W = 2, 4, 16, 16
    Cout = 8                                  # divisible by 4 (bottleneck)

    key = jax.random.PRNGKey(0)
    kx, kp = jax.random.split(key)
    x = jax.random.normal(kx, (N, Cin, H, W), dtype=jnp.float32)  # NCHW like PyTorch
    params = init_block_params(kp, Cin, Cout, is_bottleneck=True)
    prep = prepare_block_params(params, is_bottleneck=True)       # hoisted weight prep

    y = block_forward(x, prep, out_channel=Cout, is_bottleneck=True)
    y = jax.block_until_ready(y)

    assert y.shape == (N, Cout, H // 2, W // 2), y.shape
    assert y.dtype == jnp.float32
    assert jnp.all(jnp.isfinite(y))
    print("KERNEL_OK")
</pallas_src>

<mosaic_0001>
module attributes {stable_mosaic.version = 11 : i64} {
  func.func @_conv_kernel(%arg0: i32, %arg1: i32, %arg2: memref<4x9x9x8xbf16, #tpu.memory_space<vmem>>, %arg3: memref<9x8x128xbf16, #tpu.memory_space<vmem>>, %arg4: memref<1x128xf32, #tpu.memory_space<vmem>>, %arg5: memref<1x8x8x128xbf16, #tpu.memory_space<vmem>>) attributes {dimension_semantics = [#tpu.dimension_semantics<parallel>, #tpu.dimension_semantics<parallel>], iteration_bounds = array<i64: 2, 1>, scalar_prefetch = 0 : i64, scratch_operands = 0 : i64, tpu.core_type = #tpu.core_type<tc>, window_params = [{transform_indices = @transform_0, window_bounds = array<i64: 4, 9, 9, 8>}, {transform_indices = @transform_1, window_bounds = array<i64: 9, 8, 128>}, {transform_indices = @transform_2, window_bounds = array<i64: 1, 128>}, {transform_indices = @transform_3, window_bounds = array<i64: 1, 8, 8, 128>}]} {
    %cst = arith.constant 0.000000e+00 : f32
    %0 = vector.broadcast %cst : f32 to vector<64x128xf32>
    %c0 = arith.constant 0 : index
    %c0_0 = arith.constant 0 : index
    %c0_1 = arith.constant 0 : index
    %c0_2 = arith.constant 0 : index
    %1 = vector.load %arg2[%c0, %c0_0, %c0_1, %c0_2] : memref<4x9x9x8xbf16, #tpu.memory_space<vmem>>, vector<1x8x8x8xbf16>
    %2 = vector.shape_cast %1 : vector<1x8x8x8xbf16> to vector<8x8x8xbf16>
    %3 = vector.shape_cast %2 : vector<8x8x8xbf16> to vector<64x8xbf16>
    %c0_3 = arith.constant 0 : index
    %c0_4 = arith.constant 0 : index
    %c0_5 = arith.constant 0 : index
    %4 = vector.load %arg3[%c0_3, %c0_4, %c0_5] : memref<9x8x128xbf16, #tpu.memory_space<vmem>>, vector<1x8x128xbf16>
    %5 = vector.shape_cast %4 : vector<1x8x128xbf16> to vector<8x128xbf16>
    %cst_6 = arith.constant dense<0.000000e+00> : vector<64x128xf32>
    %6 = tpu.matmul %3, %5, %cst_6 {dimension_numbers = #tpu.dot_dimension_numbers<[1], [0], [0], [1], [0, 0, 1, 1], [], []>} : vector<64x8xbf16>, vector<8x128xbf16>, vector<64x128xf32> -> vector<64x128xf32>
    %7 = arith.addf %0, %6 : vector<64x128xf32>
    %c1 = arith.constant 1 : index
    %c0_7 = arith.constant 0 : index
    %c0_8 = arith.constant 0 : index
    %c0_9 = arith.constant 0 : index
    %8 = vector.load %arg2[%c1, %c0_7, %c0_8, %c0_9] : memref<4x9x9x8xbf16, #tpu.memory_space<vmem>>, vector<1x8x8x8xbf16>
    %9 = vector.shape_cast %8 : vector<1x8x8x8xbf16> to vector<8x8x8xbf16>
    %10 = vector.shape_cast %9 : vector<8x8x8xbf16> to vector<64x8xbf16>
    %c1_10 = arith.constant 1 : index
    %c0_11 = arith.constant 0 : index
    %c0_12 = arith.constant 0 : index
    %11 = vector.load %arg3[%c1_10, %c0_11, %c0_12] : memref<9x8x128xbf16, #tpu.memory_space<vmem>>, vector<1x8x128xbf16>
    %12 = vector.shape_cast %11 : vector<1x8x128xbf16> to vector<8x128xbf16>
    %cst_13 = arith.constant dense<0.000000e+00> : vector<64x128xf32>
    %13 = tpu.matmul %10, %12, %cst_13 {dimension_numbers = #tpu.dot_dimension_numbers<[1], [0], [0], [1], [0, 0, 1, 1], [], []>} : vector<64x8xbf16>, vector<8x128xbf16>, vector<64x128xf32> -> vector<64x128xf32>
    %14 = arith.addf %7, %13 : vector<64x128xf32>
    %c0_14 = arith.constant 0 : index
    %c0_15 = arith.constant 0 : index
    %c1_16 = arith.constant 1 : index
    %c0_17 = arith.constant 0 : index
    %15 = vector.load %arg2[%c0_14, %c0_15, %c1_16, %c0_17] : memref<4x9x9x8xbf16, #tpu.memory_space<vmem>>, vector<1x8x8x8xbf16>
    %16 = vector.shape_cast %15 : vector<1x8x8x8xbf16> to vector<8x8x8xbf16>
    %17 = vector.shape_cast %16 : vector<8x8x8xbf16> to vector<64x8xbf16>
    %c2 = arith.constant 2 : index
    %c0_18 = arith.constant 0 : index
    %c0_19 = arith.constant 0 : index
    %18 = vector.load %arg3[%c2, %c0_18, %c0_19] : memref<9x8x128xbf16, #tpu.memory_space<vmem>>, vector<1x8x128xbf16>
    %19 = vector.shape_cast %18 : vector<1x8x128xbf16> to vector<8x128xbf16>
    %cst_20 = arith.constant dense<0.000000e+00> : vector<64x128xf32>
    %20 = tpu.matmul %17, %19, %cst_20 {dimension_numbers = #tpu.dot_dimension_numbers<[1], [0], [0], [1], [0, 0, 1, 1], [], []>} : vector<64x8xbf16>, vector<8x128xbf16>, vector<64x128xf32> -> vector<64x128xf32>
    %21 = arith.addf %14, %20 : vector<64x128xf32>
    %c2_21 = arith.constant 2 : index
    %c0_22 = arith.constant 0 : index
    %c0_23 = arith.constant 0 : index
    %c0_24 = arith.constant 0 : index
    %22 = vector.load %arg2[%c2_21, %c0_22, %c0_23, %c0_24] : memref<4x9x9x8xbf16, #tpu.memory_space<vmem>>, vector<1x8x8x8xbf16>
    %23 = vector.shape_cast %22 : vector<1x8x8x8xbf16> to vector<8x8x8xbf16>
    %24 = vector.shape_cast %23 : vector<8x8x8xbf16> to vector<64x8xbf16>
    %c3 = arith.constant 3 : index
    %c0_25 = arith.constant 0 : index
    %c0_26 = arith.constant 0 : index
    %25 = vector.load %arg3[%c3, %c0_25, %c0_26] : memref<9x8x128xbf16, #tpu.memory_space<vmem>>, vector<1x8x128xbf16>
    %26 = vector.shape_cast %25 : vector<1x8x128xbf16> to vector<8x128xbf16>
    %cst_27 = arith.constant dense<0.000000e+00> : vector<64x128xf32>
    %27 = tpu.matmul %24, %26, %cst_27 {dimension_numbers = #tpu.dot_dimension_numbers<[1], [0], [0], [1], [0, 0, 1, 1], [], []>} : vector<64x8xbf16>, vector<8x128xbf16>, vector<64x128xf32> -> vector<64x128xf32>
    %28 = arith.addf %21, %27 : vector<64x128xf32>
    %c3_28 = arith.constant 3 : index
    %c0_29 = arith.constant 0 : index
    %c0_30 = arith.constant 0 : index
    %c0_31 = arith.constant 0 : index
    %29 = vector.load %arg2[%c3_28, %c0_29, %c0_30, %c0_31] : memref<4x9x9x8xbf16, #tpu.memory_space<vmem>>, vector<1x8x8x8xbf16>
    %30 = vector.shape_cast %29 : vector<1x8x8x8xbf16> to vector<8x8x8xbf16>
    %31 = vector.shape_cast %30 : vector<8x8x8xbf16> to vector<64x8xbf16>
    %c4 = arith.constant 4 : index
    %c0_32 = arith.constant 0 : index
    %c0_33 = arith.constant 0 : index
    %32 = vector.load %arg3[%c4, %c0_32, %c0_33] : memref<9x8x128xbf16, #tpu.memory_space<vmem>>, vector<1x8x128xbf16>
    %33 = vector.shape_cast %32 : vector<1x8x128xbf16> to vector<8x128xbf16>
    %cst_34 = arith.constant dense<0.000000e+00> : vector<64x128xf32>
    %34 = tpu.matmul %31, %33, %cst_34 {dimension_numbers = #tpu.dot_dimension_numbers<[1], [0], [0], [1], [0, 0, 1, 1], [], []>} : vector<64x8xbf16>, vector<8x128xbf16>, vector<64x128xf32> -> vector<64x128xf32>
    %35 = arith.addf %28, %34 : vector<64x128xf32>
    %c2_35 = arith.constant 2 : index
    %c0_36 = arith.constant 0 : index
    %c1_37 = arith.constant 1 : index
    %c0_38 = arith.constant 0 : index
    %36 = vector.load %arg2[%c2_35, %c0_36, %c1_37, %c0_38] : memref<4x9x9x8xbf16, #tpu.memory_space<vmem>>, vector<1x8x8x8xbf16>
    %37 = vector.shape_cast %36 : vector<1x8x8x8xbf16> to vector<8x8x8xbf16>
    %38 = vector.shape_cast %37 : vector<8x8x8xbf16> to vector<64x8xbf16>
    %c5 = arith.constant 5 : index
    %c0_39 = arith.constant 0 : index
    %c0_40 = arith.constant 0 : index
    %39 = vector.load %arg3[%c5, %c0_39, %c0_40] : memref<9x8x128xbf16, #tpu.memory_space<vmem>>, vector<1x8x128xbf16>
    %40 = vector.shape_cast %39 : vector<1x8x128xbf16> to vector<8x128xbf16>
    %cst_41 = arith.constant dense<0.000000e+00> : vector<64x128xf32>
    %41 = tpu.matmul %38, %40, %cst_41 {dimension_numbers = #tpu.dot_dimension_numbers<[1], [0], [0], [1], [0, 0, 1, 1], [], []>} : vector<64x8xbf16>, vector<8x128xbf16>, vector<64x128xf32> -> vector<64x128xf32>
    %42 = arith.addf %35, %41 : vector<64x128xf32>
    %c0_42 = arith.constant 0 : index
    %c1_43 = arith.constant 1 : index
    %c0_44 = arith.constant 0 : index
    %c0_45 = arith.constant 0 : index
    %43 = vector.load %arg2[%c0_42, %c1_43, %c0_44, %c0_45] : memref<4x9x9x8xbf16, #tpu.memory_space<vmem>>, vector<1x8x8x8xbf16>
    %44 = vector.shape_cast %43 : vector<1x8x8x8xbf16> to vector<8x8x8xbf16>
    %45 = vector.shape_cast %44 : vector<8x8x8xbf16> to vector<64x8xbf16>
    %c6 = arith.constant 6 : index
    %c0_46 = arith.constant 0 : index
    %c0_47 = arith.constant 0 : index
    %46 = vector.load %arg3[%c6, %c0_46, %c0_47] : memref<9x8x128xbf16, #tpu.memory_space<vmem>>, vector<1x8x128xbf16>
    %47 = vector.shape_cast %46 : vector<1x8x128xbf16> to vector<8x128xbf16>
    %cst_48 = arith.constant dense<0.000000e+00> : vector<64x128xf32>
    %48 = tpu.matmul %45, %47, %cst_48 {dimension_numbers = #tpu.dot_dimension_numbers<[1], [0], [0], [1], [0, 0, 1, 1], [], []>} : vector<64x8xbf16>, vector<8x128xbf16>, vector<64x128xf32> -> vector<64x128xf32>
    %49 = arith.addf %42, %48 : vector<64x128xf32>
    %c1_49 = arith.constant 1 : index
    %c1_50 = arith.constant 1 : index
    %c0_51 = arith.constant 0 : index
    %c0_52 = arith.constant 0 : index
    %50 = vector.load %arg2[%c1_49, %c1_50, %c0_51, %c0_52] : memref<4x9x9x8xbf16, #tpu.memory_space<vmem>>, vector<1x8x8x8xbf16>
    %51 = vector.shape_cast %50 : vector<1x8x8x8xbf16> to vector<8x8x8xbf16>
    %52 = vector.shape_cast %51 : vector<8x8x8xbf16> to vector<64x8xbf16>
    %c7 = arith.constant 7 : index
    %c0_53 = arith.constant 0 : index
    %c0_54 = arith.constant 0 : index
    %53 = vector.load %arg3[%c7, %c0_53, %c0_54] : memref<9x8x128xbf16, #tpu.memory_space<vmem>>, vector<1x8x128xbf16>
    %54 = vector.shape_cast %53 : vector<1x8x128xbf16> to vector<8x128xbf16>
    %cst_55 = arith.constant dense<0.000000e+00> : vector<64x128xf32>
    %55 = tpu.matmul %52, %54, %cst_55 {dimension_numbers = #tpu.dot_dimension_numbers<[1], [0], [0], [1], [0, 0, 1, 1], [], []>} : vector<64x8xbf16>, vector<8x128xbf16>, vector<64x128xf32> -> vector<64x128xf32>
    %56 = arith.addf %49, %55 : vector<64x128xf32>
    %c0_56 = arith.constant 0 : index
    %c1_57 = arith.constant 1 : index
    %c1_58 = arith.constant 1 : index
    %c0_59 = arith.constant 0 : index
    %57 = vector.load %arg2[%c0_56, %c1_57, %c1_58, %c0_59] : memref<4x9x9x8xbf16, #tpu.memory_space<vmem>>, vector<1x8x8x8xbf16>
    %58 = vector.shape_cast %57 : vector<1x8x8x8xbf16> to vector<8x8x8xbf16>
    %59 = vector.shape_cast %58 : vector<8x8x8xbf16> to vector<64x8xbf16>
    %c8 = arith.constant 8 : index
    %c0_60 = arith.constant 0 : index
    %c0_61 = arith.constant 0 : index
    %60 = vector.load %arg3[%c8, %c0_60, %c0_61] : memref<9x8x128xbf16, #tpu.memory_space<vmem>>, vector<1x8x128xbf16>
    %61 = vector.shape_cast %60 : vector<1x8x128xbf16> to vector<8x128xbf16>
    %cst_62 = arith.constant dense<0.000000e+00> : vector<64x128xf32>
    %62 = tpu.matmul %59, %61, %cst_62 {dimension_numbers = #tpu.dot_dimension_numbers<[1], [0], [0], [1], [0, 0, 1, 1], [], []>} : vector<64x8xbf16>, vector<8x128xbf16>, vector<64x128xf32> -> vector<64x128xf32>
    %63 = arith.addf %56, %62 : vector<64x128xf32>
    %c0_63 = arith.constant 0 : index
    %c0_64 = arith.constant 0 : index
    %64 = vector.load %arg4[%c0_63, %c0_64] : memref<1x128xf32, #tpu.memory_space<vmem>>, vector<1x128xf32>
    %65 = vector.broadcast %64 : vector<1x128xf32> to vector<64x128xf32>
    %66 = arith.addf %63, %65 : vector<64x128xf32>
    %cst_65 = arith.constant 0.000000e+00 : f32
    %67 = vector.broadcast %cst_65 : f32 to vector<64x128xf32>
    %68 = arith.maximumf %66, %67 : vector<64x128xf32>
    %69 = vector.shape_cast %68 : vector<64x128xf32> to vector<1x8x8x128xf32>
    %70 = arith.truncf %69 : vector<1x8x8x128xf32> to vector<1x8x8x128xbf16>
    %c0_66 = arith.constant 0 : index
    %c0_67 = arith.constant 0 : index
    %c0_68 = arith.constant 0 : index
    %c0_69 = arith.constant 0 : index
    %71 = vector.load %arg5[%c0_66, %c0_67, %c0_68, %c0_69] : memref<1x8x8x128xbf16, #tpu.memory_space<vmem>>, vector<1x8x8x128xbf16>
    tpu.vector_store %arg5[%c0_66, %c0_67, %c0_68, %c0_69], %70 {strides = array<i32>} : memref<1x8x8x128xbf16, #tpu.memory_space<vmem>>, vector<1x8x8x128xbf16>,
    return
  }
  func.func @transform_0(%arg0: i32, %arg1: i32) -> (i32, i32, i32, i32) {
    %c0_i32 = arith.constant 0 : i32
    %c0_i32_0 = arith.constant 0 : i32
    %c0_i32_1 = arith.constant 0 : i32
    %c0_i32_2 = arith.constant 0 : i32
    return %arg0, %c0_i32, %c0_i32_0, %c0_i32_1 : i32, i32, i32, i32
  }
  func.func @transform_1(%arg0: i32, %arg1: i32) -> (i32, i32, i32) {
    %c0_i32 = arith.constant 0 : i32
    %c0_i32_0 = arith.constant 0 : i32
    %c0_i32_1 = arith.constant 0 : i32
    return %c0_i32, %c0_i32_0, %arg1 : i32, i32, i32
  }
  func.func @transform_2(%arg0: i32, %arg1: i32) -> (i32, i32) {
    %c0_i32 = arith.constant 0 : i32
    %c0_i32_0 = arith.constant 0 : i32
    return %c0_i32, %arg1 : i32, i32
  }
  func.func @transform_3(%arg0: i32, %arg1: i32) -> (i32, i32, i32, i32) {
    %c0_i32 = arith.constant 0 : i32
    %c0_i32_0 = arith.constant 0 : i32
    %c0_i32_1 = arith.constant 0 : i32
    return %arg0, %c0_i32, %c0_i32_0, %arg1 : i32, i32, i32, i32
  }
}

module attributes {stable_mosaic.version = 11 : i64} {
  func.func @_conv_kernel(%arg0: i32, %arg1: i32, %arg2: memref<1x10x10x128xbf16, #tpu.memory_space<vmem>>, %arg3: memref<9x128x128xbf16, #tpu.memory_space<vmem>>, %arg4: memref<1x128xf32, #tpu.memory_space<vmem>>, %arg5: memref<1x8x8x128xbf16, #tpu.memory_space<vmem>>) attributes {dimension_semantics = [#tpu.dimension_semantics<parallel>, #tpu.dimension_semantics<parallel>], iteration_bounds = array<i64: 2, 1>, scalar_prefetch = 0 : i64, scratch_operands = 0 : i64, tpu.core_type = #tpu.core_type<tc>, window_params = [{transform_indices = @transform_0, window_bounds = array<i64: 1, 10, 10, 128>}, {transform_indices = @transform_1, window_bounds = array<i64: 9, 128, 128>}, {transform_indices = @transform_2, window_bounds = array<i64: 1, 128>}, {transform_indices = @transform_3, window_bounds = array<i64: 1, 8, 8, 128>}]} {
    %cst = arith.constant 0.000000e+00 : f32
    %0 = vector.broadcast %cst : f32 to vector<64x128xf32>
    %c0 = arith.constant 0 : index
    %c0_0 = arith.constant 0 : index
    %c0_1 = arith.constant 0 : index
    %c0_2 = arith.constant 0 : index
    %1 = vector.load %arg2[%c0, %c0_0, %c0_1, %c0_2] : memref<1x10x10x128xbf16, #tpu.memory_space<vmem>>, vector<1x8x8x128xbf16>
    %2 = vector.shape_cast %1 : vector<1x8x8x128xbf16> to vector<8x8x128xbf16>
    %3 = vector.shape_cast %2 : vector<8x8x128xbf16> to vector<64x128xbf16>
    %c0_3 = arith.constant 0 : index
    %c0_4 = arith.constant 0 : index
    %c0_5 = arith.constant 0 : index
    %4 = vector.load %arg3[%c0_3, %c0_4, %c0_5] : memref<9x128x128xbf16, #tpu.memory_space<vmem>>, vector<1x128x128xbf16>
    %5 = vector.shape_cast %4 : vector<1x128x128xbf16> to vector<128x128xbf16>
    %cst_6 = arith.constant dense<0.000000e+00> : vector<64x128xf32>
    %6 = tpu.matmul %3, %5, %cst_6 {dimension_numbers = #tpu.dot_dimension_numbers<[1], [0], [0], [1], [0, 0, 1, 1], [], []>} : vector<64x128xbf16>, vector<128x128xbf16>, vector<64x128xf32> -> vector<64x128xf32>
    %7 = arith.addf %0, %6 : vector<64x128xf32>
    %c0_7 = arith.constant 0 : index
    %c0_8 = arith.constant 0 : index
    %c1 = arith.constant 1 : index
    %c0_9 = arith.constant 0 : index
    %8 = vector.load %arg2[%c0_7, %c0_8, %c1, %c0_9] : memref<1x10x10x128xbf16, #tpu.memory_space<vmem>>, vector<1x8x8x128xbf16>
    %9 = vector.shape_cast %8 : vector<1x8x8x128xbf16> to vector<8x8x128xbf16>
    %10 = vector.shape_cast %9 : vector<8x8x128xbf16> to vector<64x128xbf16>
    %c1_10 = arith.constant 1 : index
    %c0_11 = arith.constant 0 : index
    %c0_12 = arith.constant 0 : index
    %11 = vector.load %arg3[%c1_10, %c0_11, %c0_12] : memref<9x128x128xbf16, #tpu.memory_space<vmem>>, vector<1x128x128xbf16>
    %12 = vector.shape_cast %11 : vector<1x128x128xbf16> to vector<128x128xbf16>
    %cst_13 = arith.constant dense<0.000000e+00> : vector<64x128xf32>
    %13 = tpu.matmul %10, %12, %cst_13 {dimension_numbers = #tpu.dot_dimension_numbers<[1], [0], [0], [1], [0, 0, 1, 1], [], []>} : vector<64x128xbf16>, vector<128x128xbf16>, vector<64x128xf32> -> vector<64x128xf32>
    %14 = arith.addf %7, %13 : vector<64x128xf32>
    %c0_14 = arith.constant 0 : index
    %c0_15 = arith.constant 0 : index
    %c2 = arith.constant 2 : index
    %c0_16 = arith.constant 0 : index
    %15 = vector.load %arg2[%c0_14, %c0_15, %c2, %c0_16] : memref<1x10x10x128xbf16, #tpu.memory_space<vmem>>, vector<1x8x8x128xbf16>
    %16 = vector.shape_cast %15 : vector<1x8x8x128xbf16> to vector<8x8x128xbf16>
    %17 = vector.shape_cast %16 : vector<8x8x128xbf16> to vector<64x128xbf16>
    %c2_17 = arith.constant 2 : index
    %c0_18 = arith.constant 0 : index
    %c0_19 = arith.constant 0 : index
    %18 = vector.load %arg3[%c2_17, %c0_18, %c0_19] : memref<9x128x128xbf16, #tpu.memory_space<vmem>>, vector<1x128x128xbf16>
    %19 = vector.shape_cast %18 : vector<1x128x128xbf16> to vector<128x128xbf16>
    %cst_20 = arith.constant dense<0.000000e+00> : vector<64x128xf32>
    %20 = tpu.matmul %17, %19, %cst_20 {dimension_numbers = #tpu.dot_dimension_numbers<[1], [0], [0], [1], [0, 0, 1, 1], [], []>} : vector<64x128xbf16>, vector<128x128xbf16>, vector<64x128xf32> -> vector<64x128xf32>
    %21 = arith.addf %14, %20 : vector<64x128xf32>
    %c0_21 = arith.constant 0 : index
    %c1_22 = arith.constant 1 : index
    %c0_23 = arith.constant 0 : index
    %c0_24 = arith.constant 0 : index
    %22 = vector.load %arg2[%c0_21, %c1_22, %c0_23, %c0_24] : memref<1x10x10x128xbf16, #tpu.memory_space<vmem>>, vector<1x8x8x128xbf16>
    %23 = vector.shape_cast %22 : vector<1x8x8x128xbf16> to vector<8x8x128xbf16>
    %24 = vector.shape_cast %23 : vector<8x8x128xbf16> to vector<64x128xbf16>
    %c3 = arith.constant 3 : index
    %c0_25 = arith.constant 0 : index
    %c0_26 = arith.constant 0 : index
    %25 = vector.load %arg3[%c3, %c0_25, %c0_26] : memref<9x128x128xbf16, #tpu.memory_space<vmem>>, vector<1x128x128xbf16>
    %26 = vector.shape_cast %25 : vector<1x128x128xbf16> to vector<128x128xbf16>
    %cst_27 = arith.constant dense<0.000000e+00> : vector<64x128xf32>
    %27 = tpu.matmul %24, %26, %cst_27 {dimension_numbers = #tpu.dot_dimension_numbers<[1], [0], [0], [1], [0, 0, 1, 1], [], []>} : vector<64x128xbf16>, vector<128x128xbf16>, vector<64x128xf32> -> vector<64x128xf32>
    %28 = arith.addf %21, %27 : vector<64x128xf32>
    %c0_28 = arith.constant 0 : index
    %c1_29 = arith.constant 1 : index
    %c1_30 = arith.constant 1 : index
    %c0_31 = arith.constant 0 : index
    %29 = vector.load %arg2[%c0_28, %c1_29, %c1_30, %c0_31] : memref<1x10x10x128xbf16, #tpu.memory_space<vmem>>, vector<1x8x8x128xbf16>
    %30 = vector.shape_cast %29 : vector<1x8x8x128xbf16> to vector<8x8x128xbf16>
    %31 = vector.shape_cast %30 : vector<8x8x128xbf16> to vector<64x128xbf16>
    %c4 = arith.constant 4 : index
    %c0_32 = arith.constant 0 : index
    %c0_33 = arith.constant 0 : index
    %32 = vector.load %arg3[%c4, %c0_32, %c0_33] : memref<9x128x128xbf16, #tpu.memory_space<vmem>>, vector<1x128x128xbf16>
    %33 = vector.shape_cast %32 : vector<1x128x128xbf16> to vector<128x128xbf16>
    %cst_34 = arith.constant dense<0.000000e+00> : vector<64x128xf32>
    %34 = tpu.matmul %31, %33, %cst_34 {dimension_numbers = #tpu.dot_dimension_numbers<[1], [0], [0], [1], [0, 0, 1, 1], [], []>} : vector<64x128xbf16>, vector<128x128xbf16>, vector<64x128xf32> -> vector<64x128xf32>
    %35 = arith.addf %28, %34 : vector<64x128xf32>
    %c0_35 = arith.constant 0 : index
    %c1_36 = arith.constant 1 : index
    %c2_37 = arith.constant 2 : index
    %c0_38 = arith.constant 0 : index
    %36 = vector.load %arg2[%c0_35, %c1_36, %c2_37, %c0_38] : memref<1x10x10x128xbf16, #tpu.memory_space<vmem>>, vector<1x8x8x128xbf16>
    %37 = vector.shape_cast %36 : vector<1x8x8x128xbf16> to vector<8x8x128xbf16>
    %38 = vector.shape_cast %37 : vector<8x8x128xbf16> to vector<64x128xbf16>
    %c5 = arith.constant 5 : index
    %c0_39 = arith.constant 0 : index
    %c0_40 = arith.constant 0 : index
    %39 = vector.load %arg3[%c5, %c0_39, %c0_40] : memref<9x128x128xbf16, #tpu.memory_space<vmem>>, vector<1x128x128xbf16>
    %40 = vector.shape_cast %39 : vector<1x128x128xbf16> to vector<128x128xbf16>
    %cst_41 = arith.constant dense<0.000000e+00> : vector<64x128xf32>
    %41 = tpu.matmul %38, %40, %cst_41 {dimension_numbers = #tpu.dot_dimension_numbers<[1], [0], [0], [1], [0, 0, 1, 1], [], []>} : vector<64x128xbf16>, vector<128x128xbf16>, vector<64x128xf32> -> vector<64x128xf32>
    %42 = arith.addf %35, %41 : vector<64x128xf32>
    %c0_42 = arith.constant 0 : index
    %c2_43 = arith.constant 2 : index
    %c0_44 = arith.constant 0 : index
    %c0_45 = arith.constant 0 : index
    %43 = vector.load %arg2[%c0_42, %c2_43, %c0_44, %c0_45] : memref<1x10x10x128xbf16, #tpu.memory_space<vmem>>, vector<1x8x8x128xbf16>
    %44 = vector.shape_cast %43 : vector<1x8x8x128xbf16> to vector<8x8x128xbf16>
    %45 = vector.shape_cast %44 : vector<8x8x128xbf16> to vector<64x128xbf16>
    %c6 = arith.constant 6 : index
    %c0_46 = arith.constant 0 : index
    %c0_47 = arith.constant 0 : index
    %46 = vector.load %arg3[%c6, %c0_46, %c0_47] : memref<9x128x128xbf16, #tpu.memory_space<vmem>>, vector<1x128x128xbf16>
    %47 = vector.shape_cast %46 : vector<1x128x128xbf16> to vector<128x128xbf16>
    %cst_48 = arith.constant dense<0.000000e+00> : vector<64x128xf32>
    %48 = tpu.matmul %45, %47, %cst_48 {dimension_numbers = #tpu.dot_dimension_numbers<[1], [0], [0], [1], [0, 0, 1, 1], [], []>} : vector<64x128xbf16>, vector<128x128xbf16>, vector<64x128xf32> -> vector<64x128xf32>
    %49 = arith.addf %42, %48 : vector<64x128xf32>
    %c0_49 = arith.constant 0 : index
    %c2_50 = arith.constant 2 : index
    %c1_51 = arith.constant 1 : index
    %c0_52 = arith.constant 0 : index
    %50 = vector.load %arg2[%c0_49, %c2_50, %c1_51, %c0_52] : memref<1x10x10x128xbf16, #tpu.memory_space<vmem>>, vector<1x8x8x128xbf16>
    %51 = vector.shape_cast %50 : vector<1x8x8x128xbf16> to vector<8x8x128xbf16>
    %52 = vector.shape_cast %51 : vector<8x8x128xbf16> to vector<64x128xbf16>
    %c7 = arith.constant 7 : index
    %c0_53 = arith.constant 0 : index
    %c0_54 = arith.constant 0 : index
    %53 = vector.load %arg3[%c7, %c0_53, %c0_54] : memref<9x128x128xbf16, #tpu.memory_space<vmem>>, vector<1x128x128xbf16>
    %54 = vector.shape_cast %53 : vector<1x128x128xbf16> to vector<128x128xbf16>
    %cst_55 = arith.constant dense<0.000000e+00> : vector<64x128xf32>
    %55 = tpu.matmul %52, %54, %cst_55 {dimension_numbers = #tpu.dot_dimension_numbers<[1], [0], [0], [1], [0, 0, 1, 1], [], []>} : vector<64x128xbf16>, vector<128x128xbf16>, vector<64x128xf32> -> vector<64x128xf32>
    %56 = arith.addf %49, %55 : vector<64x128xf32>
    %c0_56 = arith.constant 0 : index
    %c2_57 = arith.constant 2 : index
    %c2_58 = arith.constant 2 : index
    %c0_59 = arith.constant 0 : index
    %57 = vector.load %arg2[%c0_56, %c2_57, %c2_58, %c0_59] : memref<1x10x10x128xbf16, #tpu.memory_space<vmem>>, vector<1x8x8x128xbf16>
    %58 = vector.shape_cast %57 : vector<1x8x8x128xbf16> to vector<8x8x128xbf16>
    %59 = vector.shape_cast %58 : vector<8x8x128xbf16> to vector<64x128xbf16>
    %c8 = arith.constant 8 : index
    %c0_60 = arith.constant 0 : index
    %c0_61 = arith.constant 0 : index
    %60 = vector.load %arg3[%c8, %c0_60, %c0_61] : memref<9x128x128xbf16, #tpu.memory_space<vmem>>, vector<1x128x128xbf16>
    %61 = vector.shape_cast %60 : vector<1x128x128xbf16> to vector<128x128xbf16>
    %cst_62 = arith.constant dense<0.000000e+00> : vector<64x128xf32>
    %62 = tpu.matmul %59, %61, %cst_62 {dimension_numbers = #tpu.dot_dimension_numbers<[1], [0], [0], [1], [0, 0, 1, 1], [], []>} : vector<64x128xbf16>, vector<128x128xbf16>, vector<64x128xf32> -> vector<64x128xf32>
    %63 = arith.addf %56, %62 : vector<64x128xf32>
    %c0_63 = arith.constant 0 : index
    %c0_64 = arith.constant 0 : index
    %64 = vector.load %arg4[%c0_63, %c0_64] : memref<1x128xf32, #tpu.memory_space<vmem>>, vector<1x128xf32>
    %65 = vector.broadcast %64 : vector<1x128xf32> to vector<64x128xf32>
    %66 = arith.addf %63, %65 : vector<64x128xf32>
    %cst_65 = arith.constant 0.000000e+00 : f32
    %67 = vector.broadcast %cst_65 : f32 to vector<64x128xf32>
    %68 = arith.maximumf %66, %67 : vector<64x128xf32>
    %69 = vector.shape_cast %68 : vector<64x128xf32> to vector<1x8x8x128xf32>
    %70 = arith.truncf %69 : vector<1x8x8x128xf32> to vector<1x8x8x128xbf16>
    %c0_66 = arith.constant 0 : index
    %c0_67 = arith.constant 0 : index
    %c0_68 = arith.constant 0 : index
    %c0_69 = arith.constant 0 : index
    %71 = vector.load %arg5[%c0_66, %c0_67, %c0_68, %c0_69] : memref<1x8x8x128xbf16, #tpu.memory_space<vmem>>, vector<1x8x8x128xbf16>
    tpu.vector_store %arg5[%c0_66, %c0_67, %c0_68, %c0_69], %70 {strides = array<i32>} : memref<1x8x8x128xbf16, #tpu.memory_space<vmem>>, vector<1x8x8x128xbf16>,
    return
  }
  func.func @transform_0(%arg0: i32, %arg1: i32) -> (i32, i32, i32, i32) {
    %c0_i32 = arith.constant 0 : i32
    %c0_i32_0 = arith.constant 0 : i32
    %c0_i32_1 = arith.constant 0 : i32
    %c0_i32_2 = arith.constant 0 : i32
    return %arg0, %c0_i32, %c0_i32_0, %c0_i32_1 : i32, i32, i32, i32
  }
  func.func @transform_1(%arg0: i32, %arg1: i32) -> (i32, i32, i32) {
    %c0_i32 = arith.constant 0 : i32
    %c0_i32_0 = arith.constant 0 : i32
    %c0_i32_1 = arith.constant 0 : i32
    return %c0_i32, %c0_i32_0, %arg1 : i32, i32, i32
  }
  func.func @transform_2(%arg0: i32, %arg1: i32) -> (i32, i32) {
    %c0_i32 = arith.constant 0 : i32
    %c0_i32_0 = arith.constant 0 : i32
    return %c0_i32, %arg1 : i32, i32
  }
  func.func @transform_3(%arg0: i32, %arg1: i32) -> (i32, i32, i32, i32) {
    %c0_i32 = arith.constant 0 : i32
    %c0_i32_0 = arith.constant 0 : i32
    %c0_i32_1 = arith.constant 0 : i32
    return %arg0, %c0_i32, %c0_i32_0, %arg1 : i32, i32, i32, i32
  }
}

module attributes {stable_mosaic.version = 11 : i64} {
  func.func @_conv_kernel(%arg0: i32, %arg1: i32, %arg2: memref<1x8x8x8xbf16, #tpu.memory_space<vmem>>, %arg3: memref<1x8x128xbf16, #tpu.memory_space<vmem>>, %arg4: memref<1x128xf32, #tpu.memory_space<vmem>>, %arg5: memref<1x8x8x128xbf16, #tpu.memory_space<vmem>>, %arg6: memref<1x8x8x128xbf16, #tpu.memory_space<vmem>>) attributes {dimension_semantics = [#tpu.dimension_semantics<parallel>, #tpu.dimension_semantics<parallel>], iteration_bounds = array<i64: 2, 1>, scalar_prefetch = 0 : i64, scratch_operands = 0 : i64, tpu.core_type = #tpu.core_type<tc>, window_params = [{transform_indices = @transform_0, window_bounds = array<i64: 1, 8, 8, 8>}, {transform_indices = @transform_1, window_bounds = array<i64: 1, 8, 128>}, {transform_indices = @transform_2, window_bounds = array<i64: 1, 128>}, {transform_indices = @transform_3, window_bounds = array<i64: 1, 8, 8, 128>}, {transform_indices = @transform_4, window_bounds = array<i64: 1, 8, 8, 128>}]} {
    %cst = arith.constant 0.000000e+00 : f32
    %0 = vector.broadcast %cst : f32 to vector<64x128xf32>
    %c0 = arith.constant 0 : index
    %c0_0 = arith.constant 0 : index
    %c0_1 = arith.constant 0 : index
    %c0_2 = arith.constant 0 : index
    %1 = vector.load %arg2[%c0, %c0_0, %c0_1, %c0_2] : memref<1x8x8x8xbf16, #tpu.memory_space<vmem>>, vector<1x8x8x8xbf16>
    %2 = vector.shape_cast %1 : vector<1x8x8x8xbf16> to vector<8x8x8xbf16>
    %3 = vector.shape_cast %2 : vector<8x8x8xbf16> to vector<64x8xbf16>
    %c0_3 = arith.constant 0 : index
    %c0_4 = arith.constant 0 : index
    %c0_5 = arith.constant 0 : index
    %4 = vector.load %arg3[%c0_3, %c0_4, %c0_5] : memref<1x8x128xbf16, #tpu.memory_space<vmem>>, vector<1x8x128xbf16>
    %5 = vector.shape_cast %4 : vector<1x8x128xbf16> to vector<8x128xbf16>
    %cst_6 = arith.constant dense<0.000000e+00> : vector<64x128xf32>
    %6 = tpu.matmul %3, %5, %cst_6 {dimension_numbers = #tpu.dot_dimension_numbers<[1], [0], [0], [1], [0, 0, 1, 1], [], []>} : vector<64x8xbf16>, vector<8x128xbf16>, vector<64x128xf32> -> vector<64x128xf32>
    %7 = arith.addf %0, %6 : vector<64x128xf32>
    %c0_7 = arith.constant 0 : index
    %c0_8 = arith.constant 0 : index
    %8 = vector.load %arg4[%c0_7, %c0_8] : memref<1x128xf32, #tpu.memory_space<vmem>>, vector<1x128xf32>
    %9 = vector.broadcast %8 : vector<1x128xf32> to vector<64x128xf32>
    %10 = arith.addf %7, %9 : vector<64x128xf32>
    %cst_9 = arith.constant 0.000000e+00 : f32
    %11 = vector.broadcast %cst_9 : f32 to vector<64x128xf32>
    %12 = arith.maximumf %10, %11 : vector<64x128xf32>
    %c0_10 = arith.constant 0 : index
    %c0_11 = arith.constant 0 : index
    %c0_12 = arith.constant 0 : index
    %c0_13 = arith.constant 0 : index
    %13 = vector.load %arg5[%c0_10, %c0_11, %c0_12, %c0_13] : memref<1x8x8x128xbf16, #tpu.memory_space<vmem>>, vector<1x8x8x128xbf16>
    %14 = vector.shape_cast %13 : vector<1x8x8x128xbf16> to vector<64x128xbf16>
    %15 = arith.extf %14 : vector<64x128xbf16> to vector<64x128xf32>
    %16 = arith.addf %12, %15 : vector<64x128xf32>
    %17 = vector.shape_cast %16 : vector<64x128xf32> to vector<1x8x8x128xf32>
    %18 = arith.truncf %17 : vector<1x8x8x128xf32> to vector<1x8x8x128xbf16>
    %c0_14 = arith.constant 0 : index
    %c0_15 = arith.constant 0 : index
    %c0_16 = arith.constant 0 : index
    %c0_17 = arith.constant 0 : index
    %19 = vector.load %arg6[%c0_14, %c0_15, %c0_16, %c0_17] : memref<1x8x8x128xbf16, #tpu.memory_space<vmem>>, vector<1x8x8x128xbf16>
    tpu.vector_store %arg6[%c0_14, %c0_15, %c0_16, %c0_17], %18 {strides = array<i32>} : memref<1x8x8x128xbf16, #tpu.memory_space<vmem>>, vector<1x8x8x128xbf16>,
    return
  }
  func.func @transform_0(%arg0: i32, %arg1: i32) -> (i32, i32, i32, i32) {
    %c0_i32 = arith.constant 0 : i32
    %c0_i32_0 = arith.constant 0 : i32
    %c0_i32_1 = arith.constant 0 : i32
    %c0_i32_2 = arith.constant 0 : i32
    return %arg0, %c0_i32, %c0_i32_0, %c0_i32_1 : i32, i32, i32, i32
  }
  func.func @transform_1(%arg0: i32, %arg1: i32) -> (i32, i32, i32) {
    %c0_i32 = arith.constant 0 : i32
    %c0_i32_0 = arith.constant 0 : i32
    %c0_i32_1 = arith.constant 0 : i32
    return %c0_i32, %c0_i32_0, %arg1 : i32, i32, i32
  }
  func.func @transform_2(%arg0: i32, %arg1: i32) -> (i32, i32) {
    %c0_i32 = arith.constant 0 : i32
    %c0_i32_0 = arith.constant 0 : i32
    return %c0_i32, %arg1 : i32, i32
  }
  func.func @transform_3(%arg0: i32, %arg1: i32) -> (i32, i32, i32, i32) {
    %c0_i32 = arith.constant 0 : i32
    %c0_i32_0 = arith.constant 0 : i32
    %c0_i32_1 = arith.constant 0 : i32
    return %arg0, %c0_i32, %c0_i32_0, %arg1 : i32, i32, i32, i32
  }
  func.func @transform_4(%arg0: i32, %arg1: i32) -> (i32, i32, i32, i32) {
    %c0_i32 = arith.constant 0 : i32
    %c0_i32_0 = arith.constant 0 : i32
    %c0_i32_1 = arith.constant 0 : i32
    return %arg0, %c0_i32, %c0_i32_0, %arg1 : i32, i32, i32, i32
  }
}

module attributes {stable_mosaic.version = 11 : i64} {
  func.func @_conv_kernel(%arg0: i32, %arg1: i32, %arg2: memref<1x8x8x128xbf16, #tpu.memory_space<vmem>>, %arg3: memref<1x128x128xbf16, #tpu.memory_space<vmem>>, %arg4: memref<1x128xf32, #tpu.memory_space<vmem>>, %arg5: memref<1x8x8x128xbf16, #tpu.memory_space<vmem>>) attributes {dimension_semantics = [#tpu.dimension_semantics<parallel>, #tpu.dimension_semantics<parallel>], iteration_bounds = array<i64: 2, 1>, scalar_prefetch = 0 : i64, scratch_operands = 0 : i64, tpu.core_type = #tpu.core_type<tc>, window_params = [{transform_indices = @transform_0, window_bounds = array<i64: 1, 8, 8, 128>}, {transform_indices = @transform_1, window_bounds = array<i64: 1, 128, 128>}, {transform_indices = @transform_2, window_bounds = array<i64: 1, 128>}, {transform_indices = @transform_3, window_bounds = array<i64: 1, 8, 8, 128>}]} {
    %cst = arith.constant 0.000000e+00 : f32
    %0 = vector.broadcast %cst : f32 to vector<64x128xf32>
    %c0 = arith.constant 0 : index
    %c0_0 = arith.constant 0 : index
    %c0_1 = arith.constant 0 : index
    %c0_2 = arith.constant 0 : index
    %1 = vector.load %arg2[%c0, %c0_0, %c0_1, %c0_2] : memref<1x8x8x128xbf16, #tpu.memory_space<vmem>>, vector<1x8x8x128xbf16>
    %2 = vector.shape_cast %1 : vector<1x8x8x128xbf16> to vector<8x8x128xbf16>
    %3 = vector.shape_cast %2 : vector<8x8x128xbf16> to vector<64x128xbf16>
    %c0_3 = arith.constant 0 : index
    %c0_4 = arith.constant 0 : index
    %c0_5 = arith.constant 0 : index
    %4 = vector.load %arg3[%c0_3, %c0_4, %c0_5] : memref<1x128x128xbf16, #tpu.memory_space<vmem>>, vector<1x128x128xbf16>
    %5 = vector.shape_cast %4 : vector<1x128x128xbf16> to vector<128x128xbf16>
    %cst_6 = arith.constant dense<0.000000e+00> : vector<64x128xf32>
    %6 = tpu.matmul %3, %5, %cst_6 {dimension_numbers = #tpu.dot_dimension_numbers<[1], [0], [0], [1], [0, 0, 1, 1], [], []>} : vector<64x128xbf16>, vector<128x128xbf16>, vector<64x128xf32> -> vector<64x128xf32>
    %7 = arith.addf %0, %6 : vector<64x128xf32>
    %c0_7 = arith.constant 0 : index
    %c0_8 = arith.constant 0 : index
    %8 = vector.load %arg4[%c0_7, %c0_8] : memref<1x128xf32, #tpu.memory_space<vmem>>, vector<1x128xf32>
    %9 = vector.broadcast %8 : vector<1x128xf32> to vector<64x128xf32>
    %10 = arith.addf %7, %9 : vector<64x128xf32>
    %cst_9 = arith.constant 0.000000e+00 : f32
    %11 = vector.broadcast %cst_9 : f32 to vector<64x128xf32>
    %12 = arith.maximumf %10, %11 : vector<64x128xf32>
    %13 = vector.shape_cast %12 : vector<64x128xf32> to vector<1x8x8x128xf32>
    %14 = arith.truncf %13 : vector<1x8x8x128xf32> to vector<1x8x8x128xbf16>
    %c0_10 = arith.constant 0 : index
    %c0_11 = arith.constant 0 : index
    %c0_12 = arith.constant 0 : index
    %c0_13 = arith.constant 0 : index
    %15 = vector.load %arg5[%c0_10, %c0_11, %c0_12, %c0_13] : memref<1x8x8x128xbf16, #tpu.memory_space<vmem>>, vector<1x8x8x128xbf16>
    tpu.vector_store %arg5[%c0_10, %c0_11, %c0_12, %c0_13], %14 {strides = array<i32>} : memref<1x8x8x128xbf16, #tpu.memory_space<vmem>>, vector<1x8x8x128xbf16>,
    return
  }
  func.func @transform_0(%arg0: i32, %arg1: i32) -> (i32, i32, i32, i32) {
    %c0_i32 = arith.constant 0 : i32
    %c0_i32_0 = arith.constant 0 : i32
    %c0_i32_1 = arith.constant 0 : i32
    %c0_i32_2 = arith.constant 0 : i32
    return %arg0, %c0_i32, %c0_i32_0, %c0_i32_1 : i32, i32, i32, i32
  }
  func.func @transform_1(%arg0: i32, %arg1: i32) -> (i32, i32, i32) {
    %c0_i32 = arith.constant 0 : i32
    %c0_i32_0 = arith.constant 0 : i32
    %c0_i32_1 = arith.constant 0 : i32
    return %c0_i32, %c0_i32_0, %arg1 : i32, i32, i32
  }
  func.func @transform_2(%arg0: i32, %arg1: i32) -> (i32, i32) {
    %c0_i32 = arith.constant 0 : i32
    %c0_i32_0 = arith.constant 0 : i32
    return %c0_i32, %arg1 : i32, i32
  }
  func.func @transform_3(%arg0: i32, %arg1: i32) -> (i32, i32, i32, i32) {
    %c0_i32 = arith.constant 0 : i32
    %c0_i32_0 = arith.constant 0 : i32
    %c0_i32_1 = arith.constant 0 : i32
    return %arg0, %c0_i32, %c0_i32_0, %arg1 : i32, i32, i32, i32
  }
}

module attributes {stable_mosaic.version = 11 : i64} {
  func.func @_conv_kernel(%arg0: i32, %arg1: i32, %arg2: memref<1x8x8x128xbf16, #tpu.memory_space<vmem>>, %arg3: memref<1x128x128xbf16, #tpu.memory_space<vmem>>, %arg4: memref<1x128xf32, #tpu.memory_space<vmem>>, %arg5: memref<1x8x8x128xf32, #tpu.memory_space<vmem>>) attributes {dimension_semantics = [#tpu.dimension_semantics<parallel>, #tpu.dimension_semantics<parallel>], iteration_bounds = array<i64: 2, 1>, scalar_prefetch = 0 : i64, scratch_operands = 0 : i64, tpu.core_type = #tpu.core_type<tc>, window_params = [{transform_indices = @transform_0, window_bounds = array<i64: 1, 8, 8, 128>}, {transform_indices = @transform_1, window_bounds = array<i64: 1, 128, 128>}, {transform_indices = @transform_2, window_bounds = array<i64: 1, 128>}, {transform_indices = @transform_3, window_bounds = array<i64: 1, 8, 8, 128>}]} {
    %cst = arith.constant 0.000000e+00 : f32
    %0 = vector.broadcast %cst : f32 to vector<64x128xf32>
    %c0 = arith.constant 0 : index
    %c0_0 = arith.constant 0 : index
    %c0_1 = arith.constant 0 : index
    %c0_2 = arith.constant 0 : index
    %1 = vector.load %arg2[%c0, %c0_0, %c0_1, %c0_2] : memref<1x8x8x128xbf16, #tpu.memory_space<vmem>>, vector<1x8x8x128xbf16>
    %2 = vector.shape_cast %1 : vector<1x8x8x128xbf16> to vector<8x8x128xbf16>
    %3 = vector.shape_cast %2 : vector<8x8x128xbf16> to vector<64x128xbf16>
    %c0_3 = arith.constant 0 : index
    %c0_4 = arith.constant 0 : index
    %c0_5 = arith.constant 0 : index
    %4 = vector.load %arg3[%c0_3, %c0_4, %c0_5] : memref<1x128x128xbf16, #tpu.memory_space<vmem>>, vector<1x128x128xbf16>
    %5 = vector.shape_cast %4 : vector<1x128x128xbf16> to vector<128x128xbf16>
    %cst_6 = arith.constant dense<0.000000e+00> : vector<64x128xf32>
    %6 = tpu.matmul %3, %5, %cst_6 {dimension_numbers = #tpu.dot_dimension_numbers<[1], [0], [0], [1], [0, 0, 1, 1], [], []>} : vector<64x128xbf16>, vector<128x128xbf16>, vector<64x128xf32> -> vector<64x128xf32>
    %7 = arith.addf %0, %6 : vector<64x128xf32>
    %c0_7 = arith.constant 0 : index
    %c0_8 = arith.constant 0 : index
    %8 = vector.load %arg4[%c0_7, %c0_8] : memref<1x128xf32, #tpu.memory_space<vmem>>, vector<1x128xf32>
    %9 = vector.broadcast %8 : vector<1x128xf32> to vector<64x128xf32>
    %10 = arith.addf %7, %9 : vector<64x128xf32>
    %11 = vector.shape_cast %10 : vector<64x128xf32> to vector<1x8x8x128xf32>
    %c0_9 = arith.constant 0 : index
    %c0_10 = arith.constant 0 : index
    %c0_11 = arith.constant 0 : index
    %c0_12 = arith.constant 0 : index
    %12 = vector.load %arg5[%c0_9, %c0_10, %c0_11, %c0_12] : memref<1x8x8x128xf32, #tpu.memory_space<vmem>>, vector<1x8x8x128xf32>
    tpu.vector_store %arg5[%c0_9, %c0_10, %c0_11, %c0_12], %11 {strides = array<i32>} : memref<1x8x8x128xf32, #tpu.memory_space<vmem>>, vector<1x8x8x128xf32>,
    return
  }
  func.func @transform_0(%arg0: i32, %arg1: i32) -> (i32, i32, i32, i32) {
    %c0_i32 = arith.constant 0 : i32
    %c0_i32_0 = arith.constant 0 : i32
    %c0_i32_1 = arith.constant 0 : i32
    %c0_i32_2 = arith.constant 0 : i32
    return %arg0, %c0_i32, %c0_i32_0, %c0_i32_1 : i32, i32, i32, i32
  }
  func.func @transform_1(%arg0: i32, %arg1: i32) -> (i32, i32, i32) {
    %c0_i32 = arith.constant 0 : i32
    %c0_i32_0 = arith.constant 0 : i32
    %c0_i32_1 = arith.constant 0 : i32
    return %c0_i32, %c0_i32_0, %arg1 : i32, i32, i32
  }
  func.func @transform_2(%arg0: i32, %arg1: i32) -> (i32, i32) {
    %c0_i32 = arith.constant 0 : i32
    %c0_i32_0 = arith.constant 0 : i32
    return %c0_i32, %arg1 : i32, i32
  }
  func.func @transform_3(%arg0: i32, %arg1: i32) -> (i32, i32, i32, i32) {
    %c0_i32 = arith.constant 0 : i32
    %c0_i32_0 = arith.constant 0 : i32
    %c0_i32_1 = arith.constant 0 : i32
    return %arg0, %c0_i32, %c0_i32_0, %arg1 : i32, i32, i32, i32
  }
}

</mosaic_0001>

<bundles_post_ra>
// kernel: block_forward.8
= control target key start
LH: loop header
LB: loop body
LE: loop exit
PB: predicated region body
PF: predicated region fallthrough
CT: control target
= control target key end

     0   :  { %s735_s15 = smov 0   ;;  %s737_s16 = smov 0   ;;  %s782_s0 = inlined_call_operand.vmem [shape: bf16[2,8,8,8], index: 0, kind: input, shape index: {}]   ;;  %s783_s1 = inlined_call_operand.vmem [shape: bf16[1,8,128], index: 1, kind: input, shape index: {}]   ;;  %s784_s2 = inlined_call_operand.vmem [shape: f32[1,128], index: 2, kind: input, shape index: {}]   ;;  %s785_s3 = inlined_call_operand.vmem [shape: bf16[2,8,8,128], index: 3, kind: input, shape index: {}]   ;;  %s786_s4 = inlined_call_operand.vmem [shape: bf16[2,8,8,128], index: 4, kind: output, shape index: {}]  }
   0x1   :  { %s739_s17 = smov 0  }
   0x2 LB: > { %s26_s18 = sadd.s32 1, %s704_s16  ;;  %p576_p0 = scmp.ge.s32.totalorder %s708_s17, 1  ;;  %s708_s17 = sphi %s739_s17, %s14_s17   ;;  %s704_s16 = sphi %s737_s16, %s788_s16   ;;  %s700_s15 = sphi %s735_s15, %s787_s15  }
   0x3   : > { %p28_p1 = scmp.ge.s32.totalorder %s26_s18, 2  ;;  %p208_p2 = scmp.lt.s32.totalorder %s708_s17, 3 }
   0x5   : > { %s790_s18 = smov (%p28_p1, %s26_s18), 0  ;;  %p209_p3 = pnand %p576_p0, %p208_p2 }
   0x6   : > { %p252_p4 = scmp.lt.s32.totalorder (!%p209_p3), %s700_s15, 1 }
   0x7   : > { %212 = sbr.rel (%p209_p3) target bundleno = 225 (0xe1), region = 36 }
   0xc   : > { %v289_v0 = vld [vmem:[%s783_s1] sm:$0xf]  ;;  %vm330_vm0 = vcmask 1043456   ;;  %s792_s15 = smov (!%p252_p4, %s700_s15), 1  ;;  %vm317_vm1 = vcmask 64512  }
   0xd   : > { %656 = vmatprep.subr.msk.bf16.mxu0 %vm330_vm0, %v289_v0  ;;  %657 = vmatprep.subr.msk.bf16.mxu1 %vm330_vm0, %v289_v0  ;;  %v332_v1 = vsel %vm330_vm0, %v289_v0, 0  ;;  %s756_s21 = sshll.u32 %s792_s15, 5  ;;  %v583_v6 = vld [vmem:[%s784_s2] ss:$0 sm:$0xff] }
   0xe   : > { %645 = vmatpush3.bf16.msra.mxu0 %v332_v1  ;;  %655 = vmatpush3.bf16.msra.mxu1 %v332_v1  ;;  %s256_s24 = scalar_lea.vmem %s782_s0, %s756_s21  ;;  %s271_s27 = scalar_lea.vmem %s785_s3, %s756_s21 }
   0xf   : > { %v682_v2 = vld [vmem:[%s256_s24] sm:$0xff]   ;;  %v683_v3 = vld [vmem:[%s256_s24 + $0x10] sm:$0xff]   ;;  %v684_v4 = vld [vmem:[%s256_s24 + $0x8] sm:$0xff]   ;;  %s279_s6 = scalar_lea.vmem %s786_s4, %s756_s21 }
  0x10   : > { %646 = vmatprep.mubr.msk.bf16.mxu0 %vm317_vm1, %v682_v2  ;;  %650 = vmatprep.mubr.msk.bf16.mxu1 %vm317_vm1, %v683_v3  ;;  %v685_v5 = vld [vmem:[%s256_s24 + $0x18] sm:$0xff]   ;;  %v633_v9 = vld [vmem:[%s271_s27 + $0x8] sm:$0xff]   ;;  %v598_v14 = vld [vmem:[%s271_s27] sm:$0xff]  }
  0x11   : > { %647 = vmatmul.mubr.msk.bf16.vlgmr.msra.gmra.mxu0 %vm317_vm1, %v684_v4  ;;  %651 = vmatmul.mubr.msk.bf16.vlgmr.msra.gmra.mxu1 %vm317_vm1, %v685_v5  ;;  %v635_v11 = vld [vmem:[%s271_s27 + $0x18] sm:$0xff]   ;;  %v634_v17 = vld [vmem:[%s271_s27 + $0x10] sm:$0xff]   ;;  %v603_v18 = vunpack.c.l.bf16 %v633_v9  ;;  %v599_v23 = vunpack.c.l.bf16 %v598_v14  ;;  %v604_v25 = vunpack.c.h.bf16 %v633_v9  ;;  %v600_v35 = vunpack.c.h.bf16 %v598_v14 }
  0x12   : > { %v611_v19 = vunpack.c.l.bf16 %v635_v11  ;;  %v607_v28 = vunpack.c.l.bf16 %v634_v17  ;;  %v612_v30 = vunpack.c.h.bf16 %v635_v11  ;;  %v608_v40 = vunpack.c.h.bf16 %v634_v17 }
  0xd1   : > { %v648_v7 = vpop.f32.mrf.mxu0  ;;  %v652_v10 = vpop.f32.mrf.mxu1 }
  0xd2   : > { %v377_v8 = vadd.f32 %v648_v7, %v583_v6  ;;  %v393_v12 = vadd.f32 %v652_v10, %v583_v6 }
  0xd3   : > { %v368_v13 = vpop.f32.mrf.mxu0  ;;  %v384_v16 = vpop.f32.mrf.mxu1 }
  0xd4   : > { %v369_v15 = vadd.f32 %v583_v6, %v368_v13  ;;  %v385_v20 = vadd.f32 %v583_v6, %v384_v16  ;;  %v401_v22 = vmax.f32 %v377_v8, 0.0  ;;  %v405_v27 = vmax.f32 %v393_v12, 0.0 }
  0xd5   : > { %v649_v21 = vpop.f32.mrf.mxu0  ;;  %v653_v26 = vpop.f32.mrf.mxu1 }
  0xd6   : > { %v380_v24 = vadd.f32 %v649_v21, %v583_v6  ;;  %v396_v29 = vadd.f32 %v653_v26, %v583_v6  ;;  %v399_v32 = vmax.f32 %v369_v15, 0.0  ;;  %v403_v37 = vmax.f32 %v385_v20, 0.0 }
  0xd7   : > { %v371_v31 = vpop.f32.mrf.mxu0  ;;  %v387_v36 = vpop.f32.mrf.mxu1  ;;  %v425_v41 = vadd.f32 %v603_v18, %v401_v22  ;;  %v429_v44 = vadd.f32 %v611_v19, %v405_v27 }
  0xd8   : > { %v402_v33 = vmax.f32 %v380_v24, 0.0  ;;  %v372_v34 = vadd.f32 %v583_v6, %v371_v31  ;;  %v406_v38 = vmax.f32 %v396_v29, 0.0  ;;  %v388_v39 = vadd.f32 %v583_v6, %v387_v36 }
  0xd9   : > { %v423_v47 = vadd.f32 %v599_v23, %v399_v32  ;;  %v427_v50 = vadd.f32 %v607_v28, %v403_v37 }
  0xda   : > { %v426_v42 = vadd.f32 %v604_v25, %v402_v33  ;;  %v400_v43 = vmax.f32 %v372_v34, 0.0  ;;  %v430_v45 = vadd.f32 %v612_v30, %v406_v38  ;;  %v404_v46 = vmax.f32 %v388_v39, 0.0 }
  0xdc   : > { %v621_v48 = vpack.c.bf16 %v426_v42, %v425_v41  ;;  %v424_v49 = vadd.f32 %v600_v35, %v400_v43  ;;  %v631_v51 = vpack.c.bf16 %v430_v45, %v429_v44  ;;  %v428_v52 = vadd.f32 %v608_v40, %v404_v46 }
  0xde   : > { %636 = vst [vmem:[%s279_s6 + $0x8] sm:$0xff] %v621_v48   ;;  %v616_v53 = vpack.c.bf16 %v424_v49, %v423_v47  ;;  %638 = vst [vmem:[%s279_s6 + $0x18] sm:$0xff] %v631_v51   ;;  %v626_v54 = vpack.c.bf16 %v428_v52, %v427_v50 }
  0xe0   : > { %617 = vst [vmem:[%s279_s6] sm:$0xff] %v616_v53   ;;  %637 = vst [vmem:[%s279_s6 + $0x10] sm:$0xff] %v626_v54  }
  0xe1 PF: > { %s14_s17 = sadd.s32 1, %s708_s17   ;;  %s787_s15 = smov %s704_s16 }
  0xe2   : > { %p11_p5 = scmp.ge.s32.totalorder %s14_s17, 4   ;;  %s788_s16 = smov %s790_s18 }
  0xe4   :  { %13 = sbr.rel (!%p11_p5) target bundleno = 2 (0x2), region = 75 }

// kernel: block_forward.9
= control target key start
LH: loop header
LB: loop body
LE: loop exit
PB: predicated region body
PF: predicated region fallthrough
CT: control target
= control target key end

     0   :  { %s703_s12 = smov 0   ;;  %s705_s13 = smov 0   ;;  %s776_s0 = inlined_call_operand.vmem [shape: bf16[2,8,8,128], index: 0, kind: input, shape index: {}]   ;;  %s777_s1 = inlined_call_operand.vmem [shape: bf16[1,128,128], index: 1, kind: input, shape index: {}]   ;;  %s778_s2 = inlined_call_operand.vmem [shape: f32[1,128], index: 2, kind: input, shape index: {}]   ;;  %s779_s3 = inlined_call_operand.vmem [shape: bf16[2,8,8,128], index: 3, kind: output, shape index: {}]  }
   0x1   :  { %s707_s14 = smov 0  }
   0x2 LB: > { %s25_s15 = sadd.s32 1, %s677_s13  ;;  %p526_p0 = scmp.ge.s32.totalorder %s681_s14, 1  ;;  %s681_s14 = sphi %s707_s14, %s13_s14   ;;  %s677_s13 = sphi %s705_s13, %s781_s13   ;;  %s673_s12 = sphi %s703_s12, %s780_s12  }
   0x3   : > { %p27_p1 = scmp.ge.s32.totalorder %s25_s15, 2  ;;  %p168_p2 = scmp.lt.s32.totalorder %s681_s14, 3 }
   0x5   : > { %s783_s15 = smov (%p27_p1, %s25_s15), 0  ;;  %p169_p3 = pnand %p526_p0, %p168_p2 }
   0x6   : > { %p202_p4 = scmp.lt.s32.totalorder (!%p169_p3), %s673_s12, 1 }
   0x7   : > { %172 = sbr.rel (%p169_p3) target bundleno = 251 (0xfb), region = 32 }
   0xc   : > { %v647_v0 = vld [vmem:[%s777_s1 + $0x38] sm:$0xff]   ;;  %v648_v1 = vld [vmem:[%s777_s1 + $0x30] sm:$0xff]   ;;  %s785_s12 = smov (!%p202_p4, %s673_s12), 1  ;;  %v649_v2 = vld [vmem:[%s777_s1 + $0x28] sm:$0xff]  }
   0xd   : > { %583 = vmatprep.subr.bf16.mxu0 %v647_v0  ;;  %607 = vmatprep.subr.bf16.mxu1 %v647_v0  ;;  %s546_s22 = sshll.u32 %s785_s12, 5  ;;  %v650_v3 = vld [vmem:[%s777_s1 + $0x20] sm:$0xff]   ;;  %v651_v6 = vld [vmem:[%s777_s1 + $0x18] sm:$0xff]   ;;  %v652_v7 = vld [vmem:[%s777_s1 + $0x10] sm:$0xff]  }
   0xe   : > { %584 = vmatpush3.bf16.msra.mxu0 %v647_v0  ;;  %615 = vmatpush3.bf16.msra.mxu1 %v647_v0  ;;  %s738_s25 = scalar_lea.vmem %s776_s0, %s546_s22  ;;  %v653_v8 = vld [vmem:[%s777_s1 + $0x8] sm:$0xff]   ;;  %v654_v9 = vld [vmem:[%s777_s1] sm:$0xff]   ;;  %s221_s17 = scalar_lea.vmem %s779_s3, %s546_s22 }
   0xf   : > { %585 = vmatprep.subr.bf16.mxu0 %v648_v1  ;;  %608 = vmatprep.subr.bf16.mxu1 %v648_v1  ;;  %v655_v4 = vld [vmem:[%s738_s25] sm:$0xff]   ;;  %v656_v5 = vld [vmem:[%s738_s25 + $0x10] sm:$0xff]   ;;  %v657_v10 = vld [vmem:[%s738_s25 + $0x8] sm:$0xff]  }
  0x10   : > { %599 = vmatprep.mubr.bf16.mxu0 %v655_v4  ;;  %603 = vmatprep.mubr.bf16.mxu1 %v656_v5  ;;  %v658_v11 = vld [vmem:[%s738_s25 + $0x18] sm:$0xff]   ;;  %v531_v12 = vld [vmem:[%s778_s2] ss:$0 sm:$0xff] }
  0x12   : > { %586 = vmatpush3.bf16.msra.mxu0 %v648_v1  ;;  %616 = vmatpush3.bf16.msra.mxu1 %v648_v1 }
  0x13   : > { %587 = vmatprep.subr.bf16.mxu0 %v649_v2  ;;  %609 = vmatprep.subr.bf16.mxu1 %v649_v2 }
  0x16   : > { %588 = vmatpush3.bf16.msra.mxu0 %v649_v2  ;;  %617 = vmatpush3.bf16.msra.mxu1 %v649_v2 }
  0x17   : > { %589 = vmatprep.subr.bf16.mxu0 %v650_v3  ;;  %610 = vmatprep.subr.bf16.mxu1 %v650_v3 }
  0x1a   : > { %590 = vmatpush3.bf16.msra.mxu0 %v650_v3  ;;  %618 = vmatpush3.bf16.msra.mxu1 %v650_v3 }
  0x1b   : > { %591 = vmatprep.subr.bf16.mxu0 %v651_v6  ;;  %611 = vmatprep.subr.bf16.mxu1 %v651_v6 }
  0x1e   : > { %592 = vmatpush3.bf16.msra.mxu0 %v651_v6  ;;  %619 = vmatpush3.bf16.msra.mxu1 %v651_v6 }
  0x1f   : > { %593 = vmatprep.subr.bf16.mxu0 %v652_v7  ;;  %612 = vmatprep.subr.bf16.mxu1 %v652_v7 }
  0x22   : > { %594 = vmatpush3.bf16.msra.mxu0 %v652_v7  ;;  %620 = vmatpush3.bf16.msra.mxu1 %v652_v7 }
  0x23   : > { %595 = vmatprep.subr.bf16.mxu0 %v653_v8  ;;  %613 = vmatprep.subr.bf16.mxu1 %v653_v8 }
  0x26   : > { %596 = vmatpush3.bf16.msra.mxu0 %v653_v8  ;;  %621 = vmatpush3.bf16.msra.mxu1 %v653_v8 }
  0x27   : > { %597 = vmatprep.subr.bf16.mxu0 %v654_v9  ;;  %614 = vmatprep.subr.bf16.mxu1 %v654_v9 }
  0x2a   : > { %598 = vmatpush3.bf16.msra.mxu0 %v654_v9  ;;  %622 = vmatpush3.bf16.msra.mxu1 %v654_v9 }
  0x2d   : > { %600 = vmatmul.mubr.bf16.vlgmr.msra.gmra.mxu0 %v657_v10  ;;  %604 = vmatmul.mubr.bf16.vlgmr.msra.gmra.mxu1 %v658_v11 }
  0xed   : > { %v601_v13 = vpop.f32.mrf.mxu0  ;;  %v605_v14 = vpop.f32.mrf.mxu1 }
  0xee   : > { %v369_v15 = vadd.f32 %v601_v13, %v531_v12  ;;  %v385_v16 = vadd.f32 %v605_v14, %v531_v12 }
  0xef   : > { %v360_v17 = vpop.f32.mrf.mxu0  ;;  %v376_v18 = vpop.f32.mrf.mxu1 }
  0xf0   : > { %v361_v19 = vadd.f32 %v531_v12, %v360_v17  ;;  %v377_v20 = vadd.f32 %v531_v12, %v376_v18  ;;  %v393_v25 = vmax.f32 %v369_v15, 0.0  ;;  %v397_v26 = vmax.f32 %v385_v16, 0.0 }
  0xf1   : > { %v602_v21 = vpop.f32.mrf.mxu0  ;;  %v606_v22 = vpop.f32.mrf.mxu1 }
  0xf2   : > { %v372_v23 = vadd.f32 %v602_v21, %v531_v12  ;;  %v388_v24 = vadd.f32 %v606_v22, %v531_v12  ;;  %v391_v33 = vmax.f32 %v361_v19, 0.0  ;;  %v395_v34 = vmax.f32 %v377_v20, 0.0 }
  0xf3   : > { %v363_v27 = vpop.f32.mrf.mxu0  ;;  %v379_v28 = vpop.f32.mrf.mxu1 }
  0xf4   : > { %v394_v29 = vmax.f32 %v372_v23, 0.0  ;;  %v398_v30 = vmax.f32 %v388_v24, 0.0  ;;  %v364_v31 = vadd.f32 %v531_v12, %v363_v27  ;;  %v380_v32 = vadd.f32 %v531_v12, %v379_v28 }
  0xf6   : > { %v556_v35 = vpack.c.bf16 %v394_v29, %v393_v25  ;;  %v566_v36 = vpack.c.bf16 %v398_v30, %v397_v26  ;;  %v392_v37 = vmax.f32 %v364_v31, 0.0  ;;  %v396_v38 = vmax.f32 %v380_v32, 0.0 }
  0xf8   : > { %568 = vst [vmem:[%s221_s17 + $0x8] sm:$0xff] %v556_v35   ;;  %570 = vst [vmem:[%s221_s17 + $0x18] sm:$0xff] %v566_v36   ;;  %v551_v39 = vpack.c.bf16 %v392_v37, %v391_v33  ;;  %v561_v40 = vpack.c.bf16 %v396_v38, %v395_v34 }
  0xfa   : > { %552 = vst [vmem:[%s221_s17] sm:$0xff] %v551_v39   ;;  %569 = vst [vmem:[%s221_s17 + $0x10] sm:$0xff] %v561_v40  }
  0xfb PF: > { %s13_s14 = sadd.s32 1, %s681_s14   ;;  %s780_s12 = smov %s677_s13 }
  0xfc   : > { %p10_p5 = scmp.ge.s32.totalorder %s13_s14, 4   ;;  %s781_s13 = smov %s783_s15 }
  0xfe   :  { %12 = sbr.rel (!%p10_p5) target bundleno = 2 (0x2), region = 68 }

// kernel: block_forward.6
= control target key start
LH: loop header
LB: loop body
LE: loop exit
PB: predicated region body
PF: predicated region fallthrough
CT: control target
= control target key end

     0   :  { %s2193_s12 = smov 0   ;;  %s2195_s13 = smov 0   ;;  %s2472_s0 = inlined_call_operand.vmem [shape: bf16[8,9,9,8], index: 0, kind: input, shape index: {}]   ;;  %s2473_s1 = inlined_call_operand.vmem [shape: bf16[9,8,128], index: 1, kind: input, shape index: {}]   ;;  %s2474_s2 = inlined_call_operand.vmem [shape: f32[1,128], index: 2, kind: input, shape index: {}]   ;;  %s2475_s3 = inlined_call_operand.vmem [shape: bf16[2,8,8,128], index: 3, kind: output, shape index: {}]  }
   0x1   :  { %s2197_s14 = smov 0  }
   0x2 LB: > { %s25_s15 = sadd.s32 1, %s2167_s13  ;;  %p1769_p0 = scmp.ge.s32.totalorder %s2171_s14, 1  ;;  %s2171_s14 = sphi %s2197_s14, %s13_s14   ;;  %s2167_s13 = sphi %s2195_s13, %s2479_s13   ;;  %s2163_s12 = sphi %s2193_s12, %s2478_s12  }
   0x3   : > { %p27_p1 = scmp.ge.s32.totalorder %s25_s15, 2  ;;  %p170_p2 = scmp.lt.s32.totalorder %s2171_s14, 3 }
   0x5   : > { %s2481_s15 = smov (%p27_p1, %s25_s15), 0  ;;  %p171_p3 = pnand %p1769_p0, %p170_p2 }
   0x6   : > { %s1770_s18 = sshll.u32 (!%p171_p3), %s2163_s12, 2  ;;  %p219_p5 = scmp.lt.s32.totalorder (!%p171_p3), %s2163_s12, 1 }
   0x7   : > { %174 = sbr.rel (%p171_p3) target bundleno = 301 (0x12d), region = 32  ;;  %p206_p4 = scmp.lt.s32.totalorder (!%p171_p3), %s1770_s18, 7 }
   0xc   : > { %v1782_v0 = vld [vmem:[%s2473_s1 + $0x4] sm:$0xf]  ;;  %vm281_vm0 = vcmask 1043456   ;;  %v236_v2 = vld [vmem:[%s2473_s1] sm:$0xf]  ;;  %s2483_s18 = smov (!%p206_p4, %s1770_s18), 7 }
   0xd   : > { %2091 = vmatprep.subr.msk.bf16.mxu1 %vm281_vm0, %v1782_v0  ;;  %2090 = vmatprep.subr.msk.bf16.mxu0 %vm281_vm0, %v1782_v0  ;;  %v283_v1 = vsel %vm281_vm0, %v1782_v0, 0  ;;  %v1799_v3 = vld [vmem:[%s2473_s1 + $0x8] sm:$0xf]  ;;  %s2100_s23 = smul.u32 72, %s2483_s18  ;;  %vm268_vm1 = vcmask 64512   ;;  %v383_v4 = vsel %vm281_vm0, %v236_v2, 0 }
   0xe   : > { %2089 = vmatpush3.bf16.msra.mxu1 %v283_v1  ;;  %1999 = vmatpush3.bf16.msra.mxu0 %v283_v1  ;;  %v608_v5 = vsel %vm281_vm0, %v1799_v3, 0  ;;  %v1816_v7 = vld [vmem:[%s2473_s1 + $0xc] sm:$0xf]  ;;  %v1833_v8 = vld [vmem:[%s2473_s1 + $0x10] sm:$0xf]  ;;  %s2485_s12 = smov (!%p219_p5, %s2163_s12), 1 }
   0xf   : > { %2092 = vmatprep.subr.msk.bf16.mxu1 %vm281_vm0, %v236_v2  ;;  %2093 = vmatprep.subr.msk.bf16.mxu0 %vm281_vm0, %v1799_v3  ;;  %s2231_s26 = scalar_lea.vmem %s2472_s0, %s2100_s23  ;;  %vm466_vm2 = vsmask.f32 3328  ;;  %vm467_vm3 = vsmask.f32 7440  ;;  %v727_v13 = vsel %vm281_vm0, %v1816_v7, 0  ;;  %v2252_v14 = vsel %vm281_vm0, %v1833_v8, 0 }
  0x10   : > { %v2125_v6 = vld [vmem:[%s2231_s26 + $0x48] ss:$8 sps:$4 sm:$0xff]   ;;  %v2127_v10 = vld [vmem:[%s2231_s26 + $0x58] ss:$8 sps:$4 sm:$0xff]   ;;  %v451_v16 = vld [vmem:[%s2231_s26 + $0x4] sm:$0x1] }
  0x11   : > { %v2126_v9 = vld [vmem:[%s2231_s26 + $0x68] ss:$8 sps:$4 sm:$0xff]   ;;  %2000 = vmatprep.mubr.msk.bf16.mxu0 %vm268_vm1, %v2125_v6  ;;  %v2128_v11 = vld [vmem:[%s2231_s26 + $0x78] ss:$8 sps:$4 sm:$0xff]   ;;  %v453_v19 = vld [vmem:[%s2231_s26 + $0xc] sm:$0x1] }
  0x12   : > { %2004 = vmatprep.mubr.msk.bf16.mxu1 %vm268_vm1, %v2126_v9  ;;  %2001 = vmatmul.mubr.msk.bf16.vlgmr.msra.gmra.mxu0 %vm268_vm1, %v2127_v10  ;;  %v2129_v12 = vld [vmem:[%s2231_s26] ss:$8 sps:$4 sm:$0xff]   ;;  %v2130_v18 = vld [vmem:[%s2231_s26 + $0x10] ss:$8 sps:$4 sm:$0xff]   ;;  %v479_v22 = vshll.u32 %v451_v16, 16  ;;  %v493_v25 = vshll.u32 %v453_v19, 16  ;;  %vm2273_vm4 = vmor %vm466_vm2, %vm467_vm3 }
  0x13   : > { %2005 = vmatmul.mubr.msk.bf16.vlgmr.msra.gmra.mxu1 %vm268_vm1, %v2128_v11  ;;  %2019 = vmatpush3.bf16.msra.mxu0 %v608_v5  ;;  %v450_v15 = vld [vmem:[%s2231_s26] sm:$0xf]  ;;  %v452_v17 = vld [vmem:[%s2231_s26 + $0x8] sm:$0xf]  ;;  %v454_v26 = vld [vmem:[%s2231_s26 + $0x10] sm:$0xf] }
  0x14   : > { %2009 = vmatpush3.bf16.msra.mxu1 %v383_v4  ;;  %2010 = vmatprep.mubr.msk.bf16.mxu1 %vm268_vm1, %v2129_v12  ;;  %v470_v20 = vshrl.u32 %v450_v15, 16  ;;  %v473_v21 = vshll.u32 %v450_v15, 16  ;;  %v484_v23 = vshrl.u32 %v452_v17, 16  ;;  %v487_v24 = vshll.u32 %v452_v17, 16  ;;  %v455_v27 = vld [vmem:[%s2231_s26 + $0x14] sm:$0x1] }
  0x15   : > { %2094 = vmatprep.subr.msk.bf16.mxu1 %vm281_vm0, %v1816_v7  ;;  %2095 = vmatprep.subr.msk.bf16.mxu0 %vm281_vm0, %v1833_v8  ;;  %v481_v30 = vrot.slane %v479_v22, 5  ;;  %v456_v32 = vld [vmem:[%s2231_s26 + $0x18] sm:$0xf]  ;;  %v495_v34 = vrot.slane %v493_v25, 5  ;;  %v457_v35 = vld [vmem:[%s2231_s26 + $0x1c] sm:$0x1] }
  0x16   : > { %v472_v28 = vrot.slane %v470_v20, 4  ;;  %v475_v29 = vrot.slane %v473_v21, 5  ;;  %v486_v31 = vrot.slane %v484_v23, 4  ;;  %v489_v33 = vrot.slane %v487_v24, 5  ;;  %v2269_v38 = vld [vmem:[%s2473_s1 + $0x14] sm:$0xf] }
  0x17   : > { %v498_v36 = vshrl.u32 %v454_v26, 16  ;;  %v501_v37 = vshll.u32 %v454_v26, 16  ;;  %v507_v40 = vshll.u32 %v455_v27, 16  ;;  %v512_v41 = vshrl.u32 %v456_v32, 16  ;;  %v2131_v52 = vld [vmem:[%s2231_s26 + $0x20] ss:$8 sps:$4 sm:$0xff]  }
  0x18   : > { %v476_v39 = vor.u32 %v475_v29, %v472_v28  ;;  %v515_v42 = vshll.u32 %v456_v32, 16  ;;  %v490_v44 = vor.u32 %v489_v33, %v486_v31  ;;  %v521_v47 = vshll.u32 %v457_v35, 16  ;;  %v2132_v58 = vld [vmem:[%s2231_s26 + $0x30] ss:$8 sps:$4 sm:$0xff]   ;;  %v458_v59 = vld [vmem:[%s2231_s26 + $0x20] sm:$0xf] }
  0x19   : > { %v500_v45 = vrot.slane %v498_v36, 4  ;;  %v503_v46 = vrot.slane %v501_v37, 5  ;;  %v509_v49 = vrot.slane %v507_v40, 5  ;;  %v514_v50 = vrot.slane %v512_v41, 4  ;;  %v459_v60 = vld [vmem:[%s2231_s26 + $0x24] sm:$0x1] }
  0x1a   : > { %v477_v48 = vrot.slane %v476_v39, 4  ;;  %v517_v51 = vrot.slane %v515_v42, 5  ;;  %v491_v53 = vrot.slane %v490_v44, 4  ;;  %v523_v55 = vrot.slane %v521_v47, 5  ;;  %v460_v63 = vld [vmem:[%s2231_s26 + $0x28] sm:$0xf] }
  0x1b   : > { %2011 = vmatmul.mubr.msk.bf16.vlgmr.msra.gmra.mxu1 %vm268_vm1, %v2130_v18  ;;  %v504_v54 = vor.u32 %v503_v46, %v500_v45  ;;  %v461_v0 = vld [vmem:[%s2231_s26 + $0x2c] sm:$0x1]  ;;  %v526_v1 = vshrl.u32 %v458_v59, 16  ;;  %v529_v4 = vshll.u32 %v458_v59, 16  ;;  %v535_v5 = vshll.u32 %v459_v60, 16  ;;  %s1929_s18 = sshll.u32 %s2485_s12, 5 }
  0x1c   : > { %2029 = vmatpush3.bf16.msra.mxu1 %v727_v13  ;;  %v482_v56 = vsel %vm2273_vm4, %v477_v48, %v481_v30  ;;  %v518_v57 = vor.u32 %v517_v51, %v514_v50  ;;  %2014 = vmatprep.mubr.msk.bf16.mxu1 %vm268_vm1, %v2131_v52  ;;  %v496_v61 = vsel %vm2273_vm4, %v491_v53, %v495_v34  ;;  %v462_v6 = vld [vmem:[%s2231_s26 + $0x30] sm:$0xf]  ;;  %v540_v9 = vshrl.u32 %v460_v63, 16  ;;  %v463_v11 = vld [vmem:[%s2231_s26 + $0x34] sm:$0x1]  ;;  %s226_s21 = scalar_lea.vmem %s2475_s3, %s1929_s18 }
  0x1d   : > { %2096 = vmatprep.subr.msk.bf16.mxu1 %vm281_vm0, %v2269_v38  ;;  %v505_v62 = vrot.slane %v504_v54, 4  ;;  %v1800_v2 = vcombine.low %v482_v56, %v496_v61  ;;  %v528_v8 = vrot.slane %v526_v1, 4  ;;  %v543_v10 = vshll.u32 %v460_v63, 16  ;;  %v464_v17 = vld [vmem:[%s2231_s26 + $0x38] sm:$0xf] }
  0x1e   : > { %v519_v3 = vrot.slane %v518_v57, 4  ;;  %v531_v13 = vrot.slane %v529_v4, 5  ;;  %v537_v15 = vrot.slane %v535_v5, 5  ;;  %v549_v16 = vshll.u32 %v461_v0, 16  ;;  %v1875_v18 = vld [vmem:[%s2473_s1 + $0x18] sm:$0xf] }
  0x1f   : > { %v510_v7 = vsel %vm2273_vm4, %v505_v62, %v509_v49  ;;  %2020 = vmatprep.mubr.msk.bf16.mxu0 %vm268_vm1, %v1800_v2  ;;  %v542_v20 = vrot.slane %v540_v9, 4  ;;  %v545_v21 = vrot.slane %v543_v10, 5  ;;  %v465_v22 = vld [vmem:[%s2231_s26 + $0x3c] sm:$0x1]  ;;  %v554_v23 = vshrl.u32 %v462_v6, 16 }
  0x20   : > { %v524_v12 = vsel %vm2273_vm4, %v519_v3, %v523_v55  ;;  %v532_v24 = vor.u32 %v531_v13, %v528_v8  ;;  %v551_v25 = vrot.slane %v549_v16, 5  ;;  %v557_v26 = vshll.u32 %v462_v6, 16  ;;  %v2133_v35 = vld [vmem:[%s2231_s26 + $0x90] ss:$8 sps:$4 sm:$0xff]   ;;  %v2134_v44 = vld [vmem:[%s2231_s26 + $0xa0] ss:$8 sps:$4 sm:$0xff]  }
  0x21   : > { %v1801_v19 = vcombine.low %v510_v7, %v524_v12  ;;  %v563_v27 = vshll.u32 %v463_v11, 16  ;;  %v546_v28 = vor.u32 %v545_v21, %v542_v20  ;;  %v556_v29 = vrot.slane %v554_v23, 4  ;;  %v1892_v51 = vld [vmem:[%s2473_s1 + $0x1c] sm:$0xf]  ;;  %v2137_v53 = vld [vmem:[%s2231_s26 + $0xb0] ss:$8 sps:$4 sm:$0xff]  }
  0x22   : > { %v568_v30 = vshrl.u32 %v464_v17, 16  ;;  %v571_v31 = vshll.u32 %v464_v17, 16  ;;  %v533_v32 = vrot.slane %v532_v24, 4  ;;  %v559_v33 = vrot.slane %v557_v26, 5  ;;  %v2138_v57 = vld [vmem:[%s2231_s26 + $0xc0] ss:$8 sps:$4 sm:$0xff]  }
  0x23   : > { %2015 = vmatmul.mubr.msk.bf16.gmra.mxu1 %vm268_vm1, %v2132_v58  ;;  %2021 = vmatmul.mubr.msk.bf16.vlgmr.msra.gmra.mxu0 %vm268_vm1, %v1801_v19  ;;  %v577_v34 = vshll.u32 %v465_v22, 16  ;;  %v547_v36 = vrot.slane %v546_v28, 4  ;;  %v565_v42 = vrot.slane %v563_v27, 5  ;;  %v1076_v49 = vsel %vm281_vm0, %v2269_v38, 0  ;;  %v2135_v38 = vld [vmem:[%s2231_s26 + $0xd8] ss:$8 sps:$4 sm:$0xff]  }
  0x24   : > { %2039 = vmatpush3.bf16.msra.mxu0 %v2252_v14  ;;  %v570_v37 = vrot.slane %v568_v30, 4  ;;  %v573_v39 = vrot.slane %v571_v31, 5  ;;  %v538_v40 = vsel %vm2273_vm4, %v533_v32, %v537_v15  ;;  %v560_v41 = vor.u32 %v559_v33, %v556_v29  ;;  %2030 = vmatprep.mubr.msk.bf16.mxu1 %vm268_vm1, %v2133_v35  ;;  %v1842_v58 = vld [vmem:[%s2231_s26 + $0x90] sm:$0xf]  ;;  %v1843_v59 = vld [vmem:[%s2231_s26 + $0x94] sm:$0x1] }
  0x25   : > { %2097 = vmatprep.subr.msk.bf16.mxu0 %vm281_vm0, %v1875_v18  ;;  %v552_v14 = vsel %vm2273_vm4, %v547_v36, %v551_v25  ;;  %v579_v46 = vrot.slane %v577_v34, 5  ;;  %v1195_v56 = vsel %vm281_vm0, %v1875_v18, 0  ;;  %v1844_v60 = vld [vmem:[%s2231_s26 + $0x98] sm:$0xf]  ;;  %v1845_v61 = vld [vmem:[%s2231_s26 + $0x9c] sm:$0x1] }
  0x26   : > { %v574_v45 = vor.u32 %v573_v39, %v570_v37  ;;  %v1802_v47 = vcombine.low %v538_v40, %v552_v14  ;;  %v561_v48 = vrot.slane %v560_v41, 4  ;;  %v938_v62 = vshrl.u32 %v1842_v58, 16  ;;  %v1846_v2 = vld [vmem:[%s2231_s26 + $0xa0] sm:$0xf]  ;;  %v2136_v3 = vld [vmem:[%s2231_s26 + $0xe8] ss:$8 sps:$4 sm:$0xff]  }
  0x27   : > { %v941_v63 = vshll.u32 %v1842_v58, 16  ;;  %v947_v0 = vshll.u32 %v1843_v59, 16  ;;  %v952_v1 = vshrl.u32 %v1844_v60, 16  ;;  %v955_v4 = vshll.u32 %v1844_v60, 16  ;;  %v1847_v6 = vld [vmem:[%s2231_s26 + $0xa4] sm:$0x1] }
  0x28   : > { %v575_v50 = vrot.slane %v574_v45, 4  ;;  %2024 = vmatprep.mubr.msk.bf16.mxu0 %vm268_vm1, %v1802_v47  ;;  %v566_v52 = vsel %vm2273_vm4, %v561_v48, %v565_v42  ;;  %v961_v5 = vshll.u32 %v1845_v61, 16  ;;  %v1848_v7 = vld [vmem:[%s2231_s26 + $0xa8] sm:$0xf]  ;;  %v2139_v8 = vld [vmem:[%s2231_s26 + $0xf8] ss:$8 sps:$4 sm:$0xff]  }
  0x29   : > { %v940_v9 = vrot.slane %v938_v62, 4  ;;  %v943_v10 = vrot.slane %v941_v63, 5  ;;  %v949_v11 = vrot.slane %v947_v0, 5  ;;  %v954_v12 = vrot.slane %v952_v1, 4  ;;  %v1849_v13 = vld [vmem:[%s2231_s26 + $0xac] sm:$0x1] }
  0x2a   : > { %v580_v54 = vsel %vm2273_vm4, %v575_v50, %v579_v46  ;;  %v957_v15 = vrot.slane %v955_v4, 5  ;;  %v963_v16 = vrot.slane %v961_v5, 5  ;;  %v966_v17 = vshrl.u32 %v1846_v2, 16  ;;  %v2347_v27 = vld [vmem:[%s2473_s1 + $0x20] sm:$0xf] }
  0x2b   : > { %2031 = vmatmul.mubr.msk.bf16.vlgmr.msra.gmra.mxu1 %vm268_vm1, %v2134_v44  ;;  %v1803_v55 = vcombine.low %v566_v52, %v580_v54  ;;  %v969_v18 = vshll.u32 %v1846_v2, 16  ;;  %v944_v19 = vor.u32 %v943_v10, %v940_v9  ;;  %v975_v20 = vshll.u32 %v1847_v6, 16  ;;  %v1850_v39 = vld [vmem:[%s2231_s26 + $0xb0] sm:$0xf]  ;;  %v1851_v40 = vld [vmem:[%s2231_s26 + $0xb4] sm:$0x1] }
  0x2c   : > { %2049 = vmatpush3.bf16.msra.mxu1 %v1076_v49  ;;  %2034 = vmatprep.mubr.msk.bf16.mxu1 %vm268_vm1, %v2137_v53  ;;  %v980_v21 = vshrl.u32 %v1848_v7, 16  ;;  %v983_v22 = vshll.u32 %v1848_v7, 16  ;;  %v958_v23 = vor.u32 %v957_v15, %v954_v12  ;;  %v968_v24 = vrot.slane %v966_v17, 4  ;;  %v1852_v41 = vld [vmem:[%s2231_s26 + $0xb8] sm:$0xf] }
  0x2d   : > { %2098 = vmatprep.subr.msk.bf16.mxu1 %vm281_vm0, %v1892_v51  ;;  %2025 = vmatmul.mubr.msk.bf16.gmra.mxu0 %vm268_vm1, %v1803_v55  ;;  %v971_v25 = vrot.slane %v969_v18, 5  ;;  %v989_v26 = vshll.u32 %v1849_v13, 16  ;;  %v945_v28 = vrot.slane %v944_v19, 4  ;;  %v1314_v31 = vsel %vm281_vm0, %v1892_v51, 0  ;;  %v2140_v42 = vld [vmem:[%s2231_s26 + $0x108] ss:$8 sps:$4 sm:$0xff]  }
  0x2e   : > { %2040 = vmatprep.mubr.msk.bf16.mxu0 %vm268_vm1, %v2135_v38  ;;  %v982_v29 = vrot.slane %v980_v21, 4  ;;  %v985_v30 = vrot.slane %v983_v22, 5  ;;  %v959_v32 = vrot.slane %v958_v23, 4  ;;  %v977_v34 = vrot.slane %v975_v20, 5  ;;  %v1853_v45 = vld [vmem:[%s2231_s26 + $0xbc] sm:$0x1] }
  0x2f   : > { %v972_v33 = vor.u32 %v971_v25, %v968_v24  ;;  %v991_v35 = vrot.slane %v989_v26, 5  ;;  %v950_v36 = vsel %vm2273_vm4, %v945_v28, %v949_v11  ;;  %v994_v46 = vshrl.u32 %v1850_v39, 16  ;;  %v2141_v50 = vld [vmem:[%s2231_s26 + $0x8] ss:$8 sps:$4 sm:$0xff]   ;;  %v1854_v53 = vld [vmem:[%s2231_s26 + $0xc0] sm:$0xf] }
  0x30   : > { %v986_v37 = vor.u32 %v985_v30, %v982_v29  ;;  %v964_v44 = vsel %vm2273_vm4, %v959_v32, %v963_v16  ;;  %v997_v47 = vshll.u32 %v1850_v39, 16  ;;  %v1003_v51 = vshll.u32 %v1851_v40, 16  ;;  %v1856_v62 = vld [vmem:[%s2231_s26 + $0xc8] sm:$0xf]  ;;  %v1857_v2 = vld [vmem:[%s2231_s26 + $0xcc] sm:$0x1] }
  0x31   : > { %v973_v14 = vrot.slane %v972_v33, 4  ;;  %v1859_v48 = vcombine.low %v950_v36, %v964_v44  ;;  %v1008_v52 = vshrl.u32 %v1852_v41, 16  ;;  %v996_v38 = vrot.slane %v994_v46, 4  ;;  %v2142_v16 = vld [vmem:[%s2231_s26 + $0x18] ss:$8 sps:$4 sm:$0xff]  }
  0x32   : > { %v987_v49 = vrot.slane %v986_v37, 4  ;;  %v999_v55 = vrot.slane %v997_v47, 5  ;;  %v1005_v59 = vrot.slane %v1003_v51, 5  ;;  %v1017_v61 = vshll.u32 %v1853_v45, 16  ;;  %v2143_v29 = vld [vmem:[%s2231_s26 + $0x28] ss:$8 sps:$4 sm:$0xff]  }
  0x33   : > { %2035 = vmatmul.mubr.msk.bf16.gmra.mxu1 %vm268_vm1, %v2138_v57  ;;  %v978_v54 = vsel %vm2273_vm4, %v973_v14, %v977_v34  ;;  %v1855_v57 = vld [vmem:[%s2231_s26 + $0xc4] sm:$0x1]  ;;  %v1010_v60 = vrot.slane %v1008_v52, 4  ;;  %v1025_v5 = vshll.u32 %v1854_v53, 16  ;;  %v1036_v7 = vshrl.u32 %v1856_v62, 16 }
  0x34   : > { %2050 = vmatprep.mubr.msk.bf16.mxu1 %vm268_vm1, %v1859_v48  ;;  %v992_v58 = vsel %vm2273_vm4, %v987_v49, %v991_v35  ;;  %v1000_v0 = vor.u32 %v999_v55, %v996_v38  ;;  %v1019_v4 = vrot.slane %v1017_v61, 5  ;;  %v1031_v6 = vshll.u32 %v1855_v57, 16  ;;  %v1901_v30 = vld [vmem:[%s2231_s26 + $0x8] sm:$0xf]  ;;  %v2145_v32 = vld [vmem:[%s2231_s26 + $0x50] ss:$8 sps:$4 sm:$0xff]  }
  0x35   : > { %2041 = vmatmul.mubr.msk.bf16.vlgmr.msra.gmra.mxu0 %vm268_vm1, %v2136_v3  ;;  %v1860_v63 = vcombine.low %v978_v54, %v992_v58  ;;  %v1022_v3 = vshrl.u32 %v1854_v53, 16  ;;  %v1039_v11 = vshll.u32 %v1856_v62, 16  ;;  %v1027_v12 = vrot.slane %v1025_v5, 5  ;;  %v1902_v33 = vld [vmem:[%s2231_s26 + $0xc] sm:$0x1] }
  0x36   : > { %2059 = vmatpush3.bf16.msra.mxu0 %v1195_v56  ;;  %2044 = vmatprep.mubr.msk.bf16.mxu0 %vm268_vm1, %v2139_v8  ;;  %v1011_v56 = vshll.u32 %v1852_v41, 16  ;;  %v1001_v8 = vrot.slane %v1000_v0, 4  ;;  %v1038_v13 = vrot.slane %v1036_v7, 4  ;;  %v1045_v15 = vshll.u32 %v1857_v2, 16  ;;  %v1903_v34 = vld [vmem:[%s2231_s26 + $0x10] sm:$0xf] }
  0x37   : > { %2099 = vmatprep.subr.msk.bf16.mxu0 %vm281_vm0, %v2347_v27  ;;  %v1024_v10 = vrot.slane %v1022_v3, 4  ;;  %v1041_v19 = vrot.slane %v1039_v11, 5  ;;  %v1033_v21 = vrot.slane %v1031_v6, 5  ;;  %v1544_v25 = vsel %vm281_vm0, %v2347_v27, 0  ;;  %v1904_v37 = vld [vmem:[%s2231_s26 + $0x14] sm:$0x1] }
  0x38   : > { %v1013_v1 = vrot.slane %v1011_v56, 5  ;;  %v1006_v17 = vsel %vm2273_vm4, %v1001_v8, %v1005_v59  ;;  %v1047_v24 = vrot.slane %v1045_v15, 5  ;;  %v1406_v35 = vshrl.u32 %v1901_v30, 16  ;;  %v1905_v45 = vld [vmem:[%s2231_s26 + $0x18] sm:$0xf] }
  0x39   : > { %v1028_v20 = vor.u32 %v1027_v12, %v1024_v10  ;;  %v1042_v23 = vor.u32 %v1041_v19, %v1038_v13  ;;  %v1409_v39 = vshll.u32 %v1901_v30, 16  ;;  %v1415_v27 = vshll.u32 %v1902_v33, 16  ;;  %v2144_v51 = vld [vmem:[%s2231_s26 + $0x38] ss:$8 sps:$4 sm:$0xff]   ;;  %v1908_v38 = vld [vmem:[%s2231_s26 + $0x24] sm:$0x1] }
  0x3a   : > { %v1014_v9 = vor.u32 %v1013_v1, %v1010_v60  ;;  %v1420_v40 = vshrl.u32 %v1903_v34, 16  ;;  %v1423_v44 = vshll.u32 %v1903_v34, 16  ;;  %v1429_v14 = vshll.u32 %v1904_v37, 16  ;;  %v1907_v54 = vld [vmem:[%s2231_s26 + $0x20] sm:$0xf] }
  0x3b   : > { %2051 = vmatmul.mubr.msk.bf16.vlgmr.msra.gmra.mxu1 %vm268_vm1, %v1860_v63  ;;  %v1029_v28 = vrot.slane %v1028_v20, 4  ;;  %v1411_v47 = vrot.slane %v1409_v39, 5  ;;  %v1417_v48 = vrot.slane %v1415_v27, 5  ;;  %v1434_v56 = vshrl.u32 %v1905_v45, 16  ;;  %v2146_v63 = vld [vmem:[%s2231_s26 + $0x60] ss:$8 sps:$4 sm:$0xff]  }
  0x3c   : > { %2069 = vmatpush3.bf16.msra.mxu1 %v1314_v31  ;;  %v1015_v18 = vrot.slane %v1014_v9, 4  ;;  %v1043_v31 = vrot.slane %v1042_v23, 4  ;;  %v1422_v49 = vrot.slane %v1420_v40, 4  ;;  %v1425_v52 = vrot.slane %v1423_v44, 5  ;;  %v2147_v6 = vld [vmem:[%s2231_s26 + $0x70] ss:$8 sps:$4 sm:$0xff]  }
  0x3d   : > { %2045 = vmatmul.mubr.msk.bf16.gmra.mxu0 %vm268_vm1, %v2140_v42  ;;  %v1034_v36 = vsel %vm2273_vm4, %v1029_v28, %v1033_v21  ;;  %v1408_v42 = vrot.slane %v1406_v35, 4  ;;  %v1431_v53 = vrot.slane %v1429_v14, 5  ;;  %v1437_v57 = vshll.u32 %v1905_v45, 16  ;;  %v1909_v11 = vld [vmem:[%s2231_s26 + $0x28] sm:$0xf] }
  0x3e   : > { %2060 = vmatprep.mubr.msk.bf16.mxu0 %vm268_vm1, %v2141_v50  ;;  %v1020_v22 = vsel %vm2273_vm4, %v1015_v18, %v1019_v4  ;;  %v1048_v41 = vsel %vm2273_vm4, %v1043_v31, %v1047_v24  ;;  %v1906_v50 = vld [vmem:[%s2231_s26 + $0x1c] sm:$0x1]  ;;  %v1426_v59 = vor.u32 %v1425_v52, %v1422_v49  ;;  %v1448_v60 = vshrl.u32 %v1907_v54, 16  ;;  %v1910_v15 = vld [vmem:[%s2231_s26 + $0x2c] sm:$0x1] }
  0x3f   : > { %v1861_v26 = vcombine.low %v1006_v17, %v1020_v22  ;;  %v1862_v46 = vcombine.low %v1034_v36, %v1048_v41  ;;  %v1412_v55 = vor.u32 %v1411_v47, %v1408_v42  ;;  %v1443_v58 = vshll.u32 %v1906_v50, 16  ;;  %v1912_v17 = vld [vmem:[%s2231_s26 + $0x34] sm:$0x1]  ;;  %v1913_v22 = vld [vmem:[%s2231_s26 + $0x38] sm:$0xf] }
  0x40   : > { %v1451_v61 = vshll.u32 %v1907_v54, 16  ;;  %v1457_v62 = vshll.u32 %v1908_v38, 16  ;;  %v1436_v1 = vrot.slane %v1434_v56, 4  ;;  %v1439_v2 = vrot.slane %v1437_v57, 5  ;;  %v1914_v28 = vld [vmem:[%s2231_s26 + $0x3c] sm:$0x1] }
  0x41   : > { %2054 = vmatprep.mubr.msk.bf16.mxu1 %vm268_vm1, %v1861_v26  ;;  %v1413_v0 = vrot.slane %v1412_v55, 4  ;;  %v1427_v3 = vrot.slane %v1426_v59, 4  ;;  %v1450_v4 = vrot.slane %v1448_v60, 4  ;;  %v1445_v9 = vrot.slane %v1443_v58, 5  ;;  %v1915_v33 = vld [vmem:[%s2231_s26 + $0x40] sm:$0xf] }
  0x42   : > { %v1453_v5 = vrot.slane %v1451_v61, 5  ;;  %v1440_v8 = vor.u32 %v1439_v2, %v1436_v1  ;;  %v1459_v10 = vrot.slane %v1457_v62, 5  ;;  %v1462_v20 = vshrl.u32 %v1909_v11, 16  ;;  %v1916_v39 = vld [vmem:[%s2231_s26 + $0x44] sm:$0x1] }
  0x43   : > { %2055 = vmatmul.mubr.msk.bf16.gmra.mxu1 %vm268_vm1, %v1862_v46  ;;  %v1418_v7 = vsel %vm2273_vm4, %v1413_v0, %v1417_v48  ;;  %v1432_v12 = vsel %vm2273_vm4, %v1427_v3, %v1431_v53  ;;  %v1465_v21 = vshll.u32 %v1909_v11, 16  ;;  %v1471_v24 = vshll.u32 %v1910_v15, 16  ;;  %v2148_v47 = vld [vmem:[%s2231_s26 + $0x80] ss:$8 sps:$4 sm:$0xff]  }
  0x44   : > { %2070 = vmatprep.mubr.msk.bf16.mxu1 %vm268_vm1, %v2145_v32  ;;  %v1454_v13 = vor.u32 %v1453_v5, %v1450_v4  ;;  %v1918_v18 = vcombine.low %v1418_v7, %v1432_v12  ;;  %v1441_v19 = vrot.slane %v1440_v8, 4  ;;  %v1464_v30 = vrot.slane %v1462_v20, 4 }
  0x45   : > { %2061 = vmatmul.mubr.msk.bf16.vlgmr.msra.gmra.mxu0 %vm268_vm1, %v2142_v16  ;;  %v1911_v16 = vld [vmem:[%s2231_s26 + $0x30] sm:$0xf]  ;;  %v1467_v31 = vrot.slane %v1465_v21, 5  ;;  %v1485_v32 = vshll.u32 %v1912_v17, 16  ;;  %v1473_v35 = vrot.slane %v1471_v24, 5  ;;  %v1490_v42 = vshrl.u32 %v1913_v22, 16 }
  0x46   : > { %2079 = vmatpush3.bf16.msra.mxu0 %v1544_v25  ;;  %2064 = vmatprep.mubr.msk.bf16.mxu0 %vm268_vm1, %v2143_v29  ;;  %v1455_v23 = vrot.slane %v1454_v13, 4  ;;  %v1476_v25 = vshrl.u32 %v1911_v16, 16  ;;  %v1479_v26 = vshll.u32 %v1911_v16, 16  ;;  %v1446_v29 = vsel %vm2273_vm4, %v1441_v19, %v1445_v9 }
  0x47   : > { %v1468_v40 = vor.u32 %v1467_v31, %v1464_v30  ;;  %v1487_v41 = vrot.slane %v1485_v32, 5  ;;  %v1493_v14 = vshll.u32 %v1913_v22, 16  ;;  %v1499_v45 = vshll.u32 %v1914_v28, 16 }
  0x48   : > { %v1460_v34 = vsel %vm2273_vm4, %v1455_v23, %v1459_v10  ;;  %v1478_v36 = vrot.slane %v1476_v25, 4  ;;  %v1481_v37 = vrot.slane %v1479_v26, 5  ;;  %v1504_v46 = vshrl.u32 %v1915_v33, 16 }
  0x49   : > { %v1919_v27 = vcombine.low %v1446_v29, %v1460_v34  ;;  %v1469_v48 = vrot.slane %v1468_v40, 4  ;;  %v1492_v49 = vrot.slane %v1490_v42, 4  ;;  %v1507_v50 = vshll.u32 %v1915_v33, 16 }
  0x4a   : > { %v1482_v44 = vor.u32 %v1481_v37, %v1478_v36  ;;  %v1495_v53 = vrot.slane %v1493_v14, 5  ;;  %v1506_v54 = vrot.slane %v1504_v46, 4  ;;  %v1501_v58 = vrot.slane %v1499_v45, 5 }
  0x4b   : > { %2071 = vmatmul.mubr.msk.bf16.vlgmr.msra.gmra.mxu1 %vm268_vm1, %v2146_v63  ;;  %v1474_v38 = vsel %vm2273_vm4, %v1469_v48, %v1473_v35  ;;  %v1509_v55 = vrot.slane %v1507_v50, 5 }
  0x4c   : > { %2074 = vmatprep.mubr.msk.bf16.mxu1 %vm268_vm1, %v2147_v6  ;;  %v1483_v52 = vrot.slane %v1482_v44, 4  ;;  %v1496_v57 = vor.u32 %v1495_v53, %v1492_v49 }
  0x4d   : > { %2065 = vmatmul.mubr.msk.bf16.gmra.mxu0 %vm268_vm1, %v2144_v51  ;;  %v1513_v51 = vshll.u32 %v1916_v39, 16  ;;  %v1510_v60 = vor.u32 %v1509_v55, %v1506_v54 }
  0x4e   : > { %2080 = vmatprep.mubr.msk.bf16.mxu0 %vm268_vm1, %v1918_v18  ;;  %v1488_v56 = vsel %vm2273_vm4, %v1483_v52, %v1487_v41  ;;  %v1497_v62 = vrot.slane %v1496_v57, 4 }
  0x4f   : > { %v1920_v59 = vcombine.low %v1474_v38, %v1488_v56  ;;  %v1515_v61 = vrot.slane %v1513_v51, 5  ;;  %v1511_v63 = vrot.slane %v1510_v60, 4 }
  0x50   : > { %v1502_v0 = vsel %vm2273_vm4, %v1497_v62, %v1501_v58 }
  0x51   : > { %v1516_v1 = vsel %vm2273_vm4, %v1511_v63, %v1515_v61 }
  0x52   : > { %v1921_v2 = vcombine.low %v1502_v0, %v1516_v1 }
  0x53   : > { %2075 = vmatmul.mubr.msk.bf16.gmra.mxu1 %vm268_vm1, %v2148_v47 }
  0x55   : > { %2081 = vmatmul.mubr.msk.bf16.vlgmr.msra.gmra.mxu0 %vm268_vm1, %v1919_v27 }
  0x56   : > { %2084 = vmatprep.mubr.msk.bf16.mxu0 %vm268_vm1, %v1920_v59 }
  0x5d   : > { %2085 = vmatmul.mubr.msk.bf16.gmra.mxu0 %vm268_vm1, %v1921_v2 }
  0xd2   : > { %v2002_v5 = vpop.f32.mrf.mxu0 }
  0xd3   : > { %v2006_v3 = vpop.f32.mrf.mxu1 }
  0xd4   : > { %v319_v8 = vpop.f32.mrf.mxu0 }
  0xd5   : > { %v335_v4 = vpop.f32.mrf.mxu1 }
  0xd6   : > { %v2003_v11 = vpop.f32.mrf.mxu0 }
  0xd7   : > { %v2438_v6 = vpop.f32.mrf.mxu1 }
  0xd8   : > { %v322_v15 = vpop.f32.mrf.mxu0 }
  0xd9   : > { %v2440_v7 = vpop.f32.mrf.mxu1 }
  0xdb   : > { %v2012_v9 = vpop.f32.mrf.mxu1 }
  0xdc   : > { %v428_v14 = vadd.f32 %v2012_v9, %v2002_v5 }
  0xdd   : > { %v419_v10 = vpop.f32.mrf.mxu1 }
  0xde   : > { %v420_v47 = vadd.f32 %v419_v10, %v319_v8 }
  0xdf   : > { %v2013_v12 = vpop.f32.mrf.mxu1 }
  0xe0   : > { %v431_v50 = vadd.f32 %v2013_v12, %v2003_v11 }
  0xe1   : > { %v422_v13 = vpop.f32.mrf.mxu1 }
  0xe2   : > { %v423_v54 = vadd.f32 %v422_v13, %v322_v15 }
  0xe3   : > { %v2016_v16 = vpop.f32.mrf.mxu1  ;;  %v2022_v43 = vpop.f32.mrf.mxu0 }
  0xe4   : > { %v677_v49 = vadd.f32 %v2022_v43, %v428_v14  ;;  %v444_v61 = vadd.f32 %v2016_v16, %v2006_v3 }
  0xe5   : > { %v435_v17 = vpop.f32.mrf.mxu1  ;;  %v644_v18 = vpop.f32.mrf.mxu0 }
  0xe6   : > { %v675_v53 = vadd.f32 %v644_v18, %v420_v47  ;;  %v436_v1 = vadd.f32 %v435_v17, %v335_v4 }
  0xe7   : > { %v2017_v19 = vpop.f32.mrf.mxu1  ;;  %v2023_v20 = vpop.f32.mrf.mxu0 }
  0xe8   : > { %v678_v56 = vadd.f32 %v2023_v20, %v431_v50  ;;  %v447_v11 = vadd.f32 %v2017_v19, %v2438_v6 }
  0xe9   : > { %v438_v21 = vpop.f32.mrf.mxu1  ;;  %v647_v22 = vpop.f32.mrf.mxu0 }
  0xea   : > { %v676_v60 = vadd.f32 %v647_v22, %v423_v54  ;;  %v439_v22 = vadd.f32 %v438_v21, %v2440_v7 }
  0xeb   : > { %v2032_v23 = vpop.f32.mrf.mxu1 }
  0xec   : > { %v796_v38 = vadd.f32 %v2032_v23, %v677_v49 }
  0xed   : > { %v763_v24 = vpop.f32.mrf.mxu1  ;;  %v2026_v25 = vpop.f32.mrf.mxu0 }
  0xee   : > { %v794_v57 = vadd.f32 %v763_v24, %v675_v53  ;;  %v681_v13 = vadd.f32 %v2026_v25, %v444_v61 }
  0xef   : > { %v2033_v26 = vpop.f32.mrf.mxu1  ;;  %v660_v28 = vpop.f32.mrf.mxu0 }
  0xf0   : > { %v797_v63 = vadd.f32 %v2033_v26, %v678_v56  ;;  %v679_v20 = vadd.f32 %v660_v28, %v436_v1 }
  0xf1   : > { %v766_v29 = vpop.f32.mrf.mxu1  ;;  %v2027_v30 = vpop.f32.mrf.mxu0 }
  0xf2   : > { %v795_v8 = vadd.f32 %v766_v29, %v676_v60  ;;  %v682_v26 = vadd.f32 %v2027_v30, %v447_v11 }
  0xf3   : > { %v2036_v31 = vpop.f32.mrf.mxu1  ;;  %v663_v32 = vpop.f32.mrf.mxu0 }
  0xf4   : > { %v800_v23 = vadd.f32 %v2036_v31, %v681_v13 }
  0xf5   : > { %v779_v33 = vpop.f32.mrf.mxu1  ;;  %v2042_v34 = vpop.f32.mrf.mxu0 }
  0xf6   : > { %v915_v62 = vadd.f32 %v2042_v34, %v796_v38  ;;  %v798_v29 = vadd.f32 %v779_v33, %v679_v20 }
  0xf7   : > { %v2037_v35 = vpop.f32.mrf.mxu1  ;;  %v882_v36 = vpop.f32.mrf.mxu0 }
  0xf8   : > { %v913_v5 = vadd.f32 %v882_v36, %v794_v57 }
  0xf9   : > { %v2043_v37 = vpop.f32.mrf.mxu0  ;;  %v2442_v39 = vpop.f32.mrf.mxu1 }
  0xfa   : > { %v916_v15 = vadd.f32 %v2043_v37, %v797_v63  ;;  %v680_v37 = vadd.f32 %v663_v32, %v439_v22 }
  0xfb   : > { %v885_v27 = vpop.f32.mrf.mxu0  ;;  %v2052_v41 = vpop.f32.mrf.mxu1 }
  0xfc   : > { %v1145_v9 = vadd.f32 %v2052_v41, %v915_v62  ;;  %v914_v16 = vadd.f32 %v885_v27, %v795_v8  ;;  %v801_v41 = vadd.f32 %v2037_v35, %v682_v26  ;;  %v799_v27 = vadd.f32 %v2442_v39, %v680_v37  ;;  %v1926_v35 = vld [vmem:[%s2474_s2] ss:$0 sm:$0xff] }
  0xfd   : > { %v2046_v40 = vpop.f32.mrf.mxu0  ;;  %v1112_v44 = vpop.f32.mrf.mxu1 }
  0xfe   : > { %v1143_v43 = vadd.f32 %v1112_v44, %v913_v5  ;;  %v919_v28 = vadd.f32 %v2046_v40, %v800_v23 }
  0xff   : > { %v898_v42 = vpop.f32.mrf.mxu0  ;;  %v2053_v46 = vpop.f32.mrf.mxu1 }
 0x100   : > { %v1146_v4 = vadd.f32 %v2053_v46, %v916_v15  ;;  %v917_v31 = vadd.f32 %v898_v42, %v798_v29 }
 0x101   : > { %v2444_v45 = vpop.f32.mrf.mxu0  ;;  %v1115_v51 = vpop.f32.mrf.mxu1 }
 0x102   : > { %v1144_v6 = vadd.f32 %v1115_v51, %v914_v16  ;;  %v920_v32 = vadd.f32 %v2444_v45, %v801_v41 }
 0x103   : > { %v2446_v48 = vpop.f32.mrf.mxu0  ;;  %v2056_v58 = vpop.f32.mrf.mxu1 }
 0x104   : > { %v1149_v46 = vadd.f32 %v2056_v58, %v919_v28  ;;  %v918_v39 = vadd.f32 %v2446_v48, %v799_v27 }
 0x105   : > { %v2062_v52 = vpop.f32.mrf.mxu0  ;;  %v1128_v0 = vpop.f32.mrf.mxu1 }
 0x106   : > { %v1264_v24 = vadd.f32 %v2062_v52, %v1145_v9  ;;  %v1147_v51 = vadd.f32 %v1128_v0, %v917_v31 }
 0x107   : > { %v1231_v55 = vpop.f32.mrf.mxu0  ;;  %v2057_v10 = vpop.f32.mrf.mxu1 }
 0x108   : > { %v1262_v36 = vadd.f32 %v1231_v55, %v1143_v43  ;;  %v1150_v54 = vadd.f32 %v2057_v10, %v920_v32 }
 0x109   : > { %v2063_v59 = vpop.f32.mrf.mxu0  ;;  %v1131_v18 = vpop.f32.mrf.mxu1 }
 0x10a   : > { %v1265_v14 = vadd.f32 %v2063_v59, %v1146_v4  ;;  %v1148_v45 = vadd.f32 %v1131_v18, %v918_v39 }
 0x10b   : > { %v1234_v2 = vpop.f32.mrf.mxu0  ;;  %v2072_v17 = vpop.f32.mrf.mxu1 }
 0x10c   : > { %v1383_v19 = vadd.f32 %v2072_v17, %v1264_v24  ;;  %v1263_v33 = vadd.f32 %v1234_v2, %v1144_v6 }
 0x10d   : > { %v2066_v12 = vpop.f32.mrf.mxu0  ;;  %v1350_v25 = vpop.f32.mrf.mxu1 }
 0x10e   : > { %v1381_v7 = vadd.f32 %v1350_v25, %v1262_v36  ;;  %v1268_v55 = vadd.f32 %v2066_v12, %v1149_v46 }
 0x10f   : > { %v1247_v3 = vpop.f32.mrf.mxu0  ;;  %v2073_v21 = vpop.f32.mrf.mxu1 }
 0x110   : > { %v1384_v49 = vadd.f32 %v2073_v21, %v1265_v14  ;;  %v1266_v61 = vadd.f32 %v1247_v3, %v1147_v51 }
 0x111   : > { %v2067_v34 = vpop.f32.mrf.mxu0  ;;  %v1353_v50 = vpop.f32.mrf.mxu1 }
 0x112   : > { %v1382_v42 = vadd.f32 %v1353_v50, %v1263_v33  ;;  %v1269_v2 = vadd.f32 %v2067_v34, %v1150_v54 }
 0x113   : > { %v1250_v44 = vpop.f32.mrf.mxu0  ;;  %v2076_v53 = vpop.f32.mrf.mxu1 }
 0x114   : > { %v1387_v0 = vadd.f32 %v2076_v53, %v1268_v55  ;;  %v1267_v10 = vadd.f32 %v1250_v44, %v1148_v45 }
 0x115   : > { %v2082_v30 = vpop.f32.mrf.mxu0  ;;  %v1366_v58 = vpop.f32.mrf.mxu1 }
 0x116   : > { %v1613_v47 = vadd.f32 %v2082_v30, %v1383_v19  ;;  %v1385_v48 = vadd.f32 %v1366_v58, %v1266_v61 }
 0x117   : > { %v1580_v40 = vpop.f32.mrf.mxu0  ;;  %v2077_v1 = vpop.f32.mrf.mxu1 }
 0x118   : > { %v1611_v52 = vadd.f32 %v1580_v40, %v1381_v7  ;;  %v1628_v56 = vadd.f32 %v1926_v35, %v1613_v47  ;;  %v1388_v20 = vadd.f32 %v2077_v1, %v1269_v2 }
 0x119   : > { %v2083_v38 = vpop.f32.mrf.mxu0  ;;  %v1369_v13 = vpop.f32.mrf.mxu1 }
 0x11a   : > { %v1614_v57 = vadd.f32 %v2083_v38, %v1384_v49  ;;  %v1626_v59 = vadd.f32 %v1926_v35, %v1611_v52  ;;  %v1636_v5 = vmax.f32 %v1628_v56, 0.0  ;;  %v1386_v23 = vadd.f32 %v1369_v13, %v1267_v10 }
 0x11b   : > { %v1583_v60 = vpop.f32.mrf.mxu0 }
 0x11c   : > { %v1629_v62 = vadd.f32 %v1926_v35, %v1614_v57  ;;  %v1612_v63 = vadd.f32 %v1583_v60, %v1382_v42  ;;  %v1634_v11 = vmax.f32 %v1626_v59, 0.0 }
 0x11d   : > { %v2086_v12 = vpop.f32.mrf.mxu0 }
 0x11e   : > { %v1637_v8 = vmax.f32 %v1629_v62, 0.0  ;;  %v1627_v9 = vadd.f32 %v1926_v35, %v1612_v63  ;;  %v1617_v18 = vadd.f32 %v2086_v12, %v1387_v0 }
 0x11f   : > { %v1596_v22 = vpop.f32.mrf.mxu0 }
 0x120   : > { %v1938_v15 = vpack.c.bf16 %v1637_v8, %v1636_v5  ;;  %v1635_v43 = vmax.f32 %v1627_v9, 0.0  ;;  %v1615_v16 = vadd.f32 %v1596_v22, %v1385_v48  ;;  %v1632_v4 = vadd.f32 %v1926_v35, %v1617_v18 }
 0x121   : > { %v2087_v24 = vpop.f32.mrf.mxu0 }
 0x122   : > { %1950 = vst [vmem:[%s226_s21 + $0x8] sm:$0xff] %v1938_v15   ;;  %v1933_v3 = vpack.c.bf16 %v1635_v43, %v1634_v11  ;;  %v1618_v17 = vadd.f32 %v2087_v24, %v1388_v20  ;;  %v1630_v29 = vadd.f32 %v1926_v35, %v1615_v16  ;;  %v1640_v6 = vmax.f32 %v1632_v4, 0.0 }
 0x123   : > { %v1599_v26 = vpop.f32.mrf.mxu0 }
 0x124   : > { %1934 = vst [vmem:[%s226_s21] sm:$0xff] %v1933_v3   ;;  %v1633_v34 = vadd.f32 %v1926_v35, %v1618_v17  ;;  %v1616_v36 = vadd.f32 %v1599_v26, %v1386_v23  ;;  %v1638_v37 = vmax.f32 %v1630_v29, 0.0 }
 0x126   : > { %v1641_v19 = vmax.f32 %v1633_v34, 0.0  ;;  %v1631_v25 = vadd.f32 %v1926_v35, %v1616_v36 }
 0x128   : > { %v1948_v41 = vpack.c.bf16 %v1641_v19, %v1640_v6  ;;  %v1639_v44 = vmax.f32 %v1631_v25, 0.0 }
 0x12a   : > { %1952 = vst [vmem:[%s226_s21 + $0x18] sm:$0xff] %v1948_v41   ;;  %v1943_v28 = vpack.c.bf16 %v1639_v44, %v1638_v37 }
 0x12c   : > { %1951 = vst [vmem:[%s226_s21 + $0x10] sm:$0xff] %v1943_v28  }
 0x12d PF: > { %s13_s14 = sadd.s32 1, %s2171_s14   ;;  %s2478_s12 = smov %s2167_s13 }
 0x12e   : > { %p10_p6 = scmp.ge.s32.totalorder %s13_s14, 4   ;;  %s2479_s13 = smov %s2481_s15 }
 0x130   :  { %12 = sbr.rel (!%p10_p6) target bundleno = 2 (0x2), region = 81 }

// kernel: block_forward.11
= control target key start
LH: loop header
LB: loop body
LE: loop exit
PB: predicated region body
PF: predicated region fallthrough
CT: control target
= control target key end

     0   :  { %s664_s12 = smov 0   ;;  %s666_s13 = smov 0   ;;  %s734_s0 = inlined_call_operand.vmem [shape: bf16[2,8,8,128], index: 0, kind: input, shape index: {}]   ;;  %s735_s1 = inlined_call_operand.vmem [shape: bf16[1,128,128], index: 1, kind: input, shape index: {}]   ;;  %s736_s2 = inlined_call_operand.vmem [shape: f32[1,128], index: 2, kind: input, shape index: {}]   ;;  %s737_s3 = inlined_call_operand.vmem [shape: f32[2,8,8,128], index: 3, kind: output, shape index: {}]  }
   0x1   :  { %s668_s14 = smov 0  }
   0x2 LB: > { %s25_s15 = sadd.s32 1, %s638_s13  ;;  %p510_p0 = scmp.ge.s32.totalorder %s642_s14, 1  ;;  %s642_s14 = sphi %s668_s14, %s13_s14   ;;  %s638_s13 = sphi %s666_s13, %s739_s13   ;;  %s634_s12 = sphi %s664_s12, %s738_s12  }
   0x3   : > { %p27_p1 = scmp.ge.s32.totalorder %s25_s15, 2  ;;  %p168_p2 = scmp.lt.s32.totalorder %s642_s14, 3 }
   0x5   : > { %s741_s15 = smov (%p27_p1, %s25_s15), 0  ;;  %p169_p3 = pnand %p510_p0, %p168_p2 }
   0x6   : > { %p202_p4 = scmp.lt.s32.totalorder (!%p169_p3), %s634_s12, 1 }
   0x7   : > { %172 = sbr.rel (%p169_p3) target bundleno = 247 (0xf7), region = 32 }
   0xc   : > { %v608_v0 = vld [vmem:[%s735_s1 + $0x38] sm:$0xff]   ;;  %v609_v1 = vld [vmem:[%s735_s1 + $0x30] sm:$0xff]   ;;  %s743_s12 = smov (!%p202_p4, %s634_s12), 1  ;;  %v610_v2 = vld [vmem:[%s735_s1 + $0x28] sm:$0xff]  }
   0xd   : > { %544 = vmatprep.subr.bf16.mxu0 %v608_v0  ;;  %568 = vmatprep.subr.bf16.mxu1 %v608_v0  ;;  %s530_s22 = sshll.u32 %s743_s12, 5  ;;  %v611_v3 = vld [vmem:[%s735_s1 + $0x20] sm:$0xff]   ;;  %v612_v6 = vld [vmem:[%s735_s1 + $0x18] sm:$0xff]   ;;  %v613_v7 = vld [vmem:[%s735_s1 + $0x10] sm:$0xff]   ;;  %s531_s9 = sshll.u32 %s743_s12, 6 }
   0xe   : > { %545 = vmatpush3.bf16.msra.mxu0 %v608_v0  ;;  %576 = vmatpush3.bf16.msra.mxu1 %v608_v0  ;;  %s697_s25 = scalar_lea.vmem %s734_s0, %s530_s22  ;;  %v614_v8 = vld [vmem:[%s735_s1 + $0x8] sm:$0xff]   ;;  %v615_v9 = vld [vmem:[%s735_s1] sm:$0xff]   ;;  %s221_s18 = scalar_lea.vmem %s737_s3, %s531_s9 }
   0xf   : > { %546 = vmatprep.subr.bf16.mxu0 %v609_v1  ;;  %569 = vmatprep.subr.bf16.mxu1 %v609_v1  ;;  %v616_v4 = vld [vmem:[%s697_s25] sm:$0xff]   ;;  %v617_v5 = vld [vmem:[%s697_s25 + $0x10] sm:$0xff]   ;;  %v618_v10 = vld [vmem:[%s697_s25 + $0x8] sm:$0xff]  }
  0x10   : > { %560 = vmatprep.mubr.bf16.mxu0 %v616_v4  ;;  %564 = vmatprep.mubr.bf16.mxu1 %v617_v5  ;;  %v619_v11 = vld [vmem:[%s697_s25 + $0x18] sm:$0xff]   ;;  %v515_v12 = vld [vmem:[%s736_s2] ss:$0 sm:$0xff] }
  0x12   : > { %547 = vmatpush3.bf16.msra.mxu0 %v609_v1  ;;  %577 = vmatpush3.bf16.msra.mxu1 %v609_v1 }
  0x13   : > { %548 = vmatprep.subr.bf16.mxu0 %v610_v2  ;;  %570 = vmatprep.subr.bf16.mxu1 %v610_v2 }
  0x16   : > { %549 = vmatpush3.bf16.msra.mxu0 %v610_v2  ;;  %578 = vmatpush3.bf16.msra.mxu1 %v610_v2 }
  0x17   : > { %550 = vmatprep.subr.bf16.mxu0 %v611_v3  ;;  %571 = vmatprep.subr.bf16.mxu1 %v611_v3 }
  0x1a   : > { %551 = vmatpush3.bf16.msra.mxu0 %v611_v3  ;;  %579 = vmatpush3.bf16.msra.mxu1 %v611_v3 }
  0x1b   : > { %552 = vmatprep.subr.bf16.mxu0 %v612_v6  ;;  %572 = vmatprep.subr.bf16.mxu1 %v612_v6 }
  0x1e   : > { %553 = vmatpush3.bf16.msra.mxu0 %v612_v6  ;;  %580 = vmatpush3.bf16.msra.mxu1 %v612_v6 }
  0x1f   : > { %554 = vmatprep.subr.bf16.mxu0 %v613_v7  ;;  %573 = vmatprep.subr.bf16.mxu1 %v613_v7 }
  0x22   : > { %555 = vmatpush3.bf16.msra.mxu0 %v613_v7  ;;  %581 = vmatpush3.bf16.msra.mxu1 %v613_v7 }
  0x23   : > { %556 = vmatprep.subr.bf16.mxu0 %v614_v8  ;;  %574 = vmatprep.subr.bf16.mxu1 %v614_v8 }
  0x26   : > { %557 = vmatpush3.bf16.msra.mxu0 %v614_v8  ;;  %582 = vmatpush3.bf16.msra.mxu1 %v614_v8 }
  0x27   : > { %558 = vmatprep.subr.bf16.mxu0 %v615_v9  ;;  %575 = vmatprep.subr.bf16.mxu1 %v615_v9 }
  0x2a   : > { %559 = vmatpush3.bf16.msra.mxu0 %v615_v9  ;;  %583 = vmatpush3.bf16.msra.mxu1 %v615_v9 }
  0x2d   : > { %561 = vmatmul.mubr.bf16.vlgmr.msra.gmra.mxu0 %v618_v10  ;;  %565 = vmatmul.mubr.bf16.vlgmr.msra.gmra.mxu1 %v619_v11 }
  0xed   : > { %v562_v13 = vpop.f32.mrf.mxu0  ;;  %v566_v14 = vpop.f32.mrf.mxu1 }
  0xee   : > { %v369_v15 = vadd.f32 %v562_v13, %v515_v12  ;;  %v385_v16 = vadd.f32 %v566_v14, %v515_v12 }
  0xef   : > { %v360_v17 = vpop.f32.mrf.mxu0  ;;  %v376_v18 = vpop.f32.mrf.mxu1 }
  0xf0   : > { %393 = vst [vmem:[%s221_s18 + $0x10] sm:$0xff] %v369_v15  ;;  %397 = vst [vmem:[%s221_s18 + $0x30] sm:$0xff] %v385_v16  ;;  %v361_v19 = vadd.f32 %v515_v12, %v360_v17  ;;  %v377_v20 = vadd.f32 %v515_v12, %v376_v18 }
  0xf1   : > { %v563_v21 = vpop.f32.mrf.mxu0  ;;  %v567_v22 = vpop.f32.mrf.mxu1 }
  0xf2   : > { %391 = vst [vmem:[%s221_s18] sm:$0xff] %v361_v19  ;;  %395 = vst [vmem:[%s221_s18 + $0x20] sm:$0xff] %v377_v20  ;;  %v372_v23 = vadd.f32 %v563_v21, %v515_v12  ;;  %v388_v24 = vadd.f32 %v567_v22, %v515_v12 }
  0xf3   : > { %v363_v25 = vpop.f32.mrf.mxu0  ;;  %v379_v26 = vpop.f32.mrf.mxu1 }
  0xf4   : > { %394 = vst [vmem:[%s221_s18 + $0x18] sm:$0xff] %v372_v23  ;;  %398 = vst [vmem:[%s221_s18 + $0x38] sm:$0xff] %v388_v24  ;;  %v364_v27 = vadd.f32 %v515_v12, %v363_v25  ;;  %v380_v28 = vadd.f32 %v515_v12, %v379_v26 }
  0xf6   : > { %392 = vst [vmem:[%s221_s18 + $0x8] sm:$0xff] %v364_v27  ;;  %396 = vst [vmem:[%s221_s18 + $0x28] sm:$0xff] %v380_v28 }
  0xf7 PF: > { %s13_s14 = sadd.s32 1, %s642_s14   ;;  %s738_s12 = smov %s638_s13 }
  0xf8   : > { %p10_p5 = scmp.ge.s32.totalorder %s13_s14, 4   ;;  %s739_s13 = smov %s741_s15 }
  0xfa   :  { %12 = sbr.rel (!%p10_p5) target bundleno = 2 (0x2), region = 68 }

// kernel: block_forward.7
= control target key start
LH: loop header
LB: loop body
LE: loop exit
PB: predicated region body
PF: predicated region fallthrough
CT: control target
= control target key end

     0   :  { %s3190_s12 = smov 0   ;;  %s3192_s13 = smov 0   ;;  %s3752_s0 = inlined_call_operand.vmem [shape: bf16[2,10,10,128], index: 0, kind: input, shape index: {}]   ;;  %s3753_s1 = inlined_call_operand.vmem [shape: bf16[9,128,128], index: 1, kind: input, shape index: {}]   ;;  %s3754_s2 = inlined_call_operand.vmem [shape: f32[1,128], index: 2, kind: input, shape index: {}]   ;;  %s3755_s3 = inlined_call_operand.vmem [shape: bf16[2,8,8,128], index: 3, kind: output, shape index: {}]  }
   0x1   :  { %s3194_s14 = smov 0  }
   0x2 LB: > { %s25_s15 = sadd.s32 1, %s3164_s13  ;;  %p2342_p0 = scmp.ge.s32.totalorder %s3168_s14, 1  ;;  %s3168_s14 = sphi %s3194_s14, %s13_s14   ;;  %s3164_s13 = sphi %s3192_s13, %s3767_s13   ;;  %s3160_s12 = sphi %s3190_s12, %s3766_s12  }
   0x3   : > { %p27_p1 = scmp.ge.s32.totalorder %s25_s15, 2  ;;  %p168_p2 = scmp.lt.s32.totalorder %s3168_s14, 3 }
   0x5   : > { %s3769_s15 = smov (%p27_p1, %s25_s15), 0  ;;  %p169_p3 = pnand %p2342_p0, %p168_p2 }
   0x7   : > { %172 = sbr.rel (%p169_p3) target bundleno = 382 (0x17e), region = 32 }
   0xc   : > { %v3062_v0 = vld [vmem:[%s3753_s1 + $0x78] sm:$0xff]   ;;  %p202_p4 = scmp.lt.s32.totalorder %s3160_s12, 1  ;;  %v3064_v2 = vld [vmem:[%s3753_s1 + $0x70] sm:$0xff]   ;;  %v3066_v4 = vld [vmem:[%s3753_s1 + $0x68] sm:$0xff]   ;;  %vm255_vm0 = vsmask.f32 3328 }
   0xd   : > { %v3063_v1 = vld [vmem:[%s3753_s1 + $0x38] sm:$0xff]   ;;  %2805 = vmatprep.subr.bf16.mxu0 %v3062_v0  ;;  %v3065_v3 = vld [vmem:[%s3753_s1 + $0x30] sm:$0xff]   ;;  %v3067_v5 = vld [vmem:[%s3753_s1 + $0x28] sm:$0xff]   ;;  %vm256_vm1 = vsmask.f32 7440  ;;  %vm677_vm3 = vcmask 1042432  }
   0xe   : > { %2829 = vmatprep.subr.bf16.mxu1 %v3063_v1  ;;  %2806 = vmatpush3.bf16.msra.mxu0 %v3062_v0  ;;  %s3771_s12 = smov (!%p202_p4, %s3160_s12), 1  ;;  %v3068_v6 = vld [vmem:[%s3753_s1 + $0x60] sm:$0xff]   ;;  %v3070_v8 = vld [vmem:[%s3753_s1 + $0x58] sm:$0xff]   ;;  %v3072_v10 = vld [vmem:[%s3753_s1 + $0x50] sm:$0xff]   ;;  %vm678_vm4 = vcmask 1046532  }
   0xf   : > { %2830 = vmatpush3.bf16.msra.mxu1 %v3063_v1  ;;  %2807 = vmatprep.subr.bf16.mxu0 %v3064_v2  ;;  %v3069_v7 = vld [vmem:[%s3753_s1 + $0x20] sm:$0xff]   ;;  %s3037_s5 = smul.u32 80, %s3771_s12  ;;  %v3071_v9 = vld [vmem:[%s3753_s1 + $0x18] sm:$0xff]   ;;  %v3073_v14 = vld [vmem:[%s3753_s1 + $0x10] sm:$0xff]  }
  0x10   : > { %2831 = vmatprep.subr.bf16.mxu1 %v3065_v3  ;;  %v3074_v17 = vld [vmem:[%s3753_s1 + $0x48] sm:$0xff]   ;;  %vm3287_vm2 = vmor %vm255_vm0, %vm256_vm1  ;;  %v3076_v46 = vld [vmem:[%s3753_s1 + $0x40] sm:$0xff]  }
  0x11   : > { %s3244_s16 = scalar_lea.vmem %s3752_s0, %s3037_s5  ;;  %v3075_v23 = vld [vmem:[%s3753_s1 + $0x8] sm:$0xff]   ;;  %v3077_v50 = vld [vmem:[%s3753_s1] sm:$0xff]   ;;  %v3080_v59 = vld [vmem:[%s3753_s1 + $0xb8] sm:$0xff]   ;;  %s2673_s5 = sshll.u32 %s3771_s12, 5 }
  0x12   : > { %2808 = vmatpush3.bf16.msra.mxu0 %v3064_v2  ;;  %v223_v11 = vld [vmem:[%s3244_s16] sm:$0xf]  ;;  %v224_v12 = vld [vmem:[%s3244_s16 + $0x8] sm:$0xf]  ;;  %v3252_v13 = vld [vmem:[%s3244_s16 + $0x4] sm:$0x1]  ;;  %s221_s8 = scalar_lea.vmem %s3755_s3, %s2673_s5 }
  0x13   : > { %2832 = vmatpush3.bf16.msra.mxu1 %v3065_v3  ;;  %2809 = vmatprep.subr.bf16.mxu0 %v3066_v4  ;;  %v3258_v15 = vld [vmem:[%s3244_s16 + $0xc] sm:$0x1]  ;;  %v2374_v16 = vcombine.low %v223_v11, %v224_v12  ;;  %v259_v18 = vshrl.u32 %v223_v11, 16  ;;  %v262_v19 = vshll.u32 %v223_v11, 16  ;;  %v268_v20 = vshll.u32 %v3252_v13, 16  ;;  %v3081_v62 = vld [vmem:[%s3753_s1 + $0xf8] sm:$0xff]   ;;  %vm3370_vm5 = vmor %vm677_vm3, %vm678_vm4 }
  0x14   : > { %2833 = vmatprep.subr.bf16.mxu1 %v3067_v5  ;;  %v273_v21 = vshrl.u32 %v224_v12, 16  ;;  %v3265_v22 = vld [vmem:[%s3244_s16 + $0x10] sm:$0xf]  ;;  %v276_v24 = vshll.u32 %v224_v12, 16  ;;  %v282_v25 = vshll.u32 %v3258_v15, 16  ;;  %v3085_v11 = vld [vmem:[%s3753_s1 + $0xe8] sm:$0xff]  }
  0x15   : > { %2845 = vmatprep.mubr.bf16.mxu1 %v2374_v16  ;;  %v3272_v26 = vld [vmem:[%s3244_s16 + $0x18] sm:$0xf]  ;;  %v261_v27 = vrot.slane %v259_v18, 4  ;;  %v264_v28 = vrot.slane %v262_v19, 5  ;;  %v270_v29 = vrot.slane %v268_v20, 5  ;;  %v287_v35 = vshrl.u32 %v3265_v22, 16 }
  0x16   : > { %2810 = vmatpush3.bf16.msra.mxu0 %v3066_v4  ;;  %v275_v30 = vrot.slane %v273_v21, 4  ;;  %v3275_v31 = vld [vmem:[%s3244_s16 + $0x14] sm:$0x1]  ;;  %v278_v32 = vrot.slane %v276_v24, 5  ;;  %v284_v33 = vrot.slane %v282_v25, 5  ;;  %v290_v36 = vshll.u32 %v3265_v22, 16 }
  0x17   : > { %2834 = vmatpush3.bf16.msra.mxu1 %v3067_v5  ;;  %2811 = vmatprep.subr.bf16.mxu0 %v3068_v6  ;;  %v3278_v34 = vld [vmem:[%s3244_s16 + $0x1c] sm:$0x1]  ;;  %v265_v37 = vor.u32 %v264_v28, %v261_v27  ;;  %v296_v38 = vshll.u32 %v3275_v31, 16  ;;  %v301_v39 = vshrl.u32 %v3272_v26, 16  ;;  %v304_v40 = vshll.u32 %v3272_v26, 16  ;;  %v3082_v3 = vld [vmem:[%s3753_s1 + $0xb0] sm:$0xff]  }
  0x18   : > { %2835 = vmatprep.subr.bf16.mxu1 %v3069_v7  ;;  %v279_v42 = vor.u32 %v278_v32, %v275_v30  ;;  %v289_v43 = vrot.slane %v287_v35, 4  ;;  %v292_v44 = vrot.slane %v290_v36, 5  ;;  %v310_v45 = vshll.u32 %v3278_v34, 16  ;;  %v3083_v5 = vld [vmem:[%s3753_s1 + $0xf0] sm:$0xff]   ;;  %v3343_v28 = vld [vmem:[%s3244_s16 + $0x3c] sm:$0x1] }
  0x19   : > { %v266_v47 = vrot.slane %v265_v37, 4  ;;  %v303_v48 = vrot.slane %v301_v39, 4  ;;  %v306_v49 = vrot.slane %v304_v40, 5  ;;  %v298_v53 = vrot.slane %v296_v38, 5  ;;  %v229_v18 = vld [vmem:[%s3244_s16 + $0x30] sm:$0xf] }
  0x1a   : > { %2812 = vmatpush3.bf16.msra.mxu0 %v3068_v6  ;;  %v280_v51 = vrot.slane %v279_v42, 4  ;;  %v293_v52 = vor.u32 %v292_v44, %v289_v43  ;;  %v312_v56 = vrot.slane %v310_v45, 5  ;;  %v2375_v2 = vcombine.low %v3265_v22, %v3272_v26  ;;  %v227_v6 = vld [vmem:[%s3244_s16 + $0x20] sm:$0xf]  ;;  %v230_v22 = vld [vmem:[%s3244_s16 + $0x38] sm:$0xf] }
  0x1b   : > { %2836 = vmatpush3.bf16.msra.mxu1 %v3069_v7  ;;  %2813 = vmatprep.subr.bf16.mxu0 %v3070_v8  ;;  %v271_v54 = vsel %vm3287_vm2, %v266_v47, %v270_v29  ;;  %v307_v55 = vor.u32 %v306_v49, %v303_v48  ;;  %v682_v4 = vrot.slane %v3252_v13, 5  ;;  %v3084_v7 = vld [vmem:[%s3753_s1 + $0xa8] sm:$0xff]   ;;  %v315_v12 = vshrl.u32 %v227_v6, 16  ;;  %v3086_v39 = vld [vmem:[%s3753_s1 + $0xa0] sm:$0xff]   ;;  %v656_v13 = vld [vmem:[%s3244_s16 + $0x18] sm:$0xe] }
  0x1c   : > { %2837 = vmatprep.subr.bf16.mxu1 %v3071_v9  ;;  %v285_v57 = vsel %vm3287_vm2, %v280_v51, %v284_v33  ;;  %v294_v58 = vrot.slane %v293_v52, 4  ;;  %v343_v32 = vshrl.u32 %v229_v18, 16  ;;  %v346_v33 = vshll.u32 %v229_v18, 16  ;;  %v3087_v45 = vld [vmem:[%s3753_s1 + $0xe0] sm:$0xff]  }
  0x1d   : > { %v2362_v60 = vcombine.low %v271_v54, %v285_v57  ;;  %v308_v61 = vrot.slane %v307_v55, 4  ;;  %v317_v24 = vrot.slane %v315_v12, 4  ;;  %v357_v37 = vshrl.u32 %v230_v22, 16  ;;  %v3088_v57 = vld [vmem:[%s3753_s1 + $0x98] sm:$0xff]  }
  0x1e   : > { %2814 = vmatpush3.bf16.msra.mxu0 %v3070_v8  ;;  %v299_v63 = vsel %vm3287_vm2, %v294_v58, %v298_v53  ;;  %v228_v8 = vld [vmem:[%s3244_s16 + $0x28] sm:$0xf]  ;;  %v360_v38 = vshll.u32 %v230_v22, 16  ;;  %v345_v42 = vrot.slane %v343_v32, 4  ;;  %v348_v43 = vrot.slane %v346_v33, 5 }
  0x1f   : > { %2838 = vmatpush3.bf16.msra.mxu1 %v3071_v9  ;;  %2815 = vmatprep.subr.bf16.mxu0 %v3072_v10  ;;  %v313_v0 = vsel %vm3287_vm2, %v308_v61, %v312_v56  ;;  %v3327_v9 = vld [vmem:[%s3244_s16 + $0x24] sm:$0x1]  ;;  %v332_v19 = vshll.u32 %v228_v8, 16  ;;  %v2376_v21 = vcombine.low %v227_v6, %v228_v8  ;;  %v366_v44 = vshll.u32 %v3343_v28, 16 }
  0x20   : > { %2839 = vmatprep.subr.bf16.mxu1 %v3073_v14  ;;  %2821 = vmatprep.mubr.bf16.mxu0 %v2362_v60  ;;  %v2363_v1 = vcombine.low %v299_v63, %v313_v0  ;;  %v324_v16 = vshll.u32 %v3327_v9, 16  ;;  %v359_v47 = vrot.slane %v357_v37, 4  ;;  %v362_v48 = vrot.slane %v360_v38, 5  ;;  %v653_v63 = vld [vmem:[%s3244_s16] sm:$0xe] }
  0x21   : > { %v334_v29 = vrot.slane %v332_v19, 5  ;;  %v2377_v52 = vcombine.low %v229_v18, %v230_v22  ;;  %v686_v53 = vrot.slane %v3258_v15, 5  ;;  %v368_v56 = vrot.slane %v366_v44, 5  ;;  %v3089_v15 = vld [vmem:[%s3753_s1 + $0xd8] sm:$0xff]   ;;  %v654_v0 = vld [vmem:[%s3244_s16 + $0x8] sm:$0xe] }
  0x22   : > { %2816 = vmatpush3.bf16.msra.mxu0 %v3072_v10  ;;  %v3330_v10 = vld [vmem:[%s3244_s16 + $0x2c] sm:$0x1]  ;;  %v326_v26 = vrot.slane %v324_v16, 5  ;;  %v363_v55 = vor.u32 %v362_v48, %v359_v47  ;;  %v655_v18 = vld [vmem:[%s3244_s16 + $0x10] sm:$0xe]  ;;  %v690_v19 = vrot.slane %v3275_v31, 5 }
  0x23   : > { %2840 = vmatpush3.bf16.msra.mxu1 %v3073_v14  ;;  %2817 = vmatprep.subr.bf16.mxu0 %v3074_v17  ;;  %v318_v14 = vshll.u32 %v227_v6, 16  ;;  %v338_v20 = vshll.u32 %v3330_v10, 16  ;;  %v3094_v16 = vld [vmem:[%s3753_s1 + $0x88] sm:$0xff]   ;;  %v2389_v22 = vrot.slane %v656_v13, 9  ;;  %v3097_v31 = vld [vmem:[%s3753_s1 + $0xc0] sm:$0xff]  }
  0x24   : > { %2841 = vmatprep.subr.bf16.mxu1 %v3075_v23  ;;  %v364_v61 = vrot.slane %v363_v55, 4  ;;  %v3099_v37 = vld [vmem:[%s3244_s16 + $0x18] ss:$8 sps:$4 sm:$0xff]   ;;  %v3106_v48 = vld [vmem:[%s3244_s16 + $0x28] ss:$8 sps:$4 sm:$0xff]  }
  0x25   : > { %v320_v25 = vrot.slane %v318_v14, 5  ;;  %v340_v30 = vrot.slane %v338_v20, 5  ;;  %v694_v20 = vrot.slane %v3278_v34, 5  ;;  %v702_v34 = vrot.slane %v3330_v10, 5  ;;  %v3101_v10 = vld [vmem:[%s3753_s1 + $0x178] sm:$0xff]  }
  0x26   : > { %2818 = vmatpush3.bf16.msra.mxu0 %v3074_v17  ;;  %v329_v17 = vshrl.u32 %v228_v8, 16  ;;  %v3098_v8 = vld [vmem:[%s3244_s16 + $0x8] ss:$8 sps:$4 sm:$0xff]  }
  0x27   : > { %2842 = vmatpush3.bf16.msra.mxu1 %v3075_v23  ;;  %2819 = vmatprep.subr.bf16.mxu0 %v3076_v46  ;;  %v3340_v23 = vld [vmem:[%s3244_s16 + $0x34] sm:$0x1]  ;;  %v321_v35 = vor.u32 %v320_v25, %v317_v24  ;;  %v657_v24 = vld [vmem:[%s3244_s16 + $0x20] sm:$0xe]  ;;  %v658_v25 = vld [vmem:[%s3244_s16 + $0x28] sm:$0xe] }
  0x28   : > { %2843 = vmatprep.subr.bf16.mxu1 %v3077_v50  ;;  %v331_v27 = vrot.slane %v329_v17, 4  ;;  %v352_v36 = vshll.u32 %v3340_v23, 16  ;;  %v2391_v32 = vrot.slane %v658_v25, 9  ;;  %v706_v38 = vrot.slane %v3340_v23, 5  ;;  %v3103_v23 = vld [vmem:[%s3753_s1 + $0x170] sm:$0xff]  }
  0x29   : > { %v2458_v55 = vld [vmem:[%s3244_s16 + $0x8] sm:$0xf]  ;;  %v2465_v25 = vld [vmem:[%s3244_s16 + $0x24] sm:$0x1] }
  0x2a   : > { %2820 = vmatpush3.bf16.msra.mxu0 %v3076_v46  ;;  %v335_v40 = vor.u32 %v334_v29, %v331_v27  ;;  %v322_v46 = vrot.slane %v321_v35, 4  ;;  %v354_v51 = vrot.slane %v352_v36, 5  ;;  %v698_v27 = vrot.slane %v3327_v9, 5  ;;  %v3100_v29 = vld [vmem:[%s3753_s1 + $0x138] sm:$0xff]   ;;  %v659_v35 = vld [vmem:[%s3244_s16 + $0x30] sm:$0xe] }
  0x2b   : > { %2844 = vmatpush3.bf16.msra.mxu1 %v3077_v50  ;;  %2853 = vmatprep.subr.bf16.mxu0 %v3080_v59  ;;  %v349_v50 = vor.u32 %v348_v43, %v345_v42  ;;  %v695_v9 = vsel %vm3370_vm5, %v2389_v22, %v694_v20  ;;  %v660_v36 = vld [vmem:[%s3244_s16 + $0x38] sm:$0xe]  ;;  %v703_v42 = vsel %vm3370_vm5, %v2391_v32, %v702_v34  ;;  %v710_v43 = vrot.slane %v3343_v28, 5  ;;  %v2463_v20 = vld [vmem:[%s3244_s16 + $0x1c] sm:$0x1] }
  0x2c   : > { %2877 = vmatprep.subr.bf16.mxu1 %v3081_v62  ;;  %v336_v49 = vrot.slane %v335_v40, 4  ;;  %v327_v54 = vsel %vm3287_vm2, %v322_v46, %v326_v26  ;;  %v3096_v26 = vld [vmem:[%s3753_s1 + $0x80] sm:$0xff]   ;;  %v2392_v44 = vrot.slane %v659_v35, 9  ;;  %v3102_v46 = vld [vmem:[%s3753_s1 + $0x130] sm:$0xff]   ;;  %v3110_v22 = vld [vmem:[%s3753_s1 + $0x118] sm:$0xff]  }
  0x2d   : > { %2822 = vmatmul.mubr.bf16.vlgmr.msra.gmra.mxu0 %v2363_v1  ;;  %v3111_v34 = vld [vmem:[%s3753_s1 + $0x158] sm:$0xff]   ;;  %v3112_v35 = vld [vmem:[%s3753_s1 + $0x110] sm:$0xff]  }
  0x2e   : > { %2846 = vmatmul.mubr.bf16.vlgmr.msra.gmra.mxu1 %v2375_v2  ;;  %2854 = vmatpush3.bf16.msra.mxu0 %v3080_v59  ;;  %v341_v58 = vsel %vm3287_vm2, %v336_v49, %v340_v30  ;;  %v350_v59 = vrot.slane %v349_v50, 4  ;;  %v369_v2 = vsel %vm3287_vm2, %v364_v61, %v368_v56  ;;  %v2390_v30 = vrot.slane %v657_v24, 9  ;;  %v3104_v50 = vld [vmem:[%s3753_s1 + $0x128] sm:$0xff]  }
  0x2f   : > { %2878 = vmatpush3.bf16.msra.mxu1 %v3081_v62  ;;  %2855 = vmatprep.subr.bf16.mxu0 %v3082_v3  ;;  %v2364_v60 = vcombine.low %v327_v54, %v341_v58  ;;  %v707_v28 = vsel %vm3370_vm5, %v2392_v44, %v706_v38  ;;  %v3108_v54 = vld [vmem:[%s3753_s1 + $0x120] sm:$0xff]   ;;  %v2459_v56 = vld [vmem:[%s3244_s16 + $0xc] sm:$0x1]  ;;  %v2460_v58 = vld [vmem:[%s3244_s16 + $0x10] sm:$0xf] }
  0x30   : > { %2879 = vmatprep.subr.bf16.mxu1 %v3083_v5  ;;  %2849 = vmatprep.mubr.bf16.mxu1 %v2376_v21  ;;  %v355_v62 = vsel %vm3287_vm2, %v350_v59, %v354_v51  ;;  %v2388_v21 = vrot.slane %v655_v18, 9  ;;  %v699_v40 = vsel %vm3370_vm5, %v2390_v30, %v698_v27  ;;  %v3105_v51 = vld [vmem:[%s3753_s1 + $0x168] sm:$0xff]   ;;  %v2461_v59 = vld [vmem:[%s3244_s16 + $0x14] sm:$0x1]  ;;  %v1063_v61 = vshll.u32 %v2459_v56, 16 }
  0x31   : > { %2825 = vmatprep.mubr.bf16.mxu0 %v2364_v60  ;;  %v2365_v6 = vcombine.low %v355_v62, %v369_v2  ;;  %v2412_v47 = vcombine.low %v699_v40, %v703_v42  ;;  %v1057_v60 = vshll.u32 %v2458_v55, 16  ;;  %v1068_v62 = vshrl.u32 %v2460_v58, 16  ;;  %v2502_v2 = vld [vmem:[%s3244_s16 + $0x8] sm:$0xe]  ;;  %v3113_v40 = vld [vmem:[%s3753_s1 + $0x150] sm:$0xff]  }
  0x32   : > { %2856 = vmatpush3.bf16.msra.mxu0 %v3082_v3  ;;  %v2386_v3 = vrot.slane %v653_v63, 9  ;;  %v691_v33 = vsel %vm3370_vm5, %v2388_v21, %v690_v19  ;;  %v1071_v63 = vshll.u32 %v2460_v58, 16  ;;  %v1349_v19 = vrot.slane %v2461_v59, 5  ;;  %v2464_v21 = vld [vmem:[%s3244_s16 + $0x20] sm:$0xf] }
  0x33   : > { %2880 = vmatpush3.bf16.msra.mxu1 %v3083_v5  ;;  %2857 = vmatprep.subr.bf16.mxu0 %v3084_v7  ;;  %v2387_v5 = vrot.slane %v654_v0, 9  ;;  %v1077_v0 = vshll.u32 %v2461_v59, 16  ;;  %v1096_v32 = vshrl.u32 %v2464_v21, 16  ;;  %v2466_v59 = vld [vmem:[%s3244_s16 + $0x28] sm:$0xf] }
  0x34   : > { %2881 = vmatprep.subr.bf16.mxu1 %v3085_v11  ;;  %v683_v12 = vsel %vm3370_vm5, %v2386_v3, %v682_v4  ;;  %v3095_v4 = vld [vmem:[%s3753_s1 + $0xc8] sm:$0xff]  }
  0x35   : > { %v687_v14 = vsel %vm3370_vm5, %v2387_v5, %v686_v53  ;;  %2826 = vmatmul.mubr.bf16.gmra.mxu0 %v2365_v6  ;;  %v1059_v5 = vrot.slane %v1057_v60, 5  ;;  %v2503_v6 = vld [vmem:[%s3244_s16 + $0x10] sm:$0xe]  ;;  %v1098_v44 = vrot.slane %v1096_v32, 4 }
  0x36   : > { %2858 = vmatpush3.bf16.msra.mxu0 %v3084_v7  ;;  %2850 = vmatmul.mubr.bf16.gmra.mxu1 %v2377_v52  ;;  %v3092_v7 = vld [vmem:[%s3753_s1 + $0x90] sm:$0xff]   ;;  %v2410_v17 = vcombine.low %v683_v12, %v687_v14  ;;  %v3107_v52 = vld [vmem:[%s3244_s16 + $0x38] ss:$8 sps:$4 sm:$0xff]   ;;  %v1070_v12 = vrot.slane %v1068_v62, 4  ;;  %v1073_v14 = vrot.slane %v1071_v63, 5 }
  0x37   : > { %2882 = vmatpush3.bf16.msra.mxu1 %v3085_v11  ;;  %2859 = vmatprep.subr.bf16.mxu0 %v3086_v39  ;;  %v3093_v11 = vld [vmem:[%s3753_s1 + $0xd0] sm:$0xff]  }
  0x38   : > { %2883 = vmatprep.subr.bf16.mxu1 %v3087_v45  ;;  %2893 = vmatprep.mubr.bf16.mxu1 %v3098_v8  ;;  %v1345_v8 = vrot.slane %v2459_v56, 5  ;;  %v1074_v24 = vor.u32 %v1073_v14, %v1070_v12  ;;  %v3115_v56 = vld [vmem:[%s3753_s1 + $0x148] sm:$0xff]   ;;  %v2468_v60 = vld [vmem:[%s3244_s16 + $0x30] sm:$0xf]  ;;  %v3514_v63 = vld [vmem:[%s3244_s16 + $0x34] sm:$0x1] }
  0x39   : > { %2869 = vmatprep.mubr.bf16.mxu0 %v2410_v17  ;;  %v2462_v17 = vld [vmem:[%s3244_s16 + $0x18] sm:$0xf]  ;;  %v3525_v12 = vld [vmem:[%s3244_s16 + $0x3c] sm:$0x1] }
  0x3a   : > { %2860 = vmatpush3.bf16.msra.mxu0 %v3086_v39  ;;  %v2411_v39 = vcombine.low %v691_v33, %v695_v9  ;;  %v1085_v27 = vshll.u32 %v2462_v17, 16  ;;  %v1099_v33 = vshll.u32 %v2464_v21, 16  ;;  %v2504_v9 = vld [vmem:[%s3244_s16 + $0x18] sm:$0xe]  ;;  %v3530_v21 = vld [vmem:[%s3244_s16 + $0x44] sm:$0x1] }
  0x3b   : > { %2884 = vmatpush3.bf16.msra.mxu1 %v3087_v45  ;;  %2861 = vmatprep.subr.bf16.mxu0 %v3088_v57  ;;  %v2393_v45 = vrot.slane %v660_v36, 9  ;;  %v1075_v36 = vrot.slane %v1074_v24, 4  ;;  %v3117_v24 = vld [vmem:[%s3753_s1 + $0x140] sm:$0xff]  }
  0x3c   : > { %2885 = vmatprep.subr.bf16.mxu1 %v3089_v15  ;;  %v1087_v38 = vrot.slane %v1085_v27, 5 }
  0x3d   : > { %v711_v49 = vsel %vm3370_vm5, %v2393_v45, %v710_v43  ;;  %v1101_v45 = vrot.slane %v1099_v33, 5 }
  0x3e   : > { %2862 = vmatpush3.bf16.msra.mxu0 %v3088_v57  ;;  %v2413_v53 = vcombine.low %v707_v28, %v711_v49  ;;  %v3109_v57 = vld [vmem:[%s3753_s1 + $0x160] sm:$0xff]  }
  0x3f   : > { %2886 = vmatpush3.bf16.msra.mxu1 %v3089_v15  ;;  %2863 = vmatprep.subr.bf16.mxu0 %v3092_v7  ;;  %v1054_v15 = vshrl.u32 %v2458_v55, 16  ;;  %v1102_v49 = vor.u32 %v1101_v45, %v1098_v44  ;;  %v1357_v55 = vrot.slane %v2465_v25, 5 }
  0x40   : > { %2887 = vmatprep.subr.bf16.mxu1 %v3093_v11 }
  0x41   : > { %v1056_v3 = vrot.slane %v1054_v15, 4  ;;  %v3502_v15 = vld [vmem:[%s3244_s16 + $0x2c] sm:$0x1] }
  0x42   : > { %2864 = vmatpush3.bf16.msra.mxu0 %v3092_v7  ;;  %v2510_v7 = vrot.slane %v2502_v2, 9  ;;  %v1113_v2 = vshll.u32 %v2466_v59, 16 }
  0x43   : > { %2888 = vmatpush3.bf16.msra.mxu1 %v3093_v11  ;;  %2865 = vmatprep.subr.bf16.mxu0 %v3094_v16  ;;  %v1065_v11 = vrot.slane %v1063_v61, 5  ;;  %v1060_v18 = vor.u32 %v1059_v5, %v1056_v3  ;;  %v2470_v3 = vld [vmem:[%s3244_s16 + $0x38] sm:$0xf]  ;;  %v3116_v5 = vld [vmem:[%s3753_s1 + $0x100] sm:$0xff]  }
  0x44   : > { %2889 = vmatprep.subr.bf16.mxu1 %v3095_v4  ;;  %v1346_v13 = vsel %vm3370_vm5, %v2510_v7, %v1345_v8  ;;  %v1119_v7 = vshll.u32 %v3502_v15, 16  ;;  %v1124_v8 = vshrl.u32 %v2468_v60, 16 }
  0x46   : > { %2866 = vmatpush3.bf16.msra.mxu0 %v3094_v16  ;;  %v1079_v16 = vrot.slane %v1077_v0, 5  ;;  %v1110_v0 = vshrl.u32 %v2466_v59, 16 }
  0x47   : > { %2890 = vmatpush3.bf16.msra.mxu1 %v3095_v4  ;;  %2867 = vmatprep.subr.bf16.mxu0 %v3096_v26  ;;  %v2511_v4 = vrot.slane %v2503_v6, 9 }
  0x48   : > { %2891 = vmatprep.subr.bf16.mxu1 %v3097_v31  ;;  %v1112_v14 = vrot.slane %v1110_v0, 4  ;;  %v3122_v0 = vld [vmem:[%s3753_s1 + $0x1a8] sm:$0xff]  }
  0x49   : > { %v1350_v30 = vsel %vm3370_vm5, %v2511_v4, %v1349_v19  ;;  %v1121_v4 = vrot.slane %v1119_v7, 5  ;;  %v1126_v19 = vrot.slane %v1124_v8, 4  ;;  %v3123_v8 = vld [vmem:[%s3753_s1 + $0x1e8] sm:$0xff]  }
  0x4a   : > { %2868 = vmatpush3.bf16.msra.mxu0 %v3096_v26  ;;  %v1082_v26 = vshrl.u32 %v2462_v17, 16  ;;  %v1133_v17 = vshll.u32 %v3514_v63, 16 }
  0x4b   : > { %2892 = vmatpush3.bf16.msra.mxu1 %v3097_v31  ;;  %2901 = vmatprep.subr.bf16.mxu0 %v3100_v29  ;;  %v1091_v31 = vshll.u32 %v2463_v20, 16 }
  0x4c   : > { %2925 = vmatprep.subr.bf16.mxu1 %v3101_v10 }
  0x4d   : > { %2870 = vmatmul.mubr.bf16.vlgmr.msra.gmra.mxu0 %v2411_v39  ;;  %v2505_v39 = vld [vmem:[%s3244_s16 + $0x20] sm:$0xe]  ;;  %v3482_v43 = vrot.slane %v1091_v31, 5  ;;  %v1147_v31 = vshll.u32 %v3525_v12, 16 }
  0x4e   : > { %2894 = vmatmul.mubr.bf16.vlgmr.msra.gmra.mxu1 %v3099_v37  ;;  %2902 = vmatpush3.bf16.msra.mxu0 %v3100_v29  ;;  %v1061_v29 = vrot.slane %v1060_v18, 4  ;;  %v2534_v37 = vcombine.low %v1346_v13, %v1350_v30  ;;  %v2472_v18 = vld [vmem:[%s3244_s16 + $0x40] sm:$0xf]  ;;  %v1138_v13 = vshrl.u32 %v2470_v3, 16 }
  0x4f   : > { %2926 = vmatpush3.bf16.msra.mxu1 %v3101_v10  ;;  %2903 = vmatprep.subr.bf16.mxu0 %v3102_v46  ;;  %v1084_v10 = vrot.slane %v1082_v26, 4  ;;  %v1135_v26 = vrot.slane %v1133_v17, 5  ;;  %v1152_v30 = vshrl.u32 %v2472_v18, 16  ;;  %v1155_v32 = vshll.u32 %v2472_v18, 16  ;;  %v3134_v17 = vld [vmem:[%s3244_s16 + $0x10] ss:$8 sps:$4 sm:$0xff]  }
  0x50   : > { %2927 = vmatprep.subr.bf16.mxu1 %v3103_v23  ;;  %2873 = vmatprep.mubr.bf16.mxu0 %v2412_v47  ;;  %v1066_v42 = vsel %vm3287_vm2, %v1061_v29, %v1065_v11  ;;  %v1105_v47 = vshll.u32 %v2465_v25, 16  ;;  %v1127_v11 = vshll.u32 %v2468_v60, 16  ;;  %v1140_v27 = vrot.slane %v1138_v13, 4  ;;  %v3121_v60 = vld [vmem:[%s3753_s1 + $0x1f0] sm:$0xff]  }
  0x51   : > { %2897 = vmatprep.mubr.bf16.mxu1 %v3106_v48  ;;  %v2512_v48 = vrot.slane %v2504_v9, 9  ;;  %v3118_v9 = vld [vmem:[%s3753_s1 + $0x1b8] sm:$0xff]   ;;  %v1149_v45 = vrot.slane %v1147_v31, 5  ;;  %v2582_v18 = vld [vmem:[%s3244_s16 + $0x10] sm:$0xf] }
  0x52   : > { %2904 = vmatpush3.bf16.msra.mxu0 %v3102_v46  ;;  %v1080_v46 = vsel %vm3287_vm2, %v1075_v36, %v1079_v16  ;;  %v1115_v16 = vrot.slane %v1113_v2, 5  ;;  %v1161_v36 = vshll.u32 %v3530_v21, 16  ;;  %v3590_v13 = vld [vmem:[%s3244_s16 + $0x14] sm:$0x1] }
  0x53   : > { %2928 = vmatpush3.bf16.msra.mxu1 %v3103_v23  ;;  %2905 = vmatprep.subr.bf16.mxu0 %v3104_v50  ;;  %v1088_v23 = vor.u32 %v1087_v38, %v1084_v10  ;;  %v2490_v28 = vcombine.low %v1066_v42, %v1080_v46  ;;  %v3119_v10 = vld [vmem:[%s3753_s1 + $0x1f8] sm:$0xff]   ;;  %v1157_v42 = vrot.slane %v1155_v32, 5  ;;  %v2506_v46 = vld [vmem:[%s3244_s16 + $0x28] sm:$0xe] }
  0x54   : > { %2929 = vmatprep.subr.bf16.mxu1 %v3105_v51  ;;  %v1116_v25 = vor.u32 %v1115_v16, %v1112_v14  ;;  %v3124_v14 = vld [vmem:[%s3753_s1 + $0x1a0] sm:$0xff]  }
  0x55   : > { %2874 = vmatmul.mubr.bf16.gmra.mxu0 %v2413_v53  ;;  %v3489_v53 = vrot.slane %v1088_v23, 4  ;;  %v2507_v23 = vld [vmem:[%s3244_s16 + $0x30] sm:$0xe]  ;;  %v3125_v16 = vld [vmem:[%s3753_s1 + $0x1e0] sm:$0xff]  }
  0x56   : > { %2906 = vmatpush3.bf16.msra.mxu0 %v3104_v50  ;;  %2898 = vmatmul.mubr.bf16.gmra.mxu1 %v3107_v52  ;;  %v1353_v50 = vrot.slane %v2463_v20, 5  ;;  %v3114_v52 = vld [vmem:[%s3753_s1 + $0x108] sm:$0xff]   ;;  %v1129_v20 = vrot.slane %v1127_v11, 5 }
  0x57   : > { %2930 = vmatpush3.bf16.msra.mxu1 %v3105_v51  ;;  %2907 = vmatprep.subr.bf16.mxu0 %v3108_v54  ;;  %v2513_v51 = vrot.slane %v2505_v39, 9  ;;  %v1094_v61 = vsel %vm3287_vm2, %v3489_v53, %v3482_v43  ;;  %v2509_v53 = vld [vmem:[%s3244_s16 + $0x40] sm:$0xe] }
  0x58   : > { %2931 = vmatprep.subr.bf16.mxu1 %v3109_v57  ;;  %2941 = vmatprep.mubr.bf16.mxu1 %v2534_v37  ;;  %v3498_v58 = vsel %vm3370_vm5, %v2512_v48, %v1353_v50  ;;  %v1361_v37 = vrot.slane %v3502_v15, 5  ;;  %v3120_v48 = vld [vmem:[%s3753_s1 + $0x1b0] sm:$0xff]   ;;  %v1163_v50 = vrot.slane %v1161_v36, 5  ;;  %v2517_v15 = vrot.slane %v2509_v53, 9 }
  0x59   : > { %2917 = vmatprep.mubr.bf16.mxu0 %v2490_v28  ;;  %v3511_v62 = vsel %vm3370_vm5, %v2513_v51, %v1357_v55  ;;  %v2514_v51 = vrot.slane %v2506_v46, 9  ;;  %v2515_v55 = vrot.slane %v2507_v23, 9 }
  0x5a   : > { %2908 = vmatpush3.bf16.msra.mxu0 %v3108_v54  ;;  %v3491_v54 = vrot.slane %v1105_v47, 5  ;;  %v2535_v33 = vcombine.low %v3498_v58, %v3511_v62  ;;  %v1365_v47 = vrot.slane %v3514_v63, 5  ;;  %v1373_v63 = vrot.slane %v3530_v21, 5 }
  0x5b   : > { %2932 = vmatpush3.bf16.msra.mxu1 %v3109_v57  ;;  %2909 = vmatprep.subr.bf16.mxu0 %v3110_v22  ;;  %v1103_v57 = vrot.slane %v1102_v49, 4  ;;  %v1362_v59 = vsel %vm3370_vm5, %v2514_v51, %v1361_v37  ;;  %v1720_v21 = vshll.u32 %v2582_v18, 16  ;;  %v3609_v37 = vld [vmem:[%s3244_s16 + $0x24] sm:$0x1] }
  0x5c   : > { %2933 = vmatprep.subr.bf16.mxu1 %v3111_v34  ;;  %v1366_v62 = vsel %vm3370_vm5, %v2515_v55, %v1365_v47  ;;  %v1374_v7 = vsel %vm3370_vm5, %v2517_v15, %v1373_v63  ;;  %v1754_v46 = vshll.u32 %v3609_v37, 16  ;;  %v2590_v63 = vld [vmem:[%s3244_s16 + $0x30] sm:$0xf] }
  0x5d   : > { %v1108_v6 = vsel %vm3287_vm2, %v1103_v57, %v3491_v54  ;;  %v1369_v57 = vrot.slane %v3525_v12, 5  ;;  %v2536_v2 = vcombine.low %v1362_v59, %v1366_v62 }
  0x5e   : > { %2910 = vmatpush3.bf16.msra.mxu0 %v3110_v22  ;;  %v1141_v22 = vshll.u32 %v2470_v3, 16  ;;  %v2491_v43 = vcombine.low %v1094_v61, %v1108_v6  ;;  %v1756_v59 = vrot.slane %v1754_v46, 5  ;;  %v3137_v46 = vld [vmem:[%s3753_s1 + $0x230] sm:$0xff]  }
  0x5f   : > { %2934 = vmatpush3.bf16.msra.mxu1 %v3111_v34  ;;  %2911 = vmatprep.subr.bf16.mxu0 %v3112_v35  ;;  %v1130_v34 = vor.u32 %v1129_v20, %v1126_v19  ;;  %v3594_v19 = vld [vmem:[%s3244_s16 + $0x1c] sm:$0x1]  ;;  %v1717_v20 = vshrl.u32 %v2582_v18, 16 }
  0x60   : > { %2935 = vmatprep.subr.bf16.mxu1 %v3113_v40  ;;  %v1143_v29 = vrot.slane %v1141_v22, 5  ;;  %v1726_v22 = vshll.u32 %v3590_v13, 16 }
  0x61   : > { %v1131_v38 = vrot.slane %v1130_v34, 4  ;;  %v1719_v31 = vrot.slane %v1717_v20, 4  ;;  %v1722_v34 = vrot.slane %v1720_v21, 5 }
  0x62   : > { %2912 = vmatpush3.bf16.msra.mxu0 %v3112_v35  ;;  %v1117_v35 = vrot.slane %v1116_v25, 4  ;;  %v1144_v39 = vor.u32 %v1143_v29, %v1140_v27  ;;  %v3126_v27 = vld [vmem:[%s3753_s1 + $0x198] sm:$0xff]  }
  0x63   : > { %2936 = vmatpush3.bf16.msra.mxu1 %v3113_v40  ;;  %2913 = vmatprep.subr.bf16.mxu0 %v3114_v52  ;;  %v1154_v40 = vrot.slane %v1152_v30, 4  ;;  %v1136_v28 = vsel %vm3287_vm2, %v1131_v38, %v1135_v26  ;;  %v1740_v26 = vshll.u32 %v3594_v19, 16  ;;  %v3127_v29 = vld [vmem:[%s3753_s1 + $0x1d8] sm:$0xff]   ;;  %v1728_v30 = vrot.slane %v1726_v22, 5  ;;  %v3613_v38 = vld [vmem:[%s3244_s16 + $0x2c] sm:$0x1] }
  0x64   : > { %2937 = vmatprep.subr.bf16.mxu1 %v3115_v56  ;;  %v1122_v44 = vsel %vm3287_vm2, %v1117_v35, %v1121_v4  ;;  %v1145_v54 = vrot.slane %v1144_v39, 4  ;;  %v2584_v4 = vld [vmem:[%s3244_s16 + $0x18] sm:$0xf]  ;;  %v3128_v35 = vld [vmem:[%s3753_s1 + $0x190] sm:$0xff]   ;;  %v1723_v36 = vor.u32 %v1722_v34, %v1719_v31  ;;  %v3652_v22 = vld [vmem:[%s3244_s16 + $0x44] sm:$0x1] }
  0x65   : > { %v1158_v49 = vor.u32 %v1157_v42, %v1154_v40  ;;  %v2492_v61 = vcombine.low %v1122_v44, %v1136_v28  ;;  %v1734_v25 = vshll.u32 %v2584_v4, 16  ;;  %v3129_v39 = vld [vmem:[%s3753_s1 + $0x1d0] sm:$0xff]   ;;  %v1742_v42 = vrot.slane %v1740_v26, 5 }
  0x66   : > { %2914 = vmatpush3.bf16.msra.mxu0 %v3114_v52  ;;  %v2508_v52 = vld [vmem:[%s3244_s16 + $0x38] sm:$0xe]  ;;  %v1150_v3 = vsel %vm3287_vm2, %v1145_v54, %v1149_v45  ;;  %v1724_v45 = vrot.slane %v1723_v36, 4  ;;  %v3130_v54 = vld [vmem:[%s3753_s1 + $0x188] sm:$0xff]  }
  0x67   : > { %2938 = vmatpush3.bf16.msra.mxu1 %v3115_v56  ;;  %2915 = vmatprep.subr.bf16.mxu0 %v3116_v5  ;;  %v2516_v56 = vrot.slane %v2508_v52, 9  ;;  %v1159_v58 = vrot.slane %v1158_v49, 4 }
  0x68   : > { %2939 = vmatprep.subr.bf16.mxu1 %v3117_v24  ;;  %v1729_v51 = vsel %vm3287_vm2, %v1724_v45, %v1728_v30  ;;  %v3656_v30 = vld [vmem:[%s3244_s16 + $0x4c] sm:$0x1] }
  0x69   : > { %v1370_v6 = vsel %vm3370_vm5, %v2516_v56, %v1369_v57  ;;  %v3131_v57 = vld [vmem:[%s3753_s1 + $0x1c8] sm:$0xff]  }
  0x6a   : > { %2916 = vmatpush3.bf16.msra.mxu0 %v3116_v5  ;;  %v1164_v5 = vsel %vm3287_vm2, %v1159_v58, %v1163_v50  ;;  %v2537_v12 = vcombine.low %v1370_v6, %v1374_v7  ;;  %v1768_v50 = vshll.u32 %v3613_v38, 16  ;;  %v1776_v6 = vshll.u32 %v2590_v63, 16  ;;  %v3132_v7 = vld [vmem:[%s3753_s1 + $0x180] sm:$0xff]  }
  0x6b   : > { %2940 = vmatpush3.bf16.msra.mxu1 %v3117_v24  ;;  %2949 = vmatprep.subr.bf16.mxu0 %v3118_v9  ;;  %v2493_v11 = vcombine.low %v1150_v3, %v1164_v5  ;;  %v1731_v24 = vshrl.u32 %v2584_v4, 16  ;;  %v3636_v3 = vld [vmem:[%s3244_s16 + $0x3c] sm:$0x1]  ;;  %v1773_v5 = vshrl.u32 %v2590_v63, 16 }
  0x6c   : > { %2973 = vmatprep.subr.bf16.mxu1 %v3119_v10  ;;  %v1778_v20 = vrot.slane %v1776_v6, 5  ;;  %v1796_v21 = vshll.u32 %v3636_v3, 16 }
  0x6d   : > { %2918 = vmatmul.mubr.bf16.vlgmr.msra.gmra.mxu0 %v2491_v43  ;;  %v1733_v32 = vrot.slane %v1731_v24, 4  ;;  %v1775_v4 = vrot.slane %v1773_v5, 4  ;;  %v2631_v5 = vld [vmem:[%s3244_s16 + $0x38] sm:$0xe] }
  0x6e   : > { %2942 = vmatmul.mubr.bf16.vlgmr.msra.gmra.mxu1 %v2535_v33  ;;  %2950 = vmatpush3.bf16.msra.mxu0 %v3118_v9  ;;  %v1736_v33 = vrot.slane %v1734_v25, 5  ;;  %v2586_v9 = vld [vmem:[%s3244_s16 + $0x20] sm:$0xf] }
  0x6f   : > { %2974 = vmatpush3.bf16.msra.mxu1 %v3119_v10  ;;  %2951 = vmatprep.subr.bf16.mxu0 %v3120_v48  ;;  %v2588_v10 = vld [vmem:[%s3244_s16 + $0x28] sm:$0xf]  ;;  %v1745_v43 = vshrl.u32 %v2586_v9, 16  ;;  %v1748_v44 = vshll.u32 %v2586_v9, 16  ;;  %v1779_v34 = vor.u32 %v1778_v20, %v1775_v4  ;;  %v3142_v20 = vld [vmem:[%s3753_s1 + $0x218] sm:$0xff]  }
  0x70   : > { %2975 = vmatprep.subr.bf16.mxu1 %v3121_v60  ;;  %2921 = vmatprep.mubr.bf16.mxu0 %v2492_v61  ;;  %v1737_v40 = vor.u32 %v1736_v33, %v1733_v32  ;;  %v1759_v23 = vshrl.u32 %v2588_v10, 16  ;;  %v1762_v47 = vshll.u32 %v2588_v10, 16  ;;  %v1770_v61 = vrot.slane %v1768_v50, 5  ;;  %v3135_v9 = vld [vmem:[%s3244_s16 + $0x20] ss:$8 sps:$4 sm:$0xff]  }
  0x71   : > { %2945 = vmatprep.mubr.bf16.mxu1 %v2536_v2  ;;  %v1747_v28 = vrot.slane %v1745_v43, 4  ;;  %v1750_v49 = vrot.slane %v1748_v44, 5  ;;  %v2592_v2 = vld [vmem:[%s3244_s16 + $0x38] sm:$0xf]  ;;  %v1810_v33 = vshll.u32 %v3652_v22, 16  ;;  %v1824_v44 = vshll.u32 %v3656_v30, 16 }
  0x72   : > { %2952 = vmatpush3.bf16.msra.mxu0 %v3120_v48  ;;  %v1738_v48 = vrot.slane %v1737_v40, 4  ;;  %v1761_v52 = vrot.slane %v1759_v23, 4  ;;  %v1764_v53 = vrot.slane %v1762_v47, 5 }
  0x73   : > { %2976 = vmatpush3.bf16.msra.mxu1 %v3121_v60  ;;  %2953 = vmatprep.subr.bf16.mxu0 %v3122_v0  ;;  %v1751_v56 = vor.u32 %v1750_v49, %v1747_v28  ;;  %v3138_v28 = vld [vmem:[%s3244_s16 + $0x30] ss:$8 sps:$4 sm:$0xff]  }
  0x74   : > { %2977 = vmatprep.subr.bf16.mxu1 %v3123_v8  ;;  %v1743_v55 = vsel %vm3287_vm2, %v1738_v48, %v1742_v42  ;;  %v1765_v15 = vor.u32 %v1764_v53, %v1761_v52  ;;  %v1780_v42 = vrot.slane %v1779_v34, 4  ;;  %v1826_v52 = vrot.slane %v1824_v44, 5 }
  0x75   : > { %2922 = vmatmul.mubr.bf16.gmra.mxu0 %v2493_v11  ;;  %v2614_v58 = vcombine.low %v1729_v51, %v1743_v55  ;;  %v1752_v60 = vrot.slane %v1751_v56, 4  ;;  %v1812_v51 = vrot.slane %v1810_v33, 5  ;;  %v2008_v56 = vrot.slane %v3590_v13, 5  ;;  %v3140_v13 = vld [vmem:[%s3753_s1 + $0x228] sm:$0xff]  }
  0x76   : > { %2954 = vmatpush3.bf16.msra.mxu0 %v3122_v0  ;;  %2946 = vmatmul.mubr.bf16.gmra.mxu1 %v2537_v12  ;;  %v1766_v62 = vrot.slane %v1765_v15, 4  ;;  %v3632_v0 = vld [vmem:[%s3244_s16 + $0x34] sm:$0x1]  ;;  %v1787_v12 = vshrl.u32 %v2592_v2, 16  ;;  %v2627_v15 = vld [vmem:[%s3244_s16 + $0x18] sm:$0xe] }
  0x77   : > { %2978 = vmatpush3.bf16.msra.mxu1 %v3123_v8  ;;  %2955 = vmatprep.subr.bf16.mxu0 %v3124_v14  ;;  %v1757_v8 = vsel %vm3287_vm2, %v1752_v60, %v1756_v59  ;;  %v1782_v11 = vshll.u32 %v3632_v0, 16  ;;  %v2626_v59 = vld [vmem:[%s3244_s16 + $0x10] sm:$0xe]  ;;  %v2012_v60 = vrot.slane %v3594_v19, 5  ;;  %v2635_v63 = vrot.slane %v2627_v15, 9 }
  0x78   : > { %2979 = vmatprep.subr.bf16.mxu1 %v3125_v16  ;;  %2965 = vmatprep.mubr.bf16.mxu0 %v3134_v17  ;;  %v3133_v17 = vld [vmem:[%s3753_s1 + $0x1c0] sm:$0xff]   ;;  %v1771_v18 = vsel %vm3287_vm2, %v1766_v62, %v1770_v61  ;;  %v1789_v25 = vrot.slane %v1787_v12, 4  ;;  %v2634_v62 = vrot.slane %v2626_v59, 9  ;;  %v2020_v33 = vrot.slane %v3613_v38, 5 }
  0x79   : > { %2989 = vmatprep.mubr.bf16.mxu1 %v2614_v58  ;;  %v1784_v24 = vrot.slane %v1782_v11, 5  ;;  %v2615_v45 = vcombine.low %v1757_v8, %v1771_v18  ;;  %v2639_v8 = vrot.slane %v2631_v5, 9  ;;  %v2028_v11 = vrot.slane %v3636_v3, 5  ;;  %v3139_v12 = vld [vmem:[%s3244_s16 + $0x40] ss:$8 sps:$4 sm:$0xff]  }
  0x7a   : > { %2956 = vmatpush3.bf16.msra.mxu0 %v3124_v14  ;;  %v1790_v14 = vshll.u32 %v2592_v2, 16  ;;  %v2630_v2 = vld [vmem:[%s3244_s16 + $0x30] sm:$0xe]  ;;  %v3141_v3 = vld [vmem:[%s3753_s1 + $0x220] sm:$0xff]  }
  0x7b   : > { %2980 = vmatpush3.bf16.msra.mxu1 %v3125_v16  ;;  %2957 = vmatprep.subr.bf16.mxu0 %v3126_v27  ;;  %v2594_v16 = vld [vmem:[%s3244_s16 + $0x40] sm:$0xf]  ;;  %v1785_v49 = vsel %vm3287_vm2, %v1780_v42, %v1784_v24  ;;  %v2638_v19 = vrot.slane %v2630_v2, 9  ;;  %v3144_v24 = vld [vmem:[%s3753_s1 + $0x208] sm:$0xff]  }
  0x7c   : > { %2981 = vmatprep.subr.bf16.mxu1 %v3127_v29  ;;  %v1792_v26 = vrot.slane %v1790_v14, 5  ;;  %v1801_v31 = vshrl.u32 %v2594_v16, 16  ;;  %v1804_v32 = vshll.u32 %v2594_v16, 16  ;;  %v2009_v14 = vsel %vm3370_vm5, %v2634_v62, %v2008_v56 }
  0x7d   : > { %v2013_v16 = vsel %vm3370_vm5, %v2635_v63, %v2012_v60 }
  0x7e   : > { %2958 = vmatpush3.bf16.msra.mxu0 %v3126_v27  ;;  %v2596_v27 = vld [vmem:[%s3244_s16 + $0x48] sm:$0xf]  ;;  %v1793_v36 = vor.u32 %v1792_v26, %v1789_v25  ;;  %v1803_v10 = vrot.slane %v1801_v31, 4  ;;  %v1806_v43 = vrot.slane %v1804_v32, 5  ;;  %v2658_v18 = vcombine.low %v2009_v14, %v2013_v16  ;;  %v2628_v25 = vld [vmem:[%s3244_s16 + $0x20] sm:$0xe] }
  0x7f   : > { %2982 = vmatpush3.bf16.msra.mxu1 %v3127_v29  ;;  %2959 = vmatprep.subr.bf16.mxu0 %v3128_v35  ;;  %v1798_v29 = vrot.slane %v1796_v21, 5  ;;  %v1818_v40 = vshll.u32 %v2596_v27, 16  ;;  %v3143_v21 = vld [vmem:[%s3753_s1 + $0x210] sm:$0xff]   ;;  %v2629_v26 = vld [vmem:[%s3244_s16 + $0x28] sm:$0xe]  ;;  %v2636_v34 = vrot.slane %v2628_v25, 9 }
  0x80   : > { %2983 = vmatprep.subr.bf16.mxu1 %v3129_v39  ;;  %v1794_v23 = vrot.slane %v1793_v36, 4  ;;  %v1807_v50 = vor.u32 %v1806_v43, %v1803_v10  ;;  %v2633_v31 = vld [vmem:[%s3244_s16 + $0x48] sm:$0xe]  ;;  %v2637_v32 = vrot.slane %v2629_v26, 9  ;;  %v3145_v36 = vld [vmem:[%s3753_s1 + $0x200] sm:$0xff]  }
  0x81   : > { %v1820_v48 = vrot.slane %v1818_v40, 5 }
  0x82   : > { %2960 = vmatpush3.bf16.msra.mxu0 %v3128_v35  ;;  %v3136_v35 = vld [vmem:[%s3753_s1 + $0x238] sm:$0xff]   ;;  %v1799_v53 = vsel %vm3287_vm2, %v1794_v23, %v1798_v29  ;;  %v1808_v55 = vrot.slane %v1807_v50, 4  ;;  %v2016_v29 = vrot.slane %v3609_v37, 5  ;;  %v2021_v38 = vsel %vm3370_vm5, %v2637_v32, %v2020_v33 }
  0x83   : > { %2984 = vmatpush3.bf16.msra.mxu1 %v3129_v39  ;;  %2961 = vmatprep.subr.bf16.mxu0 %v3130_v54  ;;  %v1815_v39 = vshrl.u32 %v2596_v27, 16  ;;  %v2632_v27 = vld [vmem:[%s3244_s16 + $0x40] sm:$0xe] }
  0x84   : > { %2985 = vmatprep.subr.bf16.mxu1 %v3131_v57  ;;  %v1813_v61 = vsel %vm3287_vm2, %v1808_v55, %v1812_v51  ;;  %v2640_v10 = vrot.slane %v2632_v27, 9  ;;  %v2017_v37 = vsel %vm3370_vm5, %v2636_v34, %v2016_v29 }
  0x85   : > { %v1817_v47 = vrot.slane %v1815_v39, 4  ;;  %v2641_v39 = vrot.slane %v2633_v31, 9  ;;  %v2659_v40 = vcombine.low %v2017_v37, %v2021_v38 }
  0x86   : > { %2962 = vmatpush3.bf16.msra.mxu0 %v3130_v54 }
  0x87   : > { %2986 = vmatpush3.bf16.msra.mxu1 %v3131_v57  ;;  %2963 = vmatprep.subr.bf16.mxu0 %v3132_v7  ;;  %v1821_v54 = vor.u32 %v1820_v48, %v1817_v47  ;;  %v2616_v57 = vcombine.low %v1785_v49, %v1799_v53 }
  0x88   : > { %2987 = vmatprep.subr.bf16.mxu1 %v3133_v17 }
  0x89   : > { %v1822_v58 = vrot.slane %v1821_v54, 4 }
  0x8a   : > { %2964 = vmatpush3.bf16.msra.mxu0 %v3132_v7  ;;  %v2024_v7 = vrot.slane %v3632_v0, 5  ;;  %v2029_v0 = vsel %vm3370_vm5, %v2639_v8, %v2028_v11 }
  0x8b   : > { %2988 = vmatpush3.bf16.msra.mxu1 %v3133_v17  ;;  %2997 = vmatprep.subr.bf16.mxu0 %v3136_v35  ;;  %v1827_v6 = vsel %vm3287_vm2, %v1822_v58, %v1826_v52 }
  0x8c   : > { %3021 = vmatprep.subr.bf16.mxu1 %v3136_v35  ;;  %v2617_v17 = vcombine.low %v1813_v61, %v1827_v6  ;;  %v2025_v41 = vsel %vm3370_vm5, %v2638_v19, %v2024_v7 }
  0x8d   : > { %2966 = vmatmul.mubr.bf16.vlgmr.msra.gmra.mxu0 %v3135_v9  ;;  %v2660_v4 = vcombine.low %v2025_v41, %v2029_v0  ;;  %v2032_v9 = vrot.slane %v3652_v22, 5 }
  0x8e   : > { %2990 = vmatmul.mubr.bf16.vlgmr.msra.gmra.mxu1 %v2615_v45  ;;  %2998 = vmatpush3.bf16.msra.mxu0 %v3136_v35 }
  0x8f   : > { %3029 = vmatpush3.bf16.msra.mxu1 %v3136_v35  ;;  %2999 = vmatprep.subr.bf16.mxu0 %v3137_v46  ;;  %v2036_v35 = vrot.slane %v3656_v30, 5  ;;  %v2033_v22 = vsel %vm3370_vm5, %v2640_v10, %v2032_v9 }
  0x90   : > { %3022 = vmatprep.subr.bf16.mxu1 %v3137_v46  ;;  %2969 = vmatprep.mubr.bf16.mxu0 %v3138_v28 }
  0x91   : > { %2993 = vmatprep.mubr.bf16.mxu1 %v2616_v57  ;;  %v2037_v30 = vsel %vm3370_vm5, %v2641_v39, %v2036_v35 }
  0x92   : > { %3000 = vmatpush3.bf16.msra.mxu0 %v3137_v46  ;;  %v2661_v42 = vcombine.low %v2033_v22, %v2037_v30 }
  0x93   : > { %3030 = vmatpush3.bf16.msra.mxu1 %v3137_v46  ;;  %3001 = vmatprep.subr.bf16.mxu0 %v3140_v13 }
  0x94   : > { %3023 = vmatprep.subr.bf16.mxu1 %v3140_v13 }
  0x95   : > { %2970 = vmatmul.mubr.bf16.gmra.mxu0 %v3139_v12 }
  0x96   : > { %3002 = vmatpush3.bf16.msra.mxu0 %v3140_v13  ;;  %2994 = vmatmul.mubr.bf16.gmra.mxu1 %v2617_v17 }
  0x97   : > { %3031 = vmatpush3.bf16.msra.mxu1 %v3140_v13  ;;  %3003 = vmatprep.subr.bf16.mxu0 %v3141_v3 }
  0x98   : > { %3024 = vmatprep.subr.bf16.mxu1 %v3141_v3  ;;  %3013 = vmatprep.mubr.bf16.mxu0 %v2658_v18 }
  0x99   : > { %3017 = vmatprep.mubr.bf16.mxu1 %v2660_v4 }
  0x9a   : > { %3004 = vmatpush3.bf16.msra.mxu0 %v3141_v3 }
  0x9b   : > { %3032 = vmatpush3.bf16.msra.mxu1 %v3141_v3  ;;  %3005 = vmatprep.subr.bf16.mxu0 %v3142_v20 }
  0x9c   : > { %3025 = vmatprep.subr.bf16.mxu1 %v3142_v20 }
  0x9e   : > { %3006 = vmatpush3.bf16.msra.mxu0 %v3142_v20 }
  0x9f   : > { %3033 = vmatpush3.bf16.msra.mxu1 %v3142_v20  ;;  %3007 = vmatprep.subr.bf16.mxu0 %v3143_v21 }
  0xa0   : > { %3026 = vmatprep.subr.bf16.mxu1 %v3143_v21 }
  0xa2   : > { %3008 = vmatpush3.bf16.msra.mxu0 %v3143_v21 }
  0xa3   : > { %3034 = vmatpush3.bf16.msra.mxu1 %v3143_v21  ;;  %3009 = vmatprep.subr.bf16.mxu0 %v3144_v24 }
  0xa4   : > { %3027 = vmatprep.subr.bf16.mxu1 %v3144_v24 }
  0xa6   : > { %3010 = vmatpush3.bf16.msra.mxu0 %v3144_v24 }
  0xa7   : > { %3035 = vmatpush3.bf16.msra.mxu1 %v3144_v24  ;;  %3011 = vmatprep.subr.bf16.mxu0 %v3145_v36 }
  0xa8   : > { %3028 = vmatprep.subr.bf16.mxu1 %v3145_v36 }
  0xaa   : > { %3012 = vmatpush3.bf16.msra.mxu0 %v3145_v36 }
  0xab   : > { %3036 = vmatpush3.bf16.msra.mxu1 %v3145_v36 }
  0xad   : > { %3014 = vmatmul.mubr.bf16.vlgmr.msra.gmra.mxu0 %v2659_v40 }
  0xae   : > { %3018 = vmatmul.mubr.bf16.vlgmr.msra.gmra.mxu1 %v2661_v42 }
  0xed   : > { %v2823_v43 = vpop.f32.mrf.mxu0 }
  0xee   : > { %v2847_v45 = vpop.f32.mrf.mxu1 }
  0xef   : > { %v485_v44 = vpop.f32.mrf.mxu0  ;;  %v631_v9 = vadd.f32 %v2847_v45, %v2823_v43 }
  0xf0   : > { %v622_v23 = vpop.f32.mrf.mxu1 }
  0xf1   : > { %v2824_v46 = vpop.f32.mrf.mxu0  ;;  %v623_v39 = vadd.f32 %v622_v23, %v485_v44 }
  0xf2   : > { %v2848_v28 = vpop.f32.mrf.mxu1 }
  0xf3   : > { %v488_v47 = vpop.f32.mrf.mxu0  ;;  %v634_v30 = vadd.f32 %v2848_v28, %v2824_v46 }
  0xf4   : > { %v625_v50 = vpop.f32.mrf.mxu1 }
  0xf5   : > { %v2827_v48 = vpop.f32.mrf.mxu0 }
  0xf6   : > { %v2851_v51 = vpop.f32.mrf.mxu1 }
  0xf7   : > { %v501_v49 = vpop.f32.mrf.mxu0  ;;  %v647_v36 = vadd.f32 %v2851_v51, %v2827_v48 }
  0xf8   : > { %v638_v52 = vpop.f32.mrf.mxu1 }
  0xf9   : > { %v2828_v1 = vpop.f32.mrf.mxu0  ;;  %v639_v38 = vadd.f32 %v638_v52, %v501_v49 }
  0xfa   : > { %v2852_v55 = vpop.f32.mrf.mxu1 }
  0xfb   : > { %v504_v53 = vpop.f32.mrf.mxu0 }
  0xfc   : > { %v641_v57 = vpop.f32.mrf.mxu1 }
  0xfd   : > { %v642_v44 = vadd.f32 %v641_v57, %v504_v53 }
 0x10d   : > { %v2871_v54 = vpop.f32.mrf.mxu0 }
 0x10e   : > { %v2895_v58 = vpop.f32.mrf.mxu1  ;;  %v860_v37 = vadd.f32 %v2871_v54, %v631_v9 }
 0x10f   : > { %v827_v56 = vpop.f32.mrf.mxu0 }
 0x110   : > { %v998_v15 = vpop.f32.mrf.mxu1  ;;  %v858_v40 = vadd.f32 %v827_v56, %v623_v39  ;;  %v1031_v48 = vadd.f32 %v2895_v58, %v860_v37 }
 0x111   : > { %v2872_v59 = vpop.f32.mrf.mxu0 }
 0x112   : > { %v2896_v61 = vpop.f32.mrf.mxu1  ;;  %v861_v51 = vadd.f32 %v2872_v59, %v634_v30  ;;  %v1029_v49 = vadd.f32 %v998_v15, %v858_v40 }
 0x113   : > { %v830_v60 = vpop.f32.mrf.mxu0 }
 0x114   : > { %v1001_v63 = vpop.f32.mrf.mxu1  ;;  %v1032_v56 = vadd.f32 %v2896_v61, %v861_v51 }
 0x115   : > { %v2875_v62 = vpop.f32.mrf.mxu0 }
 0x116   : > { %v2899_v5 = vpop.f32.mrf.mxu1  ;;  %v864_v22 = vadd.f32 %v2875_v62, %v647_v36 }
 0x117   : > { %v843_v2 = vpop.f32.mrf.mxu0 }
 0x118   : > { %v1014_v6 = vpop.f32.mrf.mxu1  ;;  %v862_v43 = vadd.f32 %v843_v2, %v639_v38  ;;  %v1035_v9 = vadd.f32 %v2899_v5, %v864_v22 }
 0x119   : > { %v2876_v13 = vpop.f32.mrf.mxu0 }
 0x11a   : > { %v2900_v7 = vpop.f32.mrf.mxu1  ;;  %v1033_v62 = vadd.f32 %v1014_v6, %v862_v43 }
 0x11b   : > { %v846_v19 = vpop.f32.mrf.mxu0 }
 0x11c   : > { %v1017_v11 = vpop.f32.mrf.mxu1  ;;  %v863_v28 = vadd.f32 %v846_v19, %v642_v44 }
 0x11e   : > { %v1034_v58 = vadd.f32 %v1017_v11, %v863_v28 }
 0x12d   : > { %v2919_v8 = vpop.f32.mrf.mxu0 }
 0x12e   : > { %v2943_v14 = vpop.f32.mrf.mxu1  ;;  %v1313_v36 = vadd.f32 %v2919_v8, %v1031_v48 }
 0x12f   : > { %v1280_v12 = vpop.f32.mrf.mxu0 }
 0x130   : > { %v1490_v17 = vpop.f32.mrf.mxu1 }
 0x131   : > { %v2920_v16 = vpop.f32.mrf.mxu0 }
 0x132   : > { %v2944_v0 = vpop.f32.mrf.mxu1 }
 0x133   : > { %v1283_v41 = vpop.f32.mrf.mxu0 }
 0x134   : > { %v3727_v18 = vpop.f32.mrf.mxu1 }
 0x135   : > { %v2923_v3 = vpop.f32.mrf.mxu0  ;;  %3760 = vst [vmem:[#allocation2_spill] sm:$0xff] %v3727_v18  ;;  %v650_v18 = vadd.f32 %v2852_v55, %v2828_v1 }
 0x136   : > { %v2947_v4 = vpop.f32.mrf.mxu1  ;;  %v1317_v46 = vadd.f32 %v2923_v3, %v1035_v9 }
 0x137   : > { %v1296_v20 = vpop.f32.mrf.mxu0  ;;  %v865_v54 = vadd.f32 %v2876_v13, %v650_v18 }
 0x138   : > { %v1506_v21 = vpop.f32.mrf.mxu1  ;;  %v1315_v2 = vadd.f32 %v1296_v20, %v1033_v62  ;;  %v1527_v59 = vadd.f32 %v2947_v4, %v1317_v46 }
 0x139   : > { %v2924_v24 = vpop.f32.mrf.mxu0  ;;  %v1036_v55 = vadd.f32 %v2900_v7, %v865_v54 }
 0x13a   : > { %v2948_v25 = vpop.f32.mrf.mxu1  ;;  %v1525_v6 = vadd.f32 %v1506_v21, %v1315_v2 }
 0x13b   : > { %v1299_v26 = vpop.f32.mrf.mxu0  ;;  %v1318_v53 = vadd.f32 %v2924_v24, %v1036_v55 }
 0x13c   : > { %v1509_v31 = vpop.f32.mrf.mxu1  ;;  %v1316_v19 = vadd.f32 %v1299_v26, %v1034_v58  ;;  %v3763_v20 = vld [vmem:[#allocation2_spill] sm:$0xff] }
 0x13e   : > { %v1526_v4 = vadd.f32 %v1509_v31, %v1316_v19 }
 0x14d   : > { %v2967_v27 = vpop.f32.mrf.mxu0 }
 0x14e   : > { %v2991_v34 = vpop.f32.mrf.mxu1 }
 0x14f   : > { %v1661_v29 = vpop.f32.mrf.mxu0 }
 0x150   : > { %v1943_v32 = vpop.f32.mrf.mxu1 }
 0x151   : > { %v2968_v33 = vpop.f32.mrf.mxu0 }
 0x152   : > { %v3729_v35 = vpop.f32.mrf.mxu1 }
 0x153   : > { %3761 = vst [vmem:[#allocation3_spill] sm:$0xff] %v3729_v35  ;;  %v1664_v10 = vpop.f32.mrf.mxu0  ;;  %v626_v35 = vadd.f32 %v625_v50, %v488_v47  ;;  %v1523_v47 = vadd.f32 %v2943_v14, %v1313_v36  ;;  %v1314_v50 = vadd.f32 %v2920_v16, %v1032_v56 }
 0x154   : > { %v3731_v42 = vpop.f32.mrf.mxu1 }
 0x155   : > { %3762 = vst [vmem:[#allocation4_spill] sm:$0xff] %v3731_v42  ;;  %v2971_v45 = vpop.f32.mrf.mxu0  ;;  %v859_v52 = vadd.f32 %v830_v60, %v626_v35  ;;  %v1311_v42 = vadd.f32 %v1280_v12, %v1029_v49  ;;  %v1694_v60 = vadd.f32 %v2967_v27, %v1523_v47  ;;  %v1524_v3 = vadd.f32 %v2944_v0, %v1314_v50  ;;  %v2670_v0 = vld [vmem:[%s3754_s2] ss:$0 sm:$0xff] }
 0x156   : > { %v2995_v23 = vpop.f32.mrf.mxu1  ;;  %v1698_v8 = vadd.f32 %v2971_v45, %v1527_v59  ;;  %v1528_v12 = vadd.f32 %v2948_v25, %v1318_v53 }
 0x157   : > { %v1677_v39 = vpop.f32.mrf.mxu0  ;;  %v1030_v38 = vadd.f32 %v1001_v63, %v859_v52  ;;  %v1521_v5 = vadd.f32 %v1490_v17, %v1311_v42  ;;  %v1976_v14 = vadd.f32 %v2991_v34, %v1694_v60  ;;  %v1695_v16 = vadd.f32 %v2968_v33, %v1524_v3 }
 0x158   : > { %v1959_v1 = vpop.f32.mrf.mxu1  ;;  %v1696_v18 = vadd.f32 %v1677_v39, %v1525_v6  ;;  %v1980_v24 = vadd.f32 %v2995_v23, %v1698_v8 }
 0x159   : > { %v2972_v57 = vpop.f32.mrf.mxu0  ;;  %v1312_v15 = vadd.f32 %v1283_v41, %v1030_v38  ;;  %v1692_v61 = vadd.f32 %v1661_v29, %v1521_v5 }
 0x15a   : > { %v2996_v13 = vpop.f32.mrf.mxu1  ;;  %v1699_v35 = vadd.f32 %v2972_v57, %v1528_v12  ;;  %v1978_v26 = vadd.f32 %v1959_v1, %v1696_v18  ;;  %v3764_v30 = vld [vmem:[#allocation3_spill] sm:$0xff] }
 0x15b   : > { %v1680_v7 = vpop.f32.mrf.mxu0  ;;  %v1522_v63 = vadd.f32 %v3763_v20, %v1312_v15  ;;  %v1974_v41 = vadd.f32 %v1943_v32, %v1692_v61  ;;  %v1977_v34 = vadd.f32 %v3764_v30, %v1695_v16 }
 0x15c   : > { %v1962_v11 = vpop.f32.mrf.mxu1  ;;  %v1697_v22 = vadd.f32 %v1680_v7, %v1526_v4  ;;  %v1981_v40 = vadd.f32 %v2996_v13, %v1699_v35  ;;  %v3765_v32 = vld [vmem:[#allocation4_spill] sm:$0xff] }
 0x15d   : > { %v1693_v27 = vadd.f32 %v1664_v10, %v1522_v63 }
 0x15e   : > { %v1979_v23 = vadd.f32 %v1962_v11, %v1697_v22 }
 0x15f   : > { %v1975_v10 = vadd.f32 %v3765_v32, %v1693_v27 }
 0x16d   : > { %v3015_v17 = vpop.f32.mrf.mxu0 }
 0x16e   : > { %v2186_v37 = vadd.f32 %v3015_v17, %v1976_v14  ;;  %v3019_v21 = vpop.f32.mrf.mxu1 }
 0x16f   : > { %v2190_v25 = vadd.f32 %v3019_v21, %v1980_v24  ;;  %v2153_v29 = vpop.f32.mrf.mxu0 }
 0x170   : > { %v2184_v33 = vadd.f32 %v2153_v29, %v1974_v41  ;;  %v2169_v31 = vpop.f32.mrf.mxu1  ;;  %v2201_v45 = vadd.f32 %v2670_v0, %v2186_v37 }
 0x171   : > { %v2188_v42 = vadd.f32 %v2169_v31, %v1978_v26  ;;  %v3016_v43 = vpop.f32.mrf.mxu0  ;;  %v2205_v44 = vadd.f32 %v2670_v0, %v2190_v25 }
 0x172   : > { %v2187_v48 = vadd.f32 %v3016_v43, %v1977_v34  ;;  %v3020_v51 = vpop.f32.mrf.mxu1  ;;  %v2199_v49 = vadd.f32 %v2670_v0, %v2184_v33  ;;  %v2209_v56 = vmax.f32 %v2201_v45, 0.0 }
 0x173   : > { %v2191_v9 = vadd.f32 %v3020_v51, %v1981_v40  ;;  %v2156_v54 = vpop.f32.mrf.mxu0  ;;  %v2203_v28 = vadd.f32 %v2670_v0, %v2188_v42  ;;  %v2213_v2 = vmax.f32 %v2205_v44, 0.0 }
 0x174   : > { %v2202_v52 = vadd.f32 %v2670_v0, %v2187_v48  ;;  %v2185_v36 = vadd.f32 %v2156_v54, %v1975_v10  ;;  %v2172_v62 = vpop.f32.mrf.mxu1  ;;  %v2207_v50 = vmax.f32 %v2199_v49, 0.0 }
 0x175   : > { %v2206_v46 = vadd.f32 %v2670_v0, %v2191_v9  ;;  %v2189_v39 = vadd.f32 %v2172_v62, %v1979_v23  ;;  %v2211_v53 = vmax.f32 %v2203_v28, 0.0 }
 0x176   : > { %v2210_v1 = vmax.f32 %v2202_v52, 0.0  ;;  %v2200_v55 = vadd.f32 %v2670_v0, %v2185_v36 }
 0x177   : > { %v2214_v38 = vmax.f32 %v2206_v46, 0.0  ;;  %v2204_v47 = vadd.f32 %v2670_v0, %v2189_v39 }
 0x178   : > { %v2682_v58 = vpack.c.bf16 %v2210_v1, %v2209_v56  ;;  %v2208_v59 = vmax.f32 %v2200_v55, 0.0 }
 0x179   : > { %v2692_v57 = vpack.c.bf16 %v2214_v38, %v2213_v2  ;;  %v2212_v5 = vmax.f32 %v2204_v47, 0.0 }
 0x17a   : > { %2694 = vst [vmem:[%s221_s8 + $0x8] sm:$0xff] %v2682_v58   ;;  %v2677_v15 = vpack.c.bf16 %v2208_v59, %v2207_v50 }
 0x17b   : > { %2696 = vst [vmem:[%s221_s8 + $0x18] sm:$0xff] %v2692_v57   ;;  %v2687_v60 = vpack.c.bf16 %v2212_v5, %v2211_v53 }
 0x17c   : > { %2678 = vst [vmem:[%s221_s8] sm:$0xff] %v2677_v15  }
 0x17d   : > { %2695 = vst [vmem:[%s221_s8 + $0x10] sm:$0xff] %v2687_v60  }
 0x17e PF: > { %s13_s14 = sadd.s32 1, %s3168_s14   ;;  %s3766_s12 = smov %s3164_s13 }
 0x17f   : > { %p10_p5 = scmp.ge.s32.totalorder %s13_s14, 4   ;;  %s3767_s13 = smov %s3769_s15 }
 0x181   :  { %12 = sbr.rel (!%p10_p5) target bundleno = 2 (0x2), region = 78 }

</bundles_post_ra>
